<compile_context>
chip_gen: v6e
topology: v6e:2x2x1
jax: 0.10.0
libtpu: 0.0.40
codegen_flags: <defaults>
</compile_context>

<pallas_src>
import math
from functools import partial

import jax
import jax.numpy as jnp
from jax import lax
from jax.experimental import pallas as pl
from jax.experimental.pallas import tpu as pltpu

EPS = 1e-5          # PyTorch LayerNorm / TransformerEncoderLayer default eps
NEG_INF = -1e30


def _round_up(x, m):
    return (x + m - 1) // m * m


def _layernorm(x, g, b):
    # last dim is never padded -> plain biased LN matches PyTorch exactly
    mu = jnp.mean(x, axis=-1, keepdims=True)
    var = jnp.mean(jnp.square(x - mu), axis=-1, keepdims=True)
    return (x - mu) * lax.rsqrt(var + EPS) * g + b


def _gelu_exact(x):
    return 0.5 * x * (1.0 + lax.erf(x * (1.0 / math.sqrt(2.0))))


# ---------------- Fused Pallas kernel (whole forward, B_sub images per step) ----------------

def vit_fused_kernel(
    patches_ref, seq_bias_ref, glob_vec_ref,
    pe_w_ref, wqkv_ref, wo_ref, w1_ref, w2_ref, head_w_ref, layer_vec_ref,
    out_ref,
    *, depth, heads, seq_real, seq_pad):
    bf16 = jnp.bfloat16
    f32 = jnp.float32

    b_sub, n_patches, patch_dim = patches_ref.shape
    dim = pe_w_ref.shape[1]
    dh = dim // heads
    qkv_pad = wqkv_ref.shape[2]
    mlp_pad = w1_ref.shape[2]
    cls_pad = head_w_ref.shape[1]
    pad_rows = seq_pad - 1 - n_patches

    # ---- coalesced global vectors: (8, GW) ----
    gv = glob_vec_ref[...]
    pe_ln1_g = gv[0:1, :patch_dim]
    pe_ln1_b = gv[1:2, :patch_dim]
    pe_b = gv[2:3, :dim]
    pe_ln2_g = gv[3:4, :dim]
    pe_ln2_b = gv[4:5, :dim]
    head_ln_g = gv[5:6, :dim]
    head_ln_b = gv[6:7, :dim]
    head_bias = gv[7:8, :cls_pad]

    # --- to_patch_embedding on all images folded into rows: LN(P) -> Linear -> LN(D) ---
    x = patches_ref[...].reshape(b_sub * n_patches, patch_dim)          # (B_sub*N, P)
    xn = _layernorm(x, pe_ln1_g, pe_ln1_b)
    emb = jnp.dot(xn.astype(bf16), pe_w_ref[...],
                  preferred_element_type=f32) + pe_b
    emb = _layernorm(emb, pe_ln2_g, pe_ln2_b)                           # (B_sub*N, D)

    # --- build (B_sub*S_pad, D) sequence: CLS slot + patches + pad rows, add cls+pos bias ---
    pieces = []
    for i in range(b_sub):
        pieces.append(jnp.zeros((1, dim), f32))
        pieces.append(emb[i * n_patches:(i + 1) * n_patches])
        if pad_rows:
            pieces.append(jnp.zeros((pad_rows, dim), f32))
    bias = jnp.concatenate([seq_bias_ref[...]] * b_sub, axis=0)
    seq = jnp.concatenate(pieces, axis=0) + bias                        # (B_sub*S_pad, D)

    # additive key-padding mask: keys >= seq_real are invalid in every layer
    key_pos = lax.broadcasted_iota(jnp.int32, (1, seq_pad), 1)
    key_bias = jnp.where(key_pos < seq_real, 0.0, NEG_INF).astype(f32)

    # --- transformer encoder layers (post-norm), unrolled over depth ---
    for l in range(depth):
        lv = layer_vec_ref[l]                                           # (8, LW)
        bqkv = lv[0:1, :qkv_pad]
        bo = lv[1:2, :dim]
        ln1g = lv[2:3, :dim]
        ln1b = lv[3:4, :dim]
        b1 = lv[4:5, :mlp_pad]
        b2 = lv[5:6, :dim]
        ln2g = lv[6:7, :dim]
        ln2b = lv[7:8, :dim]

        # fused QKV projection, lane-dense 128-wide output
        qkv = jnp.dot(seq.astype(bf16), wqkv_ref[l],
                      preferred_element_type=f32) + bqkv                # (rows, 128)

        # per-image, per-head attention with static lane slices (2-D dots only)
        attn_rows = []
        for i in range(b_sub):
            qkv_i = qkv[i * seq_pad:(i + 1) * seq_pad]
            head_outs = []
            for h in range(heads):
                q_h = qkv_i[:, h * dh:(h + 1) * dh].astype(bf16)
                k_h = qkv_i[:, dim + h * dh:dim + (h + 1) * dh].astype(bf16)
                v_h = qkv_i[:, 2 * dim + h * dh:2 * dim + (h + 1) * dh].astype(bf16)
                # scale already folded into wq/bq at pack time
                s = lax.dot_general(q_h, k_h, (((1,), (1,)), ((), ())),
                                    preferred_element_type=f32) + key_bias
                s = s - jnp.max(s, axis=-1, keepdims=True)
                e = jnp.exp(s)
                p = e * pl.reciprocal(jnp.sum(e, axis=-1, keepdims=True), approx=True)
                head_outs.append(jnp.dot(p.astype(bf16), v_h,
                                         preferred_element_type=f32))
            attn_rows.append(jnp.concatenate(head_outs, axis=-1))       # (S_pad, D)
        attn = jnp.concatenate(attn_rows, axis=0)                       # (rows, D)

        attn = jnp.dot(attn.astype(bf16), wo_ref[l],
                       preferred_element_type=f32) + bo

        x1 = _layernorm(seq + attn, ln1g, ln1b)

        h1 = jnp.dot(x1.astype(bf16), w1_ref[l],
                     preferred_element_type=f32) + b1                   # (rows, M_pad)
        h1 = _gelu_exact(h1)
        ff = jnp.dot(h1.astype(bf16), w2_ref[l],
                     preferred_element_type=f32) + b2

        seq = _layernorm(x1 + ff, ln2g, ln2b)

    # --- mlp_head on CLS rows: LayerNorm(D) -> Linear(D, C_pad) ---
    cls_rows = jnp.concatenate(
        [seq[i * seq_pad:i * seq_pad + 1] for i in range(b_sub)], axis=0)   # (B_sub, D)
    cls = _layernorm(cls_rows, head_ln_g, head_ln_b)
    logits = jnp.dot(cls.astype(bf16), head_w_ref[...],
                     preferred_element_type=f32) + head_bias            # (B_sub, C_pad)
    out_ref[0] = logits


# ---------------- Parameters ----------------

def init_params(key, *, channels, patch_size, num_classes, dim, depth, heads,
                mlp_dim, num_patches):
    """Logical (PyTorch-structured) parameters, all float32."""
    patch_dim = channels * patch_size * patch_size
    keys = jax.random.split(key, 8 + depth)

    def nrm(k, shape, scale=0.02):
        return scale * jax.random.normal(k, shape, dtype=jnp.float32)

    params = dict(
        pe_ln1_g=jnp.ones((patch_dim,), jnp.float32),
        pe_ln1_b=jnp.zeros((patch_dim,), jnp.float32),
        pe_w=nrm(keys[0], (patch_dim, dim)),                 # (in, out); y = x @ W
        pe_b=jnp.zeros((dim,), jnp.float32),
        pe_ln2_g=jnp.ones((dim,), jnp.float32),
        pe_ln2_b=jnp.zeros((dim,), jnp.float32),
        pos_emb=jax.random.normal(keys[1], (1, num_patches + 1, dim), jnp.float32),
        cls_token=jax.random.normal(keys[2], (1, 1, dim), jnp.float32),
        head_ln_g=jnp.ones((dim,), jnp.float32),
        head_ln_b=jnp.zeros((dim,), jnp.float32),
        head_w=nrm(keys[3], (dim, num_classes)),
        head_b=jnp.zeros((num_classes,), jnp.float32),
        layers=[],
    )
    for l in range(depth):
        lk = jax.random.split(keys[8 + l], 6)
        params['layers'].append(dict(
            wq=nrm(lk[0], (dim, dim)), wk=nrm(lk[1], (dim, dim)), wv=nrm(lk[2], (dim, dim)),
            bq=jnp.zeros((dim,), jnp.float32), bk=jnp.zeros((dim,), jnp.float32),
            bv=jnp.zeros((dim,), jnp.float32),
            wo=nrm(lk[3], (dim, dim)), bo=jnp.zeros((dim,), jnp.float32),
            ln1g=jnp.ones((dim,), jnp.float32), ln1b=jnp.zeros((dim,), jnp.float32),
            w1=nrm(lk[4], (dim, mlp_dim)), b1=jnp.zeros((mlp_dim,), jnp.float32),
            w2=nrm(lk[5], (mlp_dim, dim)), b2=jnp.zeros((dim,), jnp.float32),
            ln2g=jnp.ones((dim,), jnp.float32), ln2b=jnp.zeros((dim,), jnp.float32),
        ))
    return params


def pack_params(params, *, num_patches, heads, lane=128):
    """TPU-friendly layout: depth-stacked layers, fused+padded QKV (96->128 lanes),
    attention scale folded into wq/bq, zero-padded lane dims, coalesced small
    vectors into two blobs, bf16 matmul weights."""
    patch_dim, dim = params['pe_w'].shape
    L = params['layers']
    mlp_dim = L[0]['w1'].shape[1]
    num_classes = params['head_w'].shape[1]
    dh = dim // heads
    scale = 1.0 / math.sqrt(dh)

    seq = num_patches + 1
    seq_pad = _round_up(seq, 16)                 # bf16 sublane tile
    qkv_pad = _round_up(3 * dim, lane)
    mlp_pad = _round_up(mlp_dim, lane)
    cls_pad = _round_up(num_classes, lane)
    gw = max(_round_up(patch_dim, lane), lane, cls_pad)
    lw = max(qkv_pad, mlp_pad, lane)

    def vec(v, w):
        v = v.astype(jnp.float32)
        return jnp.pad(v, (0, w - v.shape[0])).reshape(1, w)

    def pad_cols(w, n):
        return jnp.pad(w, ((0, 0), (0, n - w.shape[1])))

    def pad_rows_(w, n):
        return jnp.pad(w, ((0, n - w.shape[0]), (0, 0)))

    glob_vecs = jnp.concatenate([
        vec(params['pe_ln1_g'], gw), vec(params['pe_ln1_b'], gw),
        vec(params['pe_b'], gw),
        vec(params['pe_ln2_g'], gw), vec(params['pe_ln2_b'], gw),
        vec(params['head_ln_g'], gw), vec(params['head_ln_b'], gw),
        vec(params['head_b'], gw),
    ], axis=0)                                                      # (8, GW)

    layer_vecs = jnp.stack([
        jnp.concatenate([
            vec(jnp.concatenate([l['bq'] * scale, l['bk'], l['bv']]), lw),
            vec(l['bo'], lw),
            vec(l['ln1g'], lw), vec(l['ln1b'], lw),
            vec(l['b1'], lw),
            vec(l['b2'], lw),
            vec(l['ln2g'], lw), vec(l['ln2b'], lw),
        ], axis=0) for l in L])                                      # (depth, 8, LW)

    packed = dict(
        glob_vecs=glob_vecs,
        layer_vecs=layer_vecs,
        pe_w=params['pe_w'].astype(jnp.bfloat16),
        wqkv=jnp.stack([
            pad_cols(jnp.concatenate([l['wq'] * scale, l['wk'], l['wv']], axis=1), qkv_pad)
            for l in L]).astype(jnp.bfloat16),                       # (depth, D, 128)
        wo=jnp.stack([l['wo'] for l in L]).astype(jnp.bfloat16),
        w1=jnp.stack([pad_cols(l['w1'], mlp_pad) for l in L]).astype(jnp.bfloat16),
        w2=jnp.stack([pad_rows_(l['w2'], mlp_pad) for l in L]).astype(jnp.bfloat16),
        head_w=pad_cols(params['head_w'], cls_pad).astype(jnp.bfloat16),
    )
    # cls token + positional embedding fused into one (seq_pad, dim) bias:
    # row 0 = cls + pos[0]; rows 1..N = pos[1..N]; padded rows stay 0.
    seq_bias = jnp.zeros((seq_pad, dim), jnp.float32)
    seq_bias = seq_bias.at[0].set(params['cls_token'][0, 0] + params['pos_emb'][0, 0])
    seq_bias = seq_bias.at[1:seq].set(params['pos_emb'][0, 1:seq])
    packed['seq_bias'] = seq_bias
    return packed


# ---------------- Forward (single fused pallas_call) ----------------

def simple_vit_forward(img, packed, *, patch_size, heads, depth, num_classes):
    B, C, H, W = img.shape
    ph = pw = patch_size
    nH, nW = H // ph, W // pw
    N = nH * nW
    P = C * ph * pw
    S_pad = packed['seq_bias'].shape[0]
    C_pad = packed['head_w'].shape[1]

    # nn.Unfold(kernel=patch, stride=patch).transpose(1, 2): pure layout in JAX
    x = img.reshape(B, C, nH, ph, nW, pw)
    x = jnp.transpose(x, (0, 2, 4, 1, 3, 5)).reshape(B, N, P)

    # grid: 2 "parallel" steps when the batch allows it (v7x has 2 TensorCores;
    # no-op on v5e/v6e), remaining batch folded into matmul rows inside the block.
    n_steps = 2 if (B >= 2 and B % 2 == 0) else 1
    b_sub = B // n_steps

    def cspec(shape):
        zeros = (0,) * len(shape)
        return pl.BlockSpec(shape, lambda g: zeros)

    kernel = partial(vit_fused_kernel, depth=depth, heads=heads,
                     seq_real=N + 1, seq_pad=S_pad)

    out = pl.pallas_call(
        kernel,
        out_shape=jax.ShapeDtypeStruct((n_steps, b_sub, C_pad), jnp.float32),
        grid=(n_steps,),
        in_specs=[
            pl.BlockSpec((b_sub, N, P), lambda g: (g, 0, 0)),       # patches
            cspec(packed['seq_bias'].shape),                        # cls+pos bias
            cspec(packed['glob_vecs'].shape),                       # coalesced global vecs
            cspec(packed['pe_w'].shape),
            cspec(packed['wqkv'].shape),
            cspec(packed['wo'].shape),
            cspec(packed['w1'].shape),
            cspec(packed['w2'].shape),
            cspec(packed['head_w'].shape),
            cspec(packed['layer_vecs'].shape),                      # coalesced per-layer vecs
        ],
        out_specs=pl.BlockSpec((1, b_sub, C_pad), lambda g: (g, 0, 0)),
        compiler_params=pltpu.CompilerParams(
            dimension_semantics=("parallel",),
            vmem_limit_bytes=32 * 1024 * 1024),
    )(x, packed['seq_bias'], packed['glob_vecs'], packed['pe_w'],
      packed['wqkv'], packed['wo'], packed['w1'], packed['w2'],
      packed['head_w'], packed['layer_vecs'])

    return out.reshape(B, C_pad)[:, :num_classes]


if __name__ == "__main__":
    # small config consistent with SimpleViT's constructor
    image_size, patch_size, channels = 16, 4, 4
    num_classes, dim, depth, heads, mlp_dim = 8, 32, 2, 4, 64
    B = 2
    num_patches = (image_size // patch_size) ** 2      # 16 -> seq len 17 with CLS

    key = jax.random.PRNGKey(0)
    kp, kx = jax.random.split(key)
    params = init_params(kp, channels=channels, patch_size=patch_size,
                         num_classes=num_classes, dim=dim, depth=depth,
                         heads=heads, mlp_dim=mlp_dim, num_patches=num_patches)
    packed = pack_params(params, num_patches=num_patches, heads=heads)
    img = jax.random.normal(kx, (B, channels, image_size, image_size), dtype=jnp.float32)

    fwd = jax.jit(partial(simple_vit_forward, patch_size=patch_size, heads=heads,
                          depth=depth, num_classes=num_classes))
    out = jax.block_until_ready(fwd(img, packed))
    assert out.shape == (B, num_classes)
    assert bool(jnp.all(jnp.isfinite(out)))
    print("KERNEL_OK")
</pallas_src>

<mosaic_0001>
module attributes {stable_mosaic.version = 11 : i64} {
  func.func @vit_fused_kernel(%arg0: i32, %arg1: memref<1x16x64xf32, #tpu.memory_space<vmem>>, %arg2: memref<32x32xf32, #tpu.memory_space<vmem>>, %arg3: memref<8x128xf32, #tpu.memory_space<vmem>>, %arg4: memref<64x32xbf16, #tpu.memory_space<vmem>>, %arg5: memref<2x32x128xbf16, #tpu.memory_space<vmem>>, %arg6: memref<2x32x32xbf16, #tpu.memory_space<vmem>>, %arg7: memref<2x32x128xbf16, #tpu.memory_space<vmem>>, %arg8: memref<2x128x32xbf16, #tpu.memory_space<vmem>>, %arg9: memref<32x128xbf16, #tpu.memory_space<vmem>>, %arg10: memref<2x8x128xf32, #tpu.memory_space<vmem>>, %arg11: memref<1x1x128xf32, #tpu.memory_space<vmem>>) attributes {dimension_semantics = [#tpu.dimension_semantics<parallel>], iteration_bounds = array<i64: 2>, scalar_prefetch = 0 : i64, scratch_operands = 0 : i64, tpu.core_type = #tpu.core_type<tc>, window_params = [{transform_indices = @transform_0, window_bounds = array<i64: 1, 16, 64>}, {pipeline_mode = #tpu.pipeline_mode<synchronous>, transform_indices = @transform_1, window_bounds = array<i64: 32, 32>}, {pipeline_mode = #tpu.pipeline_mode<synchronous>, transform_indices = @transform_2, window_bounds = array<i64: 8, 128>}, {pipeline_mode = #tpu.pipeline_mode<synchronous>, transform_indices = @transform_3, window_bounds = array<i64: 64, 32>}, {pipeline_mode = #tpu.pipeline_mode<synchronous>, transform_indices = @transform_4, window_bounds = array<i64: 2, 32, 128>}, {pipeline_mode = #tpu.pipeline_mode<synchronous>, transform_indices = @transform_5, window_bounds = array<i64: 2, 32, 32>}, {pipeline_mode = #tpu.pipeline_mode<synchronous>, transform_indices = @transform_6, window_bounds = array<i64: 2, 32, 128>}, {pipeline_mode = #tpu.pipeline_mode<synchronous>, transform_indices = @transform_7, window_bounds = array<i64: 2, 128, 32>}, {pipeline_mode = #tpu.pipeline_mode<synchronous>, transform_indices = @transform_8, window_bounds = array<i64: 32, 128>}, {pipeline_mode = #tpu.pipeline_mode<synchronous>, transform_indices = @transform_9, window_bounds = array<i64: 2, 8, 128>}, {transform_indices = @transform_10, window_bounds = array<i64: 1, 1, 128>}]} {
    %c0 = arith.constant 0 : index
    %c0_0 = arith.constant 0 : index
    %0 = vector.load %arg3[%c0, %c0_0] : memref<8x128xf32, #tpu.memory_space<vmem>>, vector<8x128xf32>
    %1 = vector.extract_strided_slice %0 {offsets = [0, 0], sizes = [1, 64], strides = [1, 1]} : vector<8x128xf32> to vector<1x64xf32>
    %2 = vector.extract_strided_slice %0 {offsets = [1, 0], sizes = [1, 64], strides = [1, 1]} : vector<8x128xf32> to vector<1x64xf32>
    %3 = vector.extract_strided_slice %0 {offsets = [2, 0], sizes = [1, 32], strides = [1, 1]} : vector<8x128xf32> to vector<1x32xf32>
    %4 = vector.extract_strided_slice %0 {offsets = [3, 0], sizes = [1, 32], strides = [1, 1]} : vector<8x128xf32> to vector<1x32xf32>
    %5 = vector.extract_strided_slice %0 {offsets = [4, 0], sizes = [1, 32], strides = [1, 1]} : vector<8x128xf32> to vector<1x32xf32>
    %6 = vector.extract_strided_slice %0 {offsets = [5, 0], sizes = [1, 32], strides = [1, 1]} : vector<8x128xf32> to vector<1x32xf32>
    %7 = vector.extract_strided_slice %0 {offsets = [6, 0], sizes = [1, 32], strides = [1, 1]} : vector<8x128xf32> to vector<1x32xf32>
    %8 = vector.extract_strided_slice %0 {offsets = [7, 0], sizes = [1, 128], strides = [1, 1]} : vector<8x128xf32> to vector<1x128xf32>
    %c0_1 = arith.constant 0 : index
    %c0_2 = arith.constant 0 : index
    %c0_3 = arith.constant 0 : index
    %9 = vector.load %arg1[%c0_1, %c0_2, %c0_3] : memref<1x16x64xf32, #tpu.memory_space<vmem>>, vector<1x16x64xf32>
    %10 = vector.shape_cast %9 : vector<1x16x64xf32> to vector<16x64xf32>
    %cst = arith.constant dense<0.000000e+00> : vector<16xf32>
    %11 = vector.multi_reduction <add>, %10, %cst [1] : vector<16x64xf32> to vector<16xf32>
    %12 = vector.shape_cast %11 : vector<16xf32> to vector<16x1xf32>
    %cst_4 = arith.constant 6.400000e+01 : f32
    %13 = vector.broadcast %cst_4 : f32 to vector<16x1xf32>
    %14 = arith.divf %12, %13 : vector<16x1xf32>
    %15 = vector.broadcast %14 : vector<16x1xf32> to vector<16x64xf32>
    %16 = arith.subf %10, %15 : vector<16x64xf32>
    %17 = arith.mulf %16, %16 : vector<16x64xf32>
    %cst_5 = arith.constant dense<0.000000e+00> : vector<16xf32>
    %18 = vector.multi_reduction <add>, %17, %cst_5 [1] : vector<16x64xf32> to vector<16xf32>
    %19 = vector.shape_cast %18 : vector<16xf32> to vector<16x1xf32>
    %cst_6 = arith.constant 6.400000e+01 : f32
    %20 = vector.broadcast %cst_6 : f32 to vector<16x1xf32>
    %21 = arith.divf %19, %20 : vector<16x1xf32>
    %22 = vector.broadcast %14 : vector<16x1xf32> to vector<16x64xf32>
    %23 = arith.subf %10, %22 : vector<16x64xf32>
    %cst_7 = arith.constant 9.99999974E-6 : f32
    %24 = vector.broadcast %cst_7 : f32 to vector<16x1xf32>
    %25 = arith.addf %21, %24 : vector<16x1xf32>
    %26 = math.rsqrt %25 : vector<16x1xf32>
    %27 = vector.broadcast %26 : vector<16x1xf32> to vector<16x64xf32>
    %28 = arith.mulf %23, %27 : vector<16x64xf32>
    %29 = vector.broadcast %1 : vector<1x64xf32> to vector<16x64xf32>
    %30 = arith.mulf %28, %29 : vector<16x64xf32>
    %31 = vector.broadcast %2 : vector<1x64xf32> to vector<16x64xf32>
    %32 = arith.addf %30, %31 : vector<16x64xf32>
    %33 = arith.truncf %32 : vector<16x64xf32> to vector<16x64xbf16>
    %c0_8 = arith.constant 0 : index
    %c0_9 = arith.constant 0 : index
    %34 = vector.load %arg4[%c0_8, %c0_9] : memref<64x32xbf16, #tpu.memory_space<vmem>>, vector<64x32xbf16>
    %cst_10 = arith.constant dense<0.000000e+00> : vector<16x32xf32>
    %35 = tpu.matmul %33, %34, %cst_10 {dimension_numbers = #tpu.dot_dimension_numbers<[1], [0], [0], [1], [0, 0, 1, 1], [], []>} : vector<16x64xbf16>, vector<64x32xbf16>, vector<16x32xf32> -> vector<16x32xf32>
    %36 = vector.broadcast %3 : vector<1x32xf32> to vector<16x32xf32>
    %37 = arith.addf %35, %36 : vector<16x32xf32>
    %cst_11 = arith.constant dense<0.000000e+00> : vector<16xf32>
    %38 = vector.multi_reduction <add>, %37, %cst_11 [1] : vector<16x32xf32> to vector<16xf32>
    %39 = vector.shape_cast %38 : vector<16xf32> to vector<16x1xf32>
    %cst_12 = arith.constant 3.200000e+01 : f32
    %40 = vector.broadcast %cst_12 : f32 to vector<16x1xf32>
    %41 = arith.divf %39, %40 : vector<16x1xf32>
    %42 = vector.broadcast %41 : vector<16x1xf32> to vector<16x32xf32>
    %43 = arith.subf %37, %42 : vector<16x32xf32>
    %44 = arith.mulf %43, %43 : vector<16x32xf32>
    %cst_13 = arith.constant dense<0.000000e+00> : vector<16xf32>
    %45 = vector.multi_reduction <add>, %44, %cst_13 [1] : vector<16x32xf32> to vector<16xf32>
    %46 = vector.shape_cast %45 : vector<16xf32> to vector<16x1xf32>
    %cst_14 = arith.constant 3.200000e+01 : f32
    %47 = vector.broadcast %cst_14 : f32 to vector<16x1xf32>
    %48 = arith.divf %46, %47 : vector<16x1xf32>
    %49 = vector.broadcast %41 : vector<16x1xf32> to vector<16x32xf32>
    %50 = arith.subf %37, %49 : vector<16x32xf32>
    %cst_15 = arith.constant 9.99999974E-6 : f32
    %51 = vector.broadcast %cst_15 : f32 to vector<16x1xf32>
    %52 = arith.addf %48, %51 : vector<16x1xf32>
    %53 = math.rsqrt %52 : vector<16x1xf32>
    %54 = vector.broadcast %53 : vector<16x1xf32> to vector<16x32xf32>
    %55 = arith.mulf %50, %54 : vector<16x32xf32>
    %56 = vector.broadcast %4 : vector<1x32xf32> to vector<16x32xf32>
    %57 = arith.mulf %55, %56 : vector<16x32xf32>
    %58 = vector.broadcast %5 : vector<1x32xf32> to vector<16x32xf32>
    %59 = arith.addf %57, %58 : vector<16x32xf32>
    %cst_16 = arith.constant 0.000000e+00 : f32
    %60 = vector.broadcast %cst_16 : f32 to vector<1x32xf32>
    %cst_17 = arith.constant 0.000000e+00 : f32
    %61 = vector.broadcast %cst_17 : f32 to vector<15x32xf32>
    %c0_18 = arith.constant 0 : index
    %c0_19 = arith.constant 0 : index
    %62 = vector.load %arg2[%c0_18, %c0_19] : memref<32x32xf32, #tpu.memory_space<vmem>>, vector<32x32xf32>
    %63 = tpu.concatenate %60, %59, %61 in 0 : vector<1x32xf32>, vector<16x32xf32>, vector<15x32xf32> -> vector<32x32xf32>
    %64 = arith.addf %63, %62 : vector<32x32xf32>
    %65 = tpu.iota {dimensions = array<i32: 1>} : vector<1x32xi32>
    %c17_i32 = arith.constant 17 : i32
    %66 = vector.broadcast %c17_i32 : i32 to vector<1x32xi32>
    %67 = arith.cmpi slt, %65, %66 : vector<1x32xi32>
    %cst_20 = arith.constant 0.000000e+00 : f32
    %cst_21 = arith.constant -1.000000e+30 : f32
    %68 = vector.broadcast %cst_20 : f32 to vector<1x32xf32>
    %69 = vector.broadcast %cst_21 : f32 to vector<1x32xf32>
    %70 = arith.select %67, %68, %69 : vector<1x32xi1>, vector<1x32xf32>
    %c0_22 = arith.constant 0 : index
    %c0_23 = arith.constant 0 : index
    %c0_24 = arith.constant 0 : index
    %71 = vector.load %arg10[%c0_22, %c0_23, %c0_24] : memref<2x8x128xf32, #tpu.memory_space<vmem>>, vector<1x8x128xf32>
    %72 = vector.shape_cast %71 : vector<1x8x128xf32> to vector<8x128xf32>
    %73 = vector.extract_strided_slice %72 {offsets = [0, 0], sizes = [1, 128], strides = [1, 1]} : vector<8x128xf32> to vector<1x128xf32>
    %74 = vector.extract_strided_slice %72 {offsets = [1, 0], sizes = [1, 32], strides = [1, 1]} : vector<8x128xf32> to vector<1x32xf32>
    %75 = vector.extract_strided_slice %72 {offsets = [2, 0], sizes = [1, 32], strides = [1, 1]} : vector<8x128xf32> to vector<1x32xf32>
    %76 = vector.extract_strided_slice %72 {offsets = [3, 0], sizes = [1, 32], strides = [1, 1]} : vector<8x128xf32> to vector<1x32xf32>
    %77 = vector.extract_strided_slice %72 {offsets = [4, 0], sizes = [1, 128], strides = [1, 1]} : vector<8x128xf32> to vector<1x128xf32>
    %78 = vector.extract_strided_slice %72 {offsets = [5, 0], sizes = [1, 32], strides = [1, 1]} : vector<8x128xf32> to vector<1x32xf32>
    %79 = vector.extract_strided_slice %72 {offsets = [6, 0], sizes = [1, 32], strides = [1, 1]} : vector<8x128xf32> to vector<1x32xf32>
    %80 = vector.extract_strided_slice %72 {offsets = [7, 0], sizes = [1, 32], strides = [1, 1]} : vector<8x128xf32> to vector<1x32xf32>
    %81 = arith.truncf %64 : vector<32x32xf32> to vector<32x32xbf16>
    %c0_25 = arith.constant 0 : index
    %c0_26 = arith.constant 0 : index
    %c0_27 = arith.constant 0 : index
    %82 = vector.load %arg5[%c0_25, %c0_26, %c0_27] : memref<2x32x128xbf16, #tpu.memory_space<vmem>>, vector<1x32x128xbf16>
    %83 = vector.shape_cast %82 : vector<1x32x128xbf16> to vector<32x128xbf16>
    %cst_28 = arith.constant dense<0.000000e+00> : vector<32x128xf32>
    %84 = tpu.matmul %81, %83, %cst_28 {dimension_numbers = #tpu.dot_dimension_numbers<[1], [0], [0], [1], [0, 0, 1, 1], [], []>} : vector<32x32xbf16>, vector<32x128xbf16>, vector<32x128xf32> -> vector<32x128xf32>
    %85 = vector.broadcast %73 : vector<1x128xf32> to vector<32x128xf32>
    %86 = arith.addf %84, %85 : vector<32x128xf32>
    %87 = vector.extract_strided_slice %86 {offsets = [0, 0], sizes = [32, 8], strides = [1, 1]} : vector<32x128xf32> to vector<32x8xf32>
    %88 = arith.truncf %87 : vector<32x8xf32> to vector<32x8xbf16>
    %89 = vector.extract_strided_slice %86 {offsets = [0, 32], sizes = [32, 8], strides = [1, 1]} : vector<32x128xf32> to vector<32x8xf32>
    %90 = arith.truncf %89 : vector<32x8xf32> to vector<32x8xbf16>
    %91 = vector.extract_strided_slice %86 {offsets = [0, 64], sizes = [32, 8], strides = [1, 1]} : vector<32x128xf32> to vector<32x8xf32>
    %92 = arith.truncf %91 : vector<32x8xf32> to vector<32x8xbf16>
    %cst_29 = arith.constant dense<0.000000e+00> : vector<32x32xf32>
    %93 = tpu.matmul %88, %90, %cst_29 {dimension_numbers = #tpu.dot_dimension_numbers<[1], [1], [0], [0], [0, 0, 1, 0], [], []>} : vector<32x8xbf16>, vector<32x8xbf16>, vector<32x32xf32> -> vector<32x32xf32>
    %94 = vector.broadcast %70 : vector<1x32xf32> to vector<32x32xf32>
    %95 = arith.addf %93, %94 : vector<32x32xf32>
    %cst_30 = arith.constant dense<0xFF800000> : vector<32xf32>
    %96 = vector.multi_reduction <maximumf>, %95, %cst_30 [1] : vector<32x32xf32> to vector<32xf32>
    %97 = vector.shape_cast %96 : vector<32xf32> to vector<32x1xf32>
    %98 = vector.broadcast %97 : vector<32x1xf32> to vector<32x32xf32>
    %99 = arith.subf %95, %98 : vector<32x32xf32>
    %100 = math.exp %99 : vector<32x32xf32>
    %cst_31 = arith.constant dense<0.000000e+00> : vector<32xf32>
    %101 = vector.multi_reduction <add>, %100, %cst_31 [1] : vector<32x32xf32> to vector<32xf32>
    %102 = vector.shape_cast %101 : vector<32xf32> to vector<32x1xf32>
    %103 = tpu.reciprocal %102 {approx = true} : vector<32x1xf32> -> vector<32x1xf32>
    %104 = vector.broadcast %103 : vector<32x1xf32> to vector<32x32xf32>
    %105 = arith.mulf %100, %104 : vector<32x32xf32>
    %106 = arith.truncf %105 : vector<32x32xf32> to vector<32x32xbf16>
    %cst_32 = arith.constant dense<0.000000e+00> : vector<32x8xf32>
    %107 = tpu.matmul %106, %92, %cst_32 {dimension_numbers = #tpu.dot_dimension_numbers<[1], [0], [0], [1], [0, 0, 1, 1], [], []>} : vector<32x32xbf16>, vector<32x8xbf16>, vector<32x8xf32> -> vector<32x8xf32>
    %108 = vector.extract_strided_slice %86 {offsets = [0, 8], sizes = [32, 8], strides = [1, 1]} : vector<32x128xf32> to vector<32x8xf32>
    %109 = arith.truncf %108 : vector<32x8xf32> to vector<32x8xbf16>
    %110 = vector.extract_strided_slice %86 {offsets = [0, 40], sizes = [32, 8], strides = [1, 1]} : vector<32x128xf32> to vector<32x8xf32>
    %111 = arith.truncf %110 : vector<32x8xf32> to vector<32x8xbf16>
    %112 = vector.extract_strided_slice %86 {offsets = [0, 72], sizes = [32, 8], strides = [1, 1]} : vector<32x128xf32> to vector<32x8xf32>
    %113 = arith.truncf %112 : vector<32x8xf32> to vector<32x8xbf16>
    %cst_33 = arith.constant dense<0.000000e+00> : vector<32x32xf32>
    %114 = tpu.matmul %109, %111, %cst_33 {dimension_numbers = #tpu.dot_dimension_numbers<[1], [1], [0], [0], [0, 0, 1, 0], [], []>} : vector<32x8xbf16>, vector<32x8xbf16>, vector<32x32xf32> -> vector<32x32xf32>
    %115 = vector.broadcast %70 : vector<1x32xf32> to vector<32x32xf32>
    %116 = arith.addf %114, %115 : vector<32x32xf32>
    %cst_34 = arith.constant dense<0xFF800000> : vector<32xf32>
    %117 = vector.multi_reduction <maximumf>, %116, %cst_34 [1] : vector<32x32xf32> to vector<32xf32>
    %118 = vector.shape_cast %117 : vector<32xf32> to vector<32x1xf32>
    %119 = vector.broadcast %118 : vector<32x1xf32> to vector<32x32xf32>
    %120 = arith.subf %116, %119 : vector<32x32xf32>
    %121 = math.exp %120 : vector<32x32xf32>
    %cst_35 = arith.constant dense<0.000000e+00> : vector<32xf32>
    %122 = vector.multi_reduction <add>, %121, %cst_35 [1] : vector<32x32xf32> to vector<32xf32>
    %123 = vector.shape_cast %122 : vector<32xf32> to vector<32x1xf32>
    %124 = tpu.reciprocal %123 {approx = true} : vector<32x1xf32> -> vector<32x1xf32>
    %125 = vector.broadcast %124 : vector<32x1xf32> to vector<32x32xf32>
    %126 = arith.mulf %121, %125 : vector<32x32xf32>
    %127 = arith.truncf %126 : vector<32x32xf32> to vector<32x32xbf16>
    %cst_36 = arith.constant dense<0.000000e+00> : vector<32x8xf32>
    %128 = tpu.matmul %127, %113, %cst_36 {dimension_numbers = #tpu.dot_dimension_numbers<[1], [0], [0], [1], [0, 0, 1, 1], [], []>} : vector<32x32xbf16>, vector<32x8xbf16>, vector<32x8xf32> -> vector<32x8xf32>
    %129 = vector.extract_strided_slice %86 {offsets = [0, 16], sizes = [32, 8], strides = [1, 1]} : vector<32x128xf32> to vector<32x8xf32>
    %130 = arith.truncf %129 : vector<32x8xf32> to vector<32x8xbf16>
    %131 = vector.extract_strided_slice %86 {offsets = [0, 48], sizes = [32, 8], strides = [1, 1]} : vector<32x128xf32> to vector<32x8xf32>
    %132 = arith.truncf %131 : vector<32x8xf32> to vector<32x8xbf16>
    %133 = vector.extract_strided_slice %86 {offsets = [0, 80], sizes = [32, 8], strides = [1, 1]} : vector<32x128xf32> to vector<32x8xf32>
    %134 = arith.truncf %133 : vector<32x8xf32> to vector<32x8xbf16>
    %cst_37 = arith.constant dense<0.000000e+00> : vector<32x32xf32>
    %135 = tpu.matmul %130, %132, %cst_37 {dimension_numbers = #tpu.dot_dimension_numbers<[1], [1], [0], [0], [0, 0, 1, 0], [], []>} : vector<32x8xbf16>, vector<32x8xbf16>, vector<32x32xf32> -> vector<32x32xf32>
    %136 = vector.broadcast %70 : vector<1x32xf32> to vector<32x32xf32>
    %137 = arith.addf %135, %136 : vector<32x32xf32>
    %cst_38 = arith.constant dense<0xFF800000> : vector<32xf32>
    %138 = vector.multi_reduction <maximumf>, %137, %cst_38 [1] : vector<32x32xf32> to vector<32xf32>
    %139 = vector.shape_cast %138 : vector<32xf32> to vector<32x1xf32>
    %140 = vector.broadcast %139 : vector<32x1xf32> to vector<32x32xf32>
    %141 = arith.subf %137, %140 : vector<32x32xf32>
    %142 = math.exp %141 : vector<32x32xf32>
    %cst_39 = arith.constant dense<0.000000e+00> : vector<32xf32>
    %143 = vector.multi_reduction <add>, %142, %cst_39 [1] : vector<32x32xf32> to vector<32xf32>
    %144 = vector.shape_cast %143 : vector<32xf32> to vector<32x1xf32>
    %145 = tpu.reciprocal %144 {approx = true} : vector<32x1xf32> -> vector<32x1xf32>
    %146 = vector.broadcast %145 : vector<32x1xf32> to vector<32x32xf32>
    %147 = arith.mulf %142, %146 : vector<32x32xf32>
    %148 = arith.truncf %147 : vector<32x32xf32> to vector<32x32xbf16>
    %cst_40 = arith.constant dense<0.000000e+00> : vector<32x8xf32>
    %149 = tpu.matmul %148, %134, %cst_40 {dimension_numbers = #tpu.dot_dimension_numbers<[1], [0], [0], [1], [0, 0, 1, 1], [], []>} : vector<32x32xbf16>, vector<32x8xbf16>, vector<32x8xf32> -> vector<32x8xf32>
    %150 = vector.extract_strided_slice %86 {offsets = [0, 24], sizes = [32, 8], strides = [1, 1]} : vector<32x128xf32> to vector<32x8xf32>
    %151 = arith.truncf %150 : vector<32x8xf32> to vector<32x8xbf16>
    %152 = vector.extract_strided_slice %86 {offsets = [0, 56], sizes = [32, 8], strides = [1, 1]} : vector<32x128xf32> to vector<32x8xf32>
    %153 = arith.truncf %152 : vector<32x8xf32> to vector<32x8xbf16>
    %154 = vector.extract_strided_slice %86 {offsets = [0, 88], sizes = [32, 8], strides = [1, 1]} : vector<32x128xf32> to vector<32x8xf32>
    %155 = arith.truncf %154 : vector<32x8xf32> to vector<32x8xbf16>
    %cst_41 = arith.constant dense<0.000000e+00> : vector<32x32xf32>
    %156 = tpu.matmul %151, %153, %cst_41 {dimension_numbers = #tpu.dot_dimension_numbers<[1], [1], [0], [0], [0, 0, 1, 0], [], []>} : vector<32x8xbf16>, vector<32x8xbf16>, vector<32x32xf32> -> vector<32x32xf32>
    %157 = vector.broadcast %70 : vector<1x32xf32> to vector<32x32xf32>
    %158 = arith.addf %156, %157 : vector<32x32xf32>
    %cst_42 = arith.constant dense<0xFF800000> : vector<32xf32>
    %159 = vector.multi_reduction <maximumf>, %158, %cst_42 [1] : vector<32x32xf32> to vector<32xf32>
    %160 = vector.shape_cast %159 : vector<32xf32> to vector<32x1xf32>
    %161 = vector.broadcast %160 : vector<32x1xf32> to vector<32x32xf32>
    %162 = arith.subf %158, %161 : vector<32x32xf32>
    %163 = math.exp %162 : vector<32x32xf32>
    %cst_43 = arith.constant dense<0.000000e+00> : vector<32xf32>
    %164 = vector.multi_reduction <add>, %163, %cst_43 [1] : vector<32x32xf32> to vector<32xf32>
    %165 = vector.shape_cast %164 : vector<32xf32> to vector<32x1xf32>
    %166 = tpu.reciprocal %165 {approx = true} : vector<32x1xf32> -> vector<32x1xf32>
    %167 = vector.broadcast %166 : vector<32x1xf32> to vector<32x32xf32>
    %168 = arith.mulf %163, %167 : vector<32x32xf32>
    %169 = arith.truncf %168 : vector<32x32xf32> to vector<32x32xbf16>
    %cst_44 = arith.constant dense<0.000000e+00> : vector<32x8xf32>
    %170 = tpu.matmul %169, %155, %cst_44 {dimension_numbers = #tpu.dot_dimension_numbers<[1], [0], [0], [1], [0, 0, 1, 1], [], []>} : vector<32x32xbf16>, vector<32x8xbf16>, vector<32x8xf32> -> vector<32x8xf32>
    %171 = tpu.concatenate %107, %128, %149, %170 in 1 : vector<32x8xf32>, vector<32x8xf32>, vector<32x8xf32>, vector<32x8xf32> -> vector<32x32xf32>
    %172 = arith.truncf %171 : vector<32x32xf32> to vector<32x32xbf16>
    %c0_45 = arith.constant 0 : index
    %c0_46 = arith.constant 0 : index
    %c0_47 = arith.constant 0 : index
    %173 = vector.load %arg6[%c0_45, %c0_46, %c0_47] : memref<2x32x32xbf16, #tpu.memory_space<vmem>>, vector<1x32x32xbf16>
    %174 = vector.shape_cast %173 : vector<1x32x32xbf16> to vector<32x32xbf16>
    %cst_48 = arith.constant dense<0.000000e+00> : vector<32x32xf32>
    %175 = tpu.matmul %172, %174, %cst_48 {dimension_numbers = #tpu.dot_dimension_numbers<[1], [0], [0], [1], [0, 0, 1, 1], [], []>} : vector<32x32xbf16>, vector<32x32xbf16>, vector<32x32xf32> -> vector<32x32xf32>
    %176 = vector.broadcast %74 : vector<1x32xf32> to vector<32x32xf32>
    %177 = arith.addf %175, %176 : vector<32x32xf32>
    %178 = arith.addf %64, %177 : vector<32x32xf32>
    %cst_49 = arith.constant dense<0.000000e+00> : vector<32xf32>
    %179 = vector.multi_reduction <add>, %178, %cst_49 [1] : vector<32x32xf32> to vector<32xf32>
    %180 = vector.shape_cast %179 : vector<32xf32> to vector<32x1xf32>
    %cst_50 = arith.constant 3.200000e+01 : f32
    %181 = vector.broadcast %cst_50 : f32 to vector<32x1xf32>
    %182 = arith.divf %180, %181 : vector<32x1xf32>
    %183 = vector.broadcast %182 : vector<32x1xf32> to vector<32x32xf32>
    %184 = arith.subf %178, %183 : vector<32x32xf32>
    %185 = arith.mulf %184, %184 : vector<32x32xf32>
    %cst_51 = arith.constant dense<0.000000e+00> : vector<32xf32>
    %186 = vector.multi_reduction <add>, %185, %cst_51 [1] : vector<32x32xf32> to vector<32xf32>
    %187 = vector.shape_cast %186 : vector<32xf32> to vector<32x1xf32>
    %cst_52 = arith.constant 3.200000e+01 : f32
    %188 = vector.broadcast %cst_52 : f32 to vector<32x1xf32>
    %189 = arith.divf %187, %188 : vector<32x1xf32>
    %190 = vector.broadcast %182 : vector<32x1xf32> to vector<32x32xf32>
    %191 = arith.subf %178, %190 : vector<32x32xf32>
    %cst_53 = arith.constant 9.99999974E-6 : f32
    %192 = vector.broadcast %cst_53 : f32 to vector<32x1xf32>
    %193 = arith.addf %189, %192 : vector<32x1xf32>
    %194 = math.rsqrt %193 : vector<32x1xf32>
    %195 = vector.broadcast %194 : vector<32x1xf32> to vector<32x32xf32>
    %196 = arith.mulf %191, %195 : vector<32x32xf32>
    %197 = vector.broadcast %75 : vector<1x32xf32> to vector<32x32xf32>
    %198 = arith.mulf %196, %197 : vector<32x32xf32>
    %199 = vector.broadcast %76 : vector<1x32xf32> to vector<32x32xf32>
    %200 = arith.addf %198, %199 : vector<32x32xf32>
    %201 = arith.truncf %200 : vector<32x32xf32> to vector<32x32xbf16>
    %c0_54 = arith.constant 0 : index
    %c0_55 = arith.constant 0 : index
    %c0_56 = arith.constant 0 : index
    %202 = vector.load %arg7[%c0_54, %c0_55, %c0_56] : memref<2x32x128xbf16, #tpu.memory_space<vmem>>, vector<1x32x128xbf16>
    %203 = vector.shape_cast %202 : vector<1x32x128xbf16> to vector<32x128xbf16>
    %cst_57 = arith.constant dense<0.000000e+00> : vector<32x128xf32>
    %204 = tpu.matmul %201, %203, %cst_57 {dimension_numbers = #tpu.dot_dimension_numbers<[1], [0], [0], [1], [0, 0, 1, 1], [], []>} : vector<32x32xbf16>, vector<32x128xbf16>, vector<32x128xf32> -> vector<32x128xf32>
    %205 = vector.broadcast %77 : vector<1x128xf32> to vector<32x128xf32>
    %206 = arith.addf %204, %205 : vector<32x128xf32>
    %cst_58 = arith.constant 5.000000e-01 : f32
    %207 = vector.broadcast %cst_58 : f32 to vector<32x128xf32>
    %208 = arith.mulf %207, %206 : vector<32x128xf32>
    %cst_59 = arith.constant 0.707106769 : f32
    %209 = vector.broadcast %cst_59 : f32 to vector<32x128xf32>
    %210 = arith.mulf %206, %209 : vector<32x128xf32>
    %211 = math.erf %210 : vector<32x128xf32>
    %cst_60 = arith.constant 1.000000e+00 : f32
    %212 = vector.broadcast %cst_60 : f32 to vector<32x128xf32>
    %213 = arith.addf %212, %211 : vector<32x128xf32>
    %214 = arith.mulf %208, %213 : vector<32x128xf32>
    %215 = arith.truncf %214 : vector<32x128xf32> to vector<32x128xbf16>
    %c0_61 = arith.constant 0 : index
    %c0_62 = arith.constant 0 : index
    %c0_63 = arith.constant 0 : index
    %216 = vector.load %arg8[%c0_61, %c0_62, %c0_63] : memref<2x128x32xbf16, #tpu.memory_space<vmem>>, vector<1x128x32xbf16>
    %217 = vector.shape_cast %216 : vector<1x128x32xbf16> to vector<128x32xbf16>
    %cst_64 = arith.constant dense<0.000000e+00> : vector<32x32xf32>
    %218 = tpu.matmul %215, %217, %cst_64 {dimension_numbers = #tpu.dot_dimension_numbers<[1], [0], [0], [1], [0, 0, 1, 1], [], []>} : vector<32x128xbf16>, vector<128x32xbf16>, vector<32x32xf32> -> vector<32x32xf32>
    %219 = vector.broadcast %78 : vector<1x32xf32> to vector<32x32xf32>
    %220 = arith.addf %218, %219 : vector<32x32xf32>
    %221 = arith.addf %200, %220 : vector<32x32xf32>
    %cst_65 = arith.constant dense<0.000000e+00> : vector<32xf32>
    %222 = vector.multi_reduction <add>, %221, %cst_65 [1] : vector<32x32xf32> to vector<32xf32>
    %223 = vector.shape_cast %222 : vector<32xf32> to vector<32x1xf32>
    %cst_66 = arith.constant 3.200000e+01 : f32
    %224 = vector.broadcast %cst_66 : f32 to vector<32x1xf32>
    %225 = arith.divf %223, %224 : vector<32x1xf32>
    %226 = vector.broadcast %225 : vector<32x1xf32> to vector<32x32xf32>
    %227 = arith.subf %221, %226 : vector<32x32xf32>
    %228 = arith.mulf %227, %227 : vector<32x32xf32>
    %cst_67 = arith.constant dense<0.000000e+00> : vector<32xf32>
    %229 = vector.multi_reduction <add>, %228, %cst_67 [1] : vector<32x32xf32> to vector<32xf32>
    %230 = vector.shape_cast %229 : vector<32xf32> to vector<32x1xf32>
    %cst_68 = arith.constant 3.200000e+01 : f32
    %231 = vector.broadcast %cst_68 : f32 to vector<32x1xf32>
    %232 = arith.divf %230, %231 : vector<32x1xf32>
    %233 = vector.broadcast %225 : vector<32x1xf32> to vector<32x32xf32>
    %234 = arith.subf %221, %233 : vector<32x32xf32>
    %cst_69 = arith.constant 9.99999974E-6 : f32
    %235 = vector.broadcast %cst_69 : f32 to vector<32x1xf32>
    %236 = arith.addf %232, %235 : vector<32x1xf32>
    %237 = math.rsqrt %236 : vector<32x1xf32>
    %238 = vector.broadcast %237 : vector<32x1xf32> to vector<32x32xf32>
    %239 = arith.mulf %234, %238 : vector<32x32xf32>
    %240 = vector.broadcast %79 : vector<1x32xf32> to vector<32x32xf32>
    %241 = arith.mulf %239, %240 : vector<32x32xf32>
    %242 = vector.broadcast %80 : vector<1x32xf32> to vector<32x32xf32>
    %243 = arith.addf %241, %242 : vector<32x32xf32>
    %c1 = arith.constant 1 : index
    %c0_70 = arith.constant 0 : index
    %c0_71 = arith.constant 0 : index
    %244 = vector.load %arg10[%c1, %c0_70, %c0_71] : memref<2x8x128xf32, #tpu.memory_space<vmem>>, vector<1x8x128xf32>
    %245 = vector.shape_cast %244 : vector<1x8x128xf32> to vector<8x128xf32>
    %246 = vector.extract_strided_slice %245 {offsets = [0, 0], sizes = [1, 128], strides = [1, 1]} : vector<8x128xf32> to vector<1x128xf32>
    %247 = vector.extract_strided_slice %245 {offsets = [1, 0], sizes = [1, 32], strides = [1, 1]} : vector<8x128xf32> to vector<1x32xf32>
    %248 = vector.extract_strided_slice %245 {offsets = [2, 0], sizes = [1, 32], strides = [1, 1]} : vector<8x128xf32> to vector<1x32xf32>
    %249 = vector.extract_strided_slice %245 {offsets = [3, 0], sizes = [1, 32], strides = [1, 1]} : vector<8x128xf32> to vector<1x32xf32>
    %250 = vector.extract_strided_slice %245 {offsets = [4, 0], sizes = [1, 128], strides = [1, 1]} : vector<8x128xf32> to vector<1x128xf32>
    %251 = vector.extract_strided_slice %245 {offsets = [5, 0], sizes = [1, 32], strides = [1, 1]} : vector<8x128xf32> to vector<1x32xf32>
    %252 = vector.extract_strided_slice %245 {offsets = [6, 0], sizes = [1, 32], strides = [1, 1]} : vector<8x128xf32> to vector<1x32xf32>
    %253 = vector.extract_strided_slice %245 {offsets = [7, 0], sizes = [1, 32], strides = [1, 1]} : vector<8x128xf32> to vector<1x32xf32>
    %254 = arith.truncf %243 : vector<32x32xf32> to vector<32x32xbf16>
    %c1_72 = arith.constant 1 : index
    %c0_73 = arith.constant 0 : index
    %c0_74 = arith.constant 0 : index
    %255 = vector.load %arg5[%c1_72, %c0_73, %c0_74] : memref<2x32x128xbf16, #tpu.memory_space<vmem>>, vector<1x32x128xbf16>
    %256 = vector.shape_cast %255 : vector<1x32x128xbf16> to vector<32x128xbf16>
    %cst_75 = arith.constant dense<0.000000e+00> : vector<32x128xf32>
    %257 = tpu.matmul %254, %256, %cst_75 {dimension_numbers = #tpu.dot_dimension_numbers<[1], [0], [0], [1], [0, 0, 1, 1], [], []>} : vector<32x32xbf16>, vector<32x128xbf16>, vector<32x128xf32> -> vector<32x128xf32>
    %258 = vector.broadcast %246 : vector<1x128xf32> to vector<32x128xf32>
    %259 = arith.addf %257, %258 : vector<32x128xf32>
    %260 = vector.extract_strided_slice %259 {offsets = [0, 0], sizes = [32, 8], strides = [1, 1]} : vector<32x128xf32> to vector<32x8xf32>
    %261 = arith.truncf %260 : vector<32x8xf32> to vector<32x8xbf16>
    %262 = vector.extract_strided_slice %259 {offsets = [0, 32], sizes = [32, 8], strides = [1, 1]} : vector<32x128xf32> to vector<32x8xf32>
    %263 = arith.truncf %262 : vector<32x8xf32> to vector<32x8xbf16>
    %264 = vector.extract_strided_slice %259 {offsets = [0, 64], sizes = [32, 8], strides = [1, 1]} : vector<32x128xf32> to vector<32x8xf32>
    %265 = arith.truncf %264 : vector<32x8xf32> to vector<32x8xbf16>
    %cst_76 = arith.constant dense<0.000000e+00> : vector<32x32xf32>
    %266 = tpu.matmul %261, %263, %cst_76 {dimension_numbers = #tpu.dot_dimension_numbers<[1], [1], [0], [0], [0, 0, 1, 0], [], []>} : vector<32x8xbf16>, vector<32x8xbf16>, vector<32x32xf32> -> vector<32x32xf32>
    %267 = vector.broadcast %70 : vector<1x32xf32> to vector<32x32xf32>
    %268 = arith.addf %266, %267 : vector<32x32xf32>
    %cst_77 = arith.constant dense<0xFF800000> : vector<32xf32>
    %269 = vector.multi_reduction <maximumf>, %268, %cst_77 [1] : vector<32x32xf32> to vector<32xf32>
    %270 = vector.shape_cast %269 : vector<32xf32> to vector<32x1xf32>
    %271 = vector.broadcast %270 : vector<32x1xf32> to vector<32x32xf32>
    %272 = arith.subf %268, %271 : vector<32x32xf32>
    %273 = math.exp %272 : vector<32x32xf32>
    %cst_78 = arith.constant dense<0.000000e+00> : vector<32xf32>
    %274 = vector.multi_reduction <add>, %273, %cst_78 [1] : vector<32x32xf32> to vector<32xf32>
    %275 = vector.shape_cast %274 : vector<32xf32> to vector<32x1xf32>
    %276 = tpu.reciprocal %275 {approx = true} : vector<32x1xf32> -> vector<32x1xf32>
    %277 = vector.broadcast %276 : vector<32x1xf32> to vector<32x32xf32>
    %278 = arith.mulf %273, %277 : vector<32x32xf32>
    %279 = arith.truncf %278 : vector<32x32xf32> to vector<32x32xbf16>
    %cst_79 = arith.constant dense<0.000000e+00> : vector<32x8xf32>
    %280 = tpu.matmul %279, %265, %cst_79 {dimension_numbers = #tpu.dot_dimension_numbers<[1], [0], [0], [1], [0, 0, 1, 1], [], []>} : vector<32x32xbf16>, vector<32x8xbf16>, vector<32x8xf32> -> vector<32x8xf32>
    %281 = vector.extract_strided_slice %259 {offsets = [0, 8], sizes = [32, 8], strides = [1, 1]} : vector<32x128xf32> to vector<32x8xf32>
    %282 = arith.truncf %281 : vector<32x8xf32> to vector<32x8xbf16>
    %283 = vector.extract_strided_slice %259 {offsets = [0, 40], sizes = [32, 8], strides = [1, 1]} : vector<32x128xf32> to vector<32x8xf32>
    %284 = arith.truncf %283 : vector<32x8xf32> to vector<32x8xbf16>
    %285 = vector.extract_strided_slice %259 {offsets = [0, 72], sizes = [32, 8], strides = [1, 1]} : vector<32x128xf32> to vector<32x8xf32>
    %286 = arith.truncf %285 : vector<32x8xf32> to vector<32x8xbf16>
    %cst_80 = arith.constant dense<0.000000e+00> : vector<32x32xf32>
    %287 = tpu.matmul %282, %284, %cst_80 {dimension_numbers = #tpu.dot_dimension_numbers<[1], [1], [0], [0], [0, 0, 1, 0], [], []>} : vector<32x8xbf16>, vector<32x8xbf16>, vector<32x32xf32> -> vector<32x32xf32>
    %288 = vector.broadcast %70 : vector<1x32xf32> to vector<32x32xf32>
    %289 = arith.addf %287, %288 : vector<32x32xf32>
    %cst_81 = arith.constant dense<0xFF800000> : vector<32xf32>
    %290 = vector.multi_reduction <maximumf>, %289, %cst_81 [1] : vector<32x32xf32> to vector<32xf32>
    %291 = vector.shape_cast %290 : vector<32xf32> to vector<32x1xf32>
    %292 = vector.broadcast %291 : vector<32x1xf32> to vector<32x32xf32>
    %293 = arith.subf %289, %292 : vector<32x32xf32>
    %294 = math.exp %293 : vector<32x32xf32>
    %cst_82 = arith.constant dense<0.000000e+00> : vector<32xf32>
    %295 = vector.multi_reduction <add>, %294, %cst_82 [1] : vector<32x32xf32> to vector<32xf32>
    %296 = vector.shape_cast %295 : vector<32xf32> to vector<32x1xf32>
    %297 = tpu.reciprocal %296 {approx = true} : vector<32x1xf32> -> vector<32x1xf32>
    %298 = vector.broadcast %297 : vector<32x1xf32> to vector<32x32xf32>
    %299 = arith.mulf %294, %298 : vector<32x32xf32>
    %300 = arith.truncf %299 : vector<32x32xf32> to vector<32x32xbf16>
    %cst_83 = arith.constant dense<0.000000e+00> : vector<32x8xf32>
    %301 = tpu.matmul %300, %286, %cst_83 {dimension_numbers = #tpu.dot_dimension_numbers<[1], [0], [0], [1], [0, 0, 1, 1], [], []>} : vector<32x32xbf16>, vector<32x8xbf16>, vector<32x8xf32> -> vector<32x8xf32>
    %302 = vector.extract_strided_slice %259 {offsets = [0, 16], sizes = [32, 8], strides = [1, 1]} : vector<32x128xf32> to vector<32x8xf32>
    %303 = arith.truncf %302 : vector<32x8xf32> to vector<32x8xbf16>
    %304 = vector.extract_strided_slice %259 {offsets = [0, 48], sizes = [32, 8], strides = [1, 1]} : vector<32x128xf32> to vector<32x8xf32>
    %305 = arith.truncf %304 : vector<32x8xf32> to vector<32x8xbf16>
    %306 = vector.extract_strided_slice %259 {offsets = [0, 80], sizes = [32, 8], strides = [1, 1]} : vector<32x128xf32> to vector<32x8xf32>
    %307 = arith.truncf %306 : vector<32x8xf32> to vector<32x8xbf16>
    %cst_84 = arith.constant dense<0.000000e+00> : vector<32x32xf32>
    %308 = tpu.matmul %303, %305, %cst_84 {dimension_numbers = #tpu.dot_dimension_numbers<[1], [1], [0], [0], [0, 0, 1, 0], [], []>} : vector<32x8xbf16>, vector<32x8xbf16>, vector<32x32xf32> -> vector<32x32xf32>
    %309 = vector.broadcast %70 : vector<1x32xf32> to vector<32x32xf32>
    %310 = arith.addf %308, %309 : vector<32x32xf32>
    %cst_85 = arith.constant dense<0xFF800000> : vector<32xf32>
    %311 = vector.multi_reduction <maximumf>, %310, %cst_85 [1] : vector<32x32xf32> to vector<32xf32>
    %312 = vector.shape_cast %311 : vector<32xf32> to vector<32x1xf32>
    %313 = vector.broadcast %312 : vector<32x1xf32> to vector<32x32xf32>
    %314 = arith.subf %310, %313 : vector<32x32xf32>
    %315 = math.exp %314 : vector<32x32xf32>
    %cst_86 = arith.constant dense<0.000000e+00> : vector<32xf32>
    %316 = vector.multi_reduction <add>, %315, %cst_86 [1] : vector<32x32xf32> to vector<32xf32>
    %317 = vector.shape_cast %316 : vector<32xf32> to vector<32x1xf32>
    %318 = tpu.reciprocal %317 {approx = true} : vector<32x1xf32> -> vector<32x1xf32>
    %319 = vector.broadcast %318 : vector<32x1xf32> to vector<32x32xf32>
    %320 = arith.mulf %315, %319 : vector<32x32xf32>
    %321 = arith.truncf %320 : vector<32x32xf32> to vector<32x32xbf16>
    %cst_87 = arith.constant dense<0.000000e+00> : vector<32x8xf32>
    %322 = tpu.matmul %321, %307, %cst_87 {dimension_numbers = #tpu.dot_dimension_numbers<[1], [0], [0], [1], [0, 0, 1, 1], [], []>} : vector<32x32xbf16>, vector<32x8xbf16>, vector<32x8xf32> -> vector<32x8xf32>
    %323 = vector.extract_strided_slice %259 {offsets = [0, 24], sizes = [32, 8], strides = [1, 1]} : vector<32x128xf32> to vector<32x8xf32>
    %324 = arith.truncf %323 : vector<32x8xf32> to vector<32x8xbf16>
    %325 = vector.extract_strided_slice %259 {offsets = [0, 56], sizes = [32, 8], strides = [1, 1]} : vector<32x128xf32> to vector<32x8xf32>
    %326 = arith.truncf %325 : vector<32x8xf32> to vector<32x8xbf16>
    %327 = vector.extract_strided_slice %259 {offsets = [0, 88], sizes = [32, 8], strides = [1, 1]} : vector<32x128xf32> to vector<32x8xf32>
    %328 = arith.truncf %327 : vector<32x8xf32> to vector<32x8xbf16>
    %cst_88 = arith.constant dense<0.000000e+00> : vector<32x32xf32>
    %329 = tpu.matmul %324, %326, %cst_88 {dimension_numbers = #tpu.dot_dimension_numbers<[1], [1], [0], [0], [0, 0, 1, 0], [], []>} : vector<32x8xbf16>, vector<32x8xbf16>, vector<32x32xf32> -> vector<32x32xf32>
    %330 = vector.broadcast %70 : vector<1x32xf32> to vector<32x32xf32>
    %331 = arith.addf %329, %330 : vector<32x32xf32>
    %cst_89 = arith.constant dense<0xFF800000> : vector<32xf32>
    %332 = vector.multi_reduction <maximumf>, %331, %cst_89 [1] : vector<32x32xf32> to vector<32xf32>
    %333 = vector.shape_cast %332 : vector<32xf32> to vector<32x1xf32>
    %334 = vector.broadcast %333 : vector<32x1xf32> to vector<32x32xf32>
    %335 = arith.subf %331, %334 : vector<32x32xf32>
    %336 = math.exp %335 : vector<32x32xf32>
    %cst_90 = arith.constant dense<0.000000e+00> : vector<32xf32>
    %337 = vector.multi_reduction <add>, %336, %cst_90 [1] : vector<32x32xf32> to vector<32xf32>
    %338 = vector.shape_cast %337 : vector<32xf32> to vector<32x1xf32>
    %339 = tpu.reciprocal %338 {approx = true} : vector<32x1xf32> -> vector<32x1xf32>
    %340 = vector.broadcast %339 : vector<32x1xf32> to vector<32x32xf32>
    %341 = arith.mulf %336, %340 : vector<32x32xf32>
    %342 = arith.truncf %341 : vector<32x32xf32> to vector<32x32xbf16>
    %cst_91 = arith.constant dense<0.000000e+00> : vector<32x8xf32>
    %343 = tpu.matmul %342, %328, %cst_91 {dimension_numbers = #tpu.dot_dimension_numbers<[1], [0], [0], [1], [0, 0, 1, 1], [], []>} : vector<32x32xbf16>, vector<32x8xbf16>, vector<32x8xf32> -> vector<32x8xf32>
    %344 = tpu.concatenate %280, %301, %322, %343 in 1 : vector<32x8xf32>, vector<32x8xf32>, vector<32x8xf32>, vector<32x8xf32> -> vector<32x32xf32>
    %345 = arith.truncf %344 : vector<32x32xf32> to vector<32x32xbf16>
    %c1_92 = arith.constant 1 : index
    %c0_93 = arith.constant 0 : index
    %c0_94 = arith.constant 0 : index
    %346 = vector.load %arg6[%c1_92, %c0_93, %c0_94] : memref<2x32x32xbf16, #tpu.memory_space<vmem>>, vector<1x32x32xbf16>
    %347 = vector.shape_cast %346 : vector<1x32x32xbf16> to vector<32x32xbf16>
    %cst_95 = arith.constant dense<0.000000e+00> : vector<32x32xf32>
    %348 = tpu.matmul %345, %347, %cst_95 {dimension_numbers = #tpu.dot_dimension_numbers<[1], [0], [0], [1], [0, 0, 1, 1], [], []>} : vector<32x32xbf16>, vector<32x32xbf16>, vector<32x32xf32> -> vector<32x32xf32>
    %349 = vector.broadcast %247 : vector<1x32xf32> to vector<32x32xf32>
    %350 = arith.addf %348, %349 : vector<32x32xf32>
    %351 = arith.addf %243, %350 : vector<32x32xf32>
    %cst_96 = arith.constant dense<0.000000e+00> : vector<32xf32>
    %352 = vector.multi_reduction <add>, %351, %cst_96 [1] : vector<32x32xf32> to vector<32xf32>
    %353 = vector.shape_cast %352 : vector<32xf32> to vector<32x1xf32>
    %cst_97 = arith.constant 3.200000e+01 : f32
    %354 = vector.broadcast %cst_97 : f32 to vector<32x1xf32>
    %355 = arith.divf %353, %354 : vector<32x1xf32>
    %356 = vector.broadcast %355 : vector<32x1xf32> to vector<32x32xf32>
    %357 = arith.subf %351, %356 : vector<32x32xf32>
    %358 = arith.mulf %357, %357 : vector<32x32xf32>
    %cst_98 = arith.constant dense<0.000000e+00> : vector<32xf32>
    %359 = vector.multi_reduction <add>, %358, %cst_98 [1] : vector<32x32xf32> to vector<32xf32>
    %360 = vector.shape_cast %359 : vector<32xf32> to vector<32x1xf32>
    %cst_99 = arith.constant 3.200000e+01 : f32
    %361 = vector.broadcast %cst_99 : f32 to vector<32x1xf32>
    %362 = arith.divf %360, %361 : vector<32x1xf32>
    %363 = vector.broadcast %355 : vector<32x1xf32> to vector<32x32xf32>
    %364 = arith.subf %351, %363 : vector<32x32xf32>
    %cst_100 = arith.constant 9.99999974E-6 : f32
    %365 = vector.broadcast %cst_100 : f32 to vector<32x1xf32>
    %366 = arith.addf %362, %365 : vector<32x1xf32>
    %367 = math.rsqrt %366 : vector<32x1xf32>
    %368 = vector.broadcast %367 : vector<32x1xf32> to vector<32x32xf32>
    %369 = arith.mulf %364, %368 : vector<32x32xf32>
    %370 = vector.broadcast %248 : vector<1x32xf32> to vector<32x32xf32>
    %371 = arith.mulf %369, %370 : vector<32x32xf32>
    %372 = vector.broadcast %249 : vector<1x32xf32> to vector<32x32xf32>
    %373 = arith.addf %371, %372 : vector<32x32xf32>
    %374 = arith.truncf %373 : vector<32x32xf32> to vector<32x32xbf16>
    %c1_101 = arith.constant 1 : index
    %c0_102 = arith.constant 0 : index
    %c0_103 = arith.constant 0 : index
    %375 = vector.load %arg7[%c1_101, %c0_102, %c0_103] : memref<2x32x128xbf16, #tpu.memory_space<vmem>>, vector<1x32x128xbf16>
    %376 = vector.shape_cast %375 : vector<1x32x128xbf16> to vector<32x128xbf16>
    %cst_104 = arith.constant dense<0.000000e+00> : vector<32x128xf32>
    %377 = tpu.matmul %374, %376, %cst_104 {dimension_numbers = #tpu.dot_dimension_numbers<[1], [0], [0], [1], [0, 0, 1, 1], [], []>} : vector<32x32xbf16>, vector<32x128xbf16>, vector<32x128xf32> -> vector<32x128xf32>
    %378 = vector.broadcast %250 : vector<1x128xf32> to vector<32x128xf32>
    %379 = arith.addf %377, %378 : vector<32x128xf32>
    %cst_105 = arith.constant 5.000000e-01 : f32
    %380 = vector.broadcast %cst_105 : f32 to vector<32x128xf32>
    %381 = arith.mulf %380, %379 : vector<32x128xf32>
    %cst_106 = arith.constant 0.707106769 : f32
    %382 = vector.broadcast %cst_106 : f32 to vector<32x128xf32>
    %383 = arith.mulf %379, %382 : vector<32x128xf32>
    %384 = math.erf %383 : vector<32x128xf32>
    %cst_107 = arith.constant 1.000000e+00 : f32
    %385 = vector.broadcast %cst_107 : f32 to vector<32x128xf32>
    %386 = arith.addf %385, %384 : vector<32x128xf32>
    %387 = arith.mulf %381, %386 : vector<32x128xf32>
    %388 = arith.truncf %387 : vector<32x128xf32> to vector<32x128xbf16>
    %c1_108 = arith.constant 1 : index
    %c0_109 = arith.constant 0 : index
    %c0_110 = arith.constant 0 : index
    %389 = vector.load %arg8[%c1_108, %c0_109, %c0_110] : memref<2x128x32xbf16, #tpu.memory_space<vmem>>, vector<1x128x32xbf16>
    %390 = vector.shape_cast %389 : vector<1x128x32xbf16> to vector<128x32xbf16>
    %cst_111 = arith.constant dense<0.000000e+00> : vector<32x32xf32>
    %391 = tpu.matmul %388, %390, %cst_111 {dimension_numbers = #tpu.dot_dimension_numbers<[1], [0], [0], [1], [0, 0, 1, 1], [], []>} : vector<32x128xbf16>, vector<128x32xbf16>, vector<32x32xf32> -> vector<32x32xf32>
    %392 = vector.broadcast %251 : vector<1x32xf32> to vector<32x32xf32>
    %393 = arith.addf %391, %392 : vector<32x32xf32>
    %394 = arith.addf %373, %393 : vector<32x32xf32>
    %cst_112 = arith.constant dense<0.000000e+00> : vector<32xf32>
    %395 = vector.multi_reduction <add>, %394, %cst_112 [1] : vector<32x32xf32> to vector<32xf32>
    %396 = vector.shape_cast %395 : vector<32xf32> to vector<32x1xf32>
    %cst_113 = arith.constant 3.200000e+01 : f32
    %397 = vector.broadcast %cst_113 : f32 to vector<32x1xf32>
    %398 = arith.divf %396, %397 : vector<32x1xf32>
    %399 = vector.broadcast %398 : vector<32x1xf32> to vector<32x32xf32>
    %400 = arith.subf %394, %399 : vector<32x32xf32>
    %401 = arith.mulf %400, %400 : vector<32x32xf32>
    %cst_114 = arith.constant dense<0.000000e+00> : vector<32xf32>
    %402 = vector.multi_reduction <add>, %401, %cst_114 [1] : vector<32x32xf32> to vector<32xf32>
    %403 = vector.shape_cast %402 : vector<32xf32> to vector<32x1xf32>
    %cst_115 = arith.constant 3.200000e+01 : f32
    %404 = vector.broadcast %cst_115 : f32 to vector<32x1xf32>
    %405 = arith.divf %403, %404 : vector<32x1xf32>
    %406 = vector.broadcast %398 : vector<32x1xf32> to vector<32x32xf32>
    %407 = arith.subf %394, %406 : vector<32x32xf32>
    %cst_116 = arith.constant 9.99999974E-6 : f32
    %408 = vector.broadcast %cst_116 : f32 to vector<32x1xf32>
    %409 = arith.addf %405, %408 : vector<32x1xf32>
    %410 = math.rsqrt %409 : vector<32x1xf32>
    %411 = vector.broadcast %410 : vector<32x1xf32> to vector<32x32xf32>
    %412 = arith.mulf %407, %411 : vector<32x32xf32>
    %413 = vector.broadcast %252 : vector<1x32xf32> to vector<32x32xf32>
    %414 = arith.mulf %412, %413 : vector<32x32xf32>
    %415 = vector.broadcast %253 : vector<1x32xf32> to vector<32x32xf32>
    %416 = arith.addf %414, %415 : vector<32x32xf32>
    %417 = vector.extract_strided_slice %416 {offsets = [0, 0], sizes = [1, 32], strides = [1, 1]} : vector<32x32xf32> to vector<1x32xf32>
    %cst_117 = arith.constant dense<0.000000e+00> : vector<1xf32>
    %418 = vector.multi_reduction <add>, %417, %cst_117 [1] : vector<1x32xf32> to vector<1xf32>
    %419 = vector.shape_cast %418 : vector<1xf32> to vector<1x1xf32>
    %cst_118 = arith.constant 3.200000e+01 : f32
    %420 = vector.broadcast %cst_118 : f32 to vector<1x1xf32>
    %421 = arith.divf %419, %420 : vector<1x1xf32>
    %422 = vector.broadcast %421 : vector<1x1xf32> to vector<1x32xf32>
    %423 = arith.subf %417, %422 : vector<1x32xf32>
    %424 = arith.mulf %423, %423 : vector<1x32xf32>
    %cst_119 = arith.constant dense<0.000000e+00> : vector<1xf32>
    %425 = vector.multi_reduction <add>, %424, %cst_119 [1] : vector<1x32xf32> to vector<1xf32>
    %426 = vector.shape_cast %425 : vector<1xf32> to vector<1x1xf32>
    %cst_120 = arith.constant 3.200000e+01 : f32
    %427 = vector.broadcast %cst_120 : f32 to vector<1x1xf32>
    %428 = arith.divf %426, %427 : vector<1x1xf32>
    %429 = vector.broadcast %421 : vector<1x1xf32> to vector<1x32xf32>
    %430 = arith.subf %417, %429 : vector<1x32xf32>
    %cst_121 = arith.constant 9.99999974E-6 : f32
    %431 = vector.broadcast %cst_121 : f32 to vector<1x1xf32>
    %432 = arith.addf %428, %431 : vector<1x1xf32>
    %433 = math.rsqrt %432 : vector<1x1xf32>
    %434 = vector.broadcast %433 : vector<1x1xf32> to vector<1x32xf32>
    %435 = arith.mulf %430, %434 : vector<1x32xf32>
    %436 = arith.mulf %435, %6 : vector<1x32xf32>
    %437 = arith.addf %436, %7 : vector<1x32xf32>
    %438 = arith.truncf %437 : vector<1x32xf32> to vector<1x32xbf16>
    %c0_122 = arith.constant 0 : index
    %c0_123 = arith.constant 0 : index
    %439 = vector.load %arg9[%c0_122, %c0_123] : memref<32x128xbf16, #tpu.memory_space<vmem>>, vector<32x128xbf16>
    %cst_124 = arith.constant dense<0.000000e+00> : vector<1x128xf32>
    %440 = tpu.matmul %438, %439, %cst_124 {dimension_numbers = #tpu.dot_dimension_numbers<[1], [0], [0], [1], [0, 0, 1, 1], [], []>} : vector<1x32xbf16>, vector<32x128xbf16>, vector<1x128xf32> -> vector<1x128xf32>
    %441 = arith.addf %440, %8 : vector<1x128xf32>
    %c0_125 = arith.constant 0 : index
    %c0_126 = arith.constant 0 : index
    %c0_127 = arith.constant 0 : index
    %442 = vector.load %arg11[%c0_125, %c0_126, %c0_127] : memref<1x1x128xf32, #tpu.memory_space<vmem>>, vector<1x1x128xf32>
    %443 = vector.shape_cast %442 : vector<1x1x128xf32> to vector<1x128xf32>
    %444 = vector.shape_cast %441 : vector<1x128xf32> to vector<1x1x128xf32>
    tpu.vector_store %arg11[%c0_125, %c0_126, %c0_127], %444 {strides = array<i32>} : memref<1x1x128xf32, #tpu.memory_space<vmem>>, vector<1x1x128xf32>,
    return
  }
  func.func @transform_0(%arg0: i32) -> (i32, i32, i32) {
    %c0_i32 = arith.constant 0 : i32
    %c0_i32_0 = arith.constant 0 : i32
    %c0_i32_1 = arith.constant 0 : i32
    return %arg0, %c0_i32, %c0_i32_0 : i32, i32, i32
  }
  func.func @transform_1(%arg0: i32) -> (i32, i32) {
    %c0_i32 = arith.constant 0 : i32
    %c0_i32_0 = arith.constant 0 : i32
    %c0_i32_1 = arith.constant 0 : i32
    return %c0_i32, %c0_i32_0 : i32, i32
  }
  func.func @transform_2(%arg0: i32) -> (i32, i32) {
    %c0_i32 = arith.constant 0 : i32
    %c0_i32_0 = arith.constant 0 : i32
    %c0_i32_1 = arith.constant 0 : i32
    return %c0_i32, %c0_i32_0 : i32, i32
  }
  func.func @transform_3(%arg0: i32) -> (i32, i32) {
    %c0_i32 = arith.constant 0 : i32
    %c0_i32_0 = arith.constant 0 : i32
    %c0_i32_1 = arith.constant 0 : i32
    return %c0_i32, %c0_i32_0 : i32, i32
  }
  func.func @transform_4(%arg0: i32) -> (i32, i32, i32) {
    %c0_i32 = arith.constant 0 : i32
    %c0_i32_0 = arith.constant 0 : i32
    %c0_i32_1 = arith.constant 0 : i32
    %c0_i32_2 = arith.constant 0 : i32
    return %c0_i32, %c0_i32_0, %c0_i32_1 : i32, i32, i32
  }
  func.func @transform_5(%arg0: i32) -> (i32, i32, i32) {
    %c0_i32 = arith.constant 0 : i32
    %c0_i32_0 = arith.constant 0 : i32
    %c0_i32_1 = arith.constant 0 : i32
    %c0_i32_2 = arith.constant 0 : i32
    return %c0_i32, %c0_i32_0, %c0_i32_1 : i32, i32, i32
  }
  func.func @transform_6(%arg0: i32) -> (i32, i32, i32) {
    %c0_i32 = arith.constant 0 : i32
    %c0_i32_0 = arith.constant 0 : i32
    %c0_i32_1 = arith.constant 0 : i32
    %c0_i32_2 = arith.constant 0 : i32
    return %c0_i32, %c0_i32_0, %c0_i32_1 : i32, i32, i32
  }
  func.func @transform_7(%arg0: i32) -> (i32, i32, i32) {
    %c0_i32 = arith.constant 0 : i32
    %c0_i32_0 = arith.constant 0 : i32
    %c0_i32_1 = arith.constant 0 : i32
    %c0_i32_2 = arith.constant 0 : i32
    return %c0_i32, %c0_i32_0, %c0_i32_1 : i32, i32, i32
  }
  func.func @transform_8(%arg0: i32) -> (i32, i32) {
    %c0_i32 = arith.constant 0 : i32
    %c0_i32_0 = arith.constant 0 : i32
    %c0_i32_1 = arith.constant 0 : i32
    return %c0_i32, %c0_i32_0 : i32, i32
  }
  func.func @transform_9(%arg0: i32) -> (i32, i32, i32) {
    %c0_i32 = arith.constant 0 : i32
    %c0_i32_0 = arith.constant 0 : i32
    %c0_i32_1 = arith.constant 0 : i32
    %c0_i32_2 = arith.constant 0 : i32
    return %c0_i32, %c0_i32_0, %c0_i32_1 : i32, i32, i32
  }
  func.func @transform_10(%arg0: i32) -> (i32, i32, i32) {
    %c0_i32 = arith.constant 0 : i32
    %c0_i32_0 = arith.constant 0 : i32
    %c0_i32_1 = arith.constant 0 : i32
    return %arg0, %c0_i32, %c0_i32_0 : i32, i32, i32
  }
}

</mosaic_0001>

<bundles_post_ra>
// kernel: simple_vit_forward.1
= control target key start
LH: loop header
LB: loop body
LE: loop exit
PB: predicated region body
PF: predicated region fallthrough
CT: control target
= control target key end

     0   :  { %15 = vsyncpa [#allocation3], 0  ;;  %s4949_s0 = inlined_call_operand.vmem [shape: f32[2,16,64], index: 0, kind: input, shape index: {}]   ;;  %s4950_s1 = inlined_call_operand.vmem [shape: f32[32,32], index: 1, kind: input, shape index: {}]   ;;  %s4951_s2 = inlined_call_operand.vmem [shape: f32[8,128], index: 2, kind: input, shape index: {}]   ;;  %s4952_s3 = inlined_call_operand.vmem [shape: bf16[64,32], index: 3, kind: input, shape index: {}]   ;;  %s4953_s4 = inlined_call_operand.vmem [shape: bf16[2,32,128], index: 4, kind: input, shape index: {}]   ;;  %s4954_s5 = inlined_call_operand.vmem [shape: bf16[2,32,32], index: 5, kind: input, shape index: {}]   ;;  %s4955_s6 = inlined_call_operand.vmem [shape: bf16[2,32,128], index: 6, kind: input, shape index: {}]   ;;  %s4956_s7 = inlined_call_operand.vmem [shape: bf16[2,128,32], index: 7, kind: input, shape index: {}]   ;;  %s4957_s8 = inlined_call_operand.vmem [shape: bf16[32,128], index: 8, kind: input, shape index: {}]   ;;  %s4958_s9 = inlined_call_operand.vmem [shape: f32[2,8,128], index: 9, kind: input, shape index: {}]   ;;  %s4959_s10 = inlined_call_operand.hbm [shape: f32[2,1,128], index: 10, kind: output, shape index: {}]  }
   0x1   :  { %17 = vsyncpa [#allocation3 + $0x1], 0  ;;  %s4167_s13 = smov 0   ;;  %s4169_s14 = smov 0  }
   0x2   :  { %s4171_s15 = smov 0   ;;  %s4173_s16 = smov 0  }
   0x3 LB: > { %s4188_s17 = sadd.s32 4294967295, %s4092_s16   ;;  %s3212_s18 = sadd.s32 4294967294, %s4092_s16   ;;  %s4092_s16 = sphi %s4173_s16, %s4998_s16   ;;  %s4088_s15 = sphi %s4171_s15, %s4997_s15   ;;  %s4084_s14 = sphi %s4169_s14, %s4996_s14   ;;  %s4080_s13 = sphi %s4167_s13, %s4995_s13  }
   0x4   : > { %s4192_s19 = sadd.s32 1, %s4092_s16   ;;  %s245_s20 = sadd.s32 1, %s4088_s15 }
   0x5   : > { %s242_s21 = ssub.s32 %s4092_s16, %s4192_s19  ;;  %p255_p0 = scmp.ne.s32.totalorder %s4088_s15, %s4084_s14 }
   0x6   : > { %p243_p1 = scmp.eq.s32.totalorder %s242_s21, 0  ;;  %p256_p2 = scmp.eq.s32.totalorder %s4188_s17, 1 }
   0x7   : > { %p261_p3 = scmp.ne.s32.totalorder %s4084_s14, %s4080_s13  ;;  %p262_p4 = scmp.eq.s32.totalorder %s3212_s18, 1 }
   0x8   : > { %s4203_s22 = scalar_select %p243_p1, %s4088_s15, %s245_s20  }
   0x9   : > { %p4205_p5 = por %p256_p2, %p255_p0  ;;  %p4209_p6 = por %p262_p4, %p261_p3 }
   0xa   : > { %p3215_p7 = scmp.ge.s32.totalorder %s4092_s16, 1  ;;  %p315_p8 = scmp.lt.s32.totalorder %s4092_s16, 3 }
   0xc   : > { %p316_p9 = pnand %p3215_p7, %p315_p8 }
   0xd   : > { %p352_p10 = scmp.lt.s32.totalorder (!%p316_p9), %s4188_s17, 1  ;;  %s4096_s12 = smov (!%p316_p9), 96  }
   0xe   : > { %319 = sbr.rel (%p316_p9) target bundleno = 8995 (0x2323), region = 60  ;;  %s4980_s18 = smov (!%p316_p9), 64  }
   0xf   : > { %s4099_s20 = smov (!%p316_p9), 88   ;;  %s4100_s21 = smov (!%p316_p9), 120  }
  0x10   : > { %s4972_s27 = smov (!%p316_p9), 112   ;;  %s4970_s28 = smov (!%p316_p9), 48  }
  0x11   : > { %s4960_s30 = smov (!%p316_p9), 104   ;;  %s4968_s11 = smov (!%p316_p9), 40  }
  0x13   : > { %s353_s25 = scalar_select %p352_p10, %s4188_s17, 1  ;;  %vm361_vm0 = vcmask 523264   ;;  %v3815_v14 = vld [vmem:[%s4952_s3 + $0x18] sm:$0xff]   ;;  %v4094_v15 = vmov 0.0   ;;  %vm4095_vm1 = vmmov 0   ;;  %v3816_v16 = vld [vmem:[%s4952_s3 + $0x10] sm:$0xff]   ;;  %v389_v25 = vlaneseq }
  0x14   : > { %3447 = vmatprep.subr.bf16.mxu1 %v4094_v15  ;;  %3455 = vmatprep.mubr.msk.bf16.mxu1 %vm4095_vm1, %v4094_v15  ;;  %v3817_v17 = vld [vmem:[%s4952_s3 + $0x8] sm:$0xff]   ;;  %v3818_v18 = vld [vmem:[%s4952_s3] sm:$0xff]   ;;  %vm482_vm2 = vcmask 261120   ;;  %vm528_vm3 = vcmask 1040384   ;;  %vm631_vm4 = vcmask 64512   ;;  %vm1380_vm6 = vcmask 130048  }
  0x15   : > { %s3330_s26 = sshll.u32 %s353_s25, 4  ;;  %3448 = vmatpush3.bf16.msra.mxu1 %v3815_v14  ;;  %v4243_v26 = vshrl.u32 %v389_v25, 7  ;;  %v358_v28 = vld [vmem:[%s4951_s2] sm:$0xff]  ;;  %v3819_v61 = vld [vmem:[%s4953_s4 + $0x8] sm:$0xff]   ;;  %s4978_s25 = smov 56   ;;  %vm1385_vm7 = vcmask 195584  }
  0x16   : > { %s356_s29 = scalar_lea.vmem %s4949_s0, %s3330_s26  ;;  %3449 = vmatprep.subr.bf16.mxu1 %v4094_v15  ;;  %v3820_v62 = vld [vmem:[%s4953_s4] sm:$0xff]   ;;  %s4976_s26 = smov 80   ;;  %vm3060_vm8 = vcmask 253952  }
  0x17   : > { %v359_v0 = vld [vmem:[%s356_s29] sm:$0xff]  ;;  %v360_v1 = vld [vmem:[%s356_s29 + $0x8] sm:$0xff]  ;;  %v4246_v27 = vsub.s32 0, %v4243_v26  ;;  %v4253_v32 = vsub.s32 1, %v4243_v26  ;;  %v4258_v41 = vsub.s32 2, %v4243_v26  ;;  %s4962_s29 = smov 72  }
  0x18   : > { %v362_v2 = vsel %vm361_vm0, %v359_v0, 0.0  ;;  %v365_v3 = vsel %vm361_vm0, %v360_v1, 0.0 }
  0x19   : > { %363 = vadd.xlane.f32.xlu0 %v362_v2  ;;  %3450 = vmatpush3.bf16.msra.mxu1 %v3816_v16  ;;  %v392_v31 = vrot.slane %v358_v28, %v4246_v27  ;;  %v398_v36 = vrot.slane %v358_v28, %v4253_v32  ;;  %v413_v42 = vrot.slane %v358_v28, %v4258_v41 }
  0x1a   : > { %3451 = vmatprep.subr.bf16.mxu1 %v4094_v15 }
  0x1d   : > { %366 = vadd.xlane.f32.xlu0 %v365_v3  ;;  %3452 = vmatpush3.bf16.msra.mxu1 %v3817_v17 }
  0x1e   : > { %3453 = vmatprep.subr.bf16.mxu1 %v4094_v15 }
  0x21   : > { %3454 = vmatpush3.bf16.msra.mxu1 %v3818_v18 }
  0x22   : > { %3459 = vmatprep.subr.bf16.mxu1 %v3819_v61 }
  0xa2   : > { %v364_v4 = vpop.xlane.xlu0 %363 }
  0xa3   : > { %v369_v5 = vmul.f32 0.015625, %v364_v4 }
  0xa5   : > { %v371_v6 = vsub.f32 %v359_v0, %v369_v5  ;;  %v4272_v5 = vsub.s32 3, %v4243_v26 }
  0xa6   : > { %v367_v7 = vpop.xlane.xlu0 %366 }
  0xa7   : > { %v370_v8 = vmul.f32 0.015625, %v367_v7  ;;  %v373_v9 = vmul.f32 %v371_v6, %v371_v6  ;;  %v513_v7 = vrot.slane %v358_v28, %v4272_v5 }
  0xa9   : > { %v372_v10 = vsub.f32 %v360_v1, %v370_v8  ;;  %v375_v11 = vsel %vm361_vm0, %v373_v9, 0.0 }
  0xaa   : > { %376 = vadd.xlane.f32.xlu1 %v375_v11 }
  0xab   : > { %v374_v12 = vmul.f32 %v372_v10, %v372_v10 }
  0xad   : > { %v378_v13 = vsel %vm361_vm0, %v374_v12, 0.0 }
  0xae   : > { %379 = vadd.xlane.f32.xlu1 %v378_v13 }
 0x133   : > { %v377_v19 = vpop.xlane.xlu1 %376 }
 0x134   : > { %v381_v20 = vmul.f32 0.015625, %v377_v19  ;;  %v522_v19 = vld [vmem:[%s4950_s1] sm:$0xff] }
 0x136   : > { %v383_v21 = vadd.f32 1e-05, %v381_v20  ;;  %v523_v20 = vld [vmem:[%s4950_s1 + $0x8] sm:$0xff] }
 0x137   : > { %v380_v22 = vpop.xlane.xlu1 %379 }
 0x138   : > { %3849 = vrsqrt.f32 %v383_v21  ;;  %v382_v23 = vmul.f32 0.015625, %v380_v22 }
 0x13a   : > { %v384_v24 = vadd.f32 1e-05, %v382_v23  ;;  %v524_v23 = vld [vmem:[%s4950_s1 + $0x10] sm:$0xff] }
 0x13c   : > { %3851 = vrsqrt.f32 %v384_v24 }
 0x145   : > { %v3850_v29 = vpop.eup %3849 }
 0x146   : > { %v387_v30 = vmul.f32 %v3850_v29, %v371_v6  ;;  %v4275_v6 = vsub.s32 4, %v4243_v26 }
 0x148   : > { %v393_v35 = vmul.f32 %v392_v31, %v387_v30 }
 0x149   : > { %v3852_v33 = vpop.eup %3851 }
 0x14a   : > { %v388_v34 = vmul.f32 %v3852_v33, %v372_v10  ;;  %v399_v38 = vadd.f32 %v398_v36, %v393_v35  ;;  %v519_v10 = vrot.slane %v358_v28, %v4275_v6  ;;  %v4291_v28 = vld [vmem:[%s4950_s1 + $0x18] sm:$0xff] }
 0x14c   : > { %v394_v37 = vmul.f32 %v392_v31, %v388_v34 }
 0x14e   : > { %v400_v39 = vadd.f32 %v398_v36, %v394_v37  ;;  %v4308_v36 = vld [vmem:[%s4958_s9] sm:$0xff] }
 0x150   : > { %v401_v40 = vpack.c.bf16 %v400_v39, %v399_v38  ;;  %v555_v38 = vrot.slane %v4308_v36, %v4246_v27 }
 0x152   : > { %3456 = vmatmul.mubr.msk.bf16.vlgmr.msra.gmra.mxu1 %vm361_vm0, %v401_v40 }
 0x153   : > { %3460 = vmatpush3.bf16.msra.mxu1 %v3819_v61 }
 0x154   : > { %3461 = vmatprep.subr.bf16.mxu1 %v3820_v62 }
 0x157   : > { %3462 = vmatpush3.bf16.msra.mxu1 %v3820_v62 }
 0x212   : > { %v475_v43 = vpop.f32.mrf.mxu1 }
 0x213   : > { %v476_v44 = vadd.f32 %v475_v43, %v413_v42 }
 0x214   : > { %v3457_v45 = vpop.f32.mrf.mxu1 }
 0x215   : > { %v483_v46 = vsel %vm482_vm2, %v476_v44, 0.0 }
 0x216   : > { %484 = vadd.xlane.f32.xlu0 %v483_v46  ;;  %v478_v47 = vpop.f32.mrf.mxu1 }
 0x217   : > { %v479_v48 = vadd.f32 %v478_v47, %v413_v42 }
 0x218   : > { %v3458_v49 = vpop.f32.mrf.mxu1 }
 0x219   : > { %v486_v50 = vsel %vm482_vm2, %v479_v48, 0.0 }
 0x21a   : > { %487 = vadd.xlane.f32.xlu1 %v486_v50 }
 0x29f   : > { %v485_v51 = vpop.xlane.xlu0 %484 }
 0x2a0   : > { %v490_v52 = vmul.f32 0.03125, %v485_v51 }
 0x2a2   : > { %v492_v53 = vsub.f32 %v476_v44, %v490_v52 }
 0x2a3   : > { %v488_v54 = vpop.xlane.xlu1 %487 }
 0x2a4   : > { %v491_v55 = vmul.f32 0.03125, %v488_v54  ;;  %v494_v56 = vmul.f32 %v492_v53, %v492_v53 }
 0x2a6   : > { %v493_v57 = vsub.f32 %v479_v48, %v491_v55  ;;  %v496_v58 = vsel %vm482_vm2, %v494_v56, 0.0  ;;  %v4097_v55 = vmov -1e+30  }
 0x2a7   : > { %497 = vadd.xlane.f32.xlu0 %v496_v58 }
 0x2a8   : > { %v495_v59 = vmul.f32 %v493_v57, %v493_v57 }
 0x2aa   : > { %v499_v60 = vsel %vm482_vm2, %v495_v59, 0.0 }
 0x2ab   : > { %500 = vadd.xlane.f32.xlu1 %v499_v60 }
 0x330   : > { %v498_v63 = vpop.xlane.xlu0 %497 }
 0x331   : > { %v502_v0 = vmul.f32 0.03125, %v498_v63 }
 0x333   : > { %v504_v1 = vadd.f32 1e-05, %v502_v0 }
 0x334   : > { %v501_v2 = vpop.xlane.xlu1 %500 }
 0x335   : > { %3853 = vrsqrt.f32 %v504_v1  ;;  %v503_v3 = vmul.f32 0.03125, %v501_v2 }
 0x337   : > { %v505_v4 = vadd.f32 1e-05, %v503_v3 }
 0x339   : > { %3855 = vrsqrt.f32 %v505_v4 }
 0x342   : > { %v3854_v8 = vpop.eup %3853 }
 0x343   : > { %v508_v9 = vmul.f32 %v3854_v8, %v492_v53  ;;  %v542_v53 = vand.u32 127, %v389_v25 }
 0x345   : > { %v514_v11 = vmul.f32 %v513_v7, %v508_v9  ;;  %vm543_vm5 = vcmp.lt.s32.totalorder %v542_v53, 17 }
 0x346   : > { %v3856_v12 = vpop.eup %3855  ;;  %v4329_v56 = vsel %vm543_vm5, 0.0, %v4097_v55 }
 0x347   : > { %v509_v13 = vmul.f32 %v3856_v12, %v493_v57  ;;  %v520_v14 = vadd.f32 %v519_v10, %v514_v11 }
 0x349   : > { %v515_v16 = vmul.f32 %v513_v7, %v509_v13  ;;  %v529_v17 = vrot.slane %v520_v14, 7 }
 0x34b   : > { %v521_v18 = vadd.f32 %v519_v10, %v515_v16  ;;  %v535_v22 = vsel %vm528_vm3, 0.0, %v529_v17 }
 0x34c   : > { %v4293_v30 = vadd.f32 %v535_v22, %v522_v19 }
 0x34d   : > { %v530_v21 = vrot.slane %v521_v18, 7 }
 0x34f   : > { %v531_v24 = vsel %vm528_vm3, %v529_v17, %v530_v21  ;;  %v536_v29 = vsel %vm528_vm3, %v530_v21, 0.0 }
 0x350   : > { %v4295_v31 = vadd.f32 %v531_v24, %v523_v20  ;;  %v4297_v33 = vadd.f32 %v536_v29, %v524_v23 }
 0x352   : > { %v546_v34 = vpack.c.bf16 %v4295_v31, %v4293_v30  ;;  %v547_v35 = vpack.c.bf16 %v4291_v28, %v4297_v33 }
 0x354   : > { %3463 = vmatprep.mubr.msk.bf16.mxu1 %vm482_vm2, %v546_v34 }
 0x355   : > { %3464 = vmatmul.mubr.msk.bf16.vlgmr.msra.gmra.mxu1 %vm482_vm2, %v547_v35 }
 0x415   : > { %v3465_v37 = vpop.f32.mrf.mxu1 }
 0x416   : > { %v617_v42 = vadd.f32 %v3465_v37, %v555_v38 }
 0x417   : > { %v608_v39 = vpop.f32.mrf.mxu1 }
 0x418   : > { %v609_v45 = vadd.f32 %v608_v39, %v555_v38 }
 0x419   : > { %v3466_v40 = vpop.f32.mrf.mxu1 }
 0x41a   : > { %v620_v43 = vadd.f32 %v3466_v40, %v555_v38 }
 0x41b   : > { %v611_v44 = vpop.f32.mrf.mxu1 }
 0x41c   : > { %v4312_v46 = vpack.c.bf16 %v620_v43, %v617_v42  ;;  %v612_v47 = vadd.f32 %v611_v44, %v555_v38 }
 0x41e   : > { %v4314_v48 = vpack.c.bf16 %v612_v47, %v609_v45  ;;  %629 = vrot.lane.b32.xlu0 %v4312_v46, %s4096_s12 }
 0x420   : > { %627 = vrot.lane.b32.xlu1 %v4314_v48, %s4096_s12  ;;  %3471 = vmatprep.mubr.msk.bf16.mxu1 %vm631_vm4, %v4314_v48 }
 0x490   : > { %v630_v49 = vpop.permute.xlu0 %629 }
 0x491   : > { %3683 = vmatprep.subr.msk.bf16.mxu1 %vm631_vm4, %v630_v49  ;;  %v642_v50 = vsel %vm631_vm4, %v630_v49, 0 }
 0x492   : > { %3468 = vmatpush3.bf16.xpose.msra.mxu1 %v642_v50  ;;  %v628_v51 = vpop.permute.xlu1 %627 }
 0x493   : > { %3684 = vmatprep.subr.msk.bf16.mxu1 %vm631_vm4, %v628_v51  ;;  %v639_v52 = vsel %vm631_vm4, %v628_v51, 0 }
 0x49a   : > { %3470 = vmatpush3.bf16.xpose.msra.mxu1 %v639_v52 }
 0x4a1   : > { %3472 = vmatmul.mubr.msk.bf16.vlgmr.msra.gmra.mxu1 %vm631_vm4, %v4312_v46 }
 0x561   : > { %v3473_v54 = vpop.f32.mrf.mxu1 }
 0x562   : > { %v687_v0 = vadd.f32 %v3473_v54, %v4329_v56 }
 0x563   : > { %v678_v57 = vpop.f32.mrf.mxu1 }
 0x564   : > { %v679_v58 = vadd.f32 %v678_v57, %v4329_v56  ;;  %v699_v2 = vsel %vm482_vm2, %v687_v0, -inf }
 0x565   : > { %v3474_v59 = vpop.f32.mrf.mxu1 }
 0x566   : > { %v690_v60 = vadd.f32 %v3474_v59, %v4329_v56  ;;  %v693_v61 = vsel %vm482_vm2, %v679_v58, -inf }
 0x567   : > { %v681_v62 = vpop.f32.mrf.mxu1  ;;  %694 = vmax.xlane.f32.xlu1 %v693_v61 }
 0x568   : > { %v682_v63 = vadd.f32 %v681_v62, %v4329_v56  ;;  %v702_v1 = vsel %vm482_vm2, %v690_v60, -inf }
 0x56a   : > { %v696_v25 = vsel %vm482_vm2, %v682_v63, -inf }
 0x56b   : > { %697 = vmax.xlane.f32.xlu0 %v696_v25  ;;  %703 = vmax.xlane.f32.xlu1 %v702_v1 }
 0x56f   : > { %700 = vmax.xlane.f32.xlu0 %v699_v2 }
 0x57c   : > { %739 = vrot.lane.b32.xlu1 %v4314_v48, %s4980_s18 }
 0x5f0   : > { %v695_v3 = vpop.xlane.xlu1 %694 }
 0x5f1   : > { %v705_v10 = vsub.f32 %v679_v58, %v695_v3 }
 0x5f3   : > { %v709_v16 = vmul.f32 1.442695, %v705_v10 }
 0x5f4   : > { %v698_v4 = vpop.xlane.xlu0 %697  ;;  %v704_v7 = vpop.xlane.xlu1 %703 }
 0x5f5   : > { %v706_v8 = vsub.f32 %v682_v63, %v698_v4  ;;  %v708_v9 = vsub.f32 %v690_v60, %v704_v7 }
 0x5f7   : > { %v715_v11 = vmul.f32 1.442695, %v708_v9  ;;  %v711_v12 = vmul.f32 1.442695, %v706_v8 }
 0x5f8   : > { %v701_v13 = vpop.xlane.xlu0 %700  ;;  %v740_v34 = vpop.permute.xlu1 %739 }
 0x5f9   : > { %v707_v14 = vsub.f32 %v687_v0, %v701_v13  ;;  %3857 = vpow2.f32 %v715_v11 }
 0x5fa   : > { %3859 = vpow2.f32 %v711_v12 }
 0x5fb   : > { %v713_v17 = vmul.f32 1.442695, %v707_v14 }
 0x5fd   : > { %3861 = vpow2.f32 %v713_v17 }
 0x5fe   : > { %3863 = vpow2.f32 %v709_v16 }
 0x606   : > { %v3858_v18 = vpop.eup %3857 }
 0x607   : > { %v726_v19 = vsel %vm482_vm2, %v3858_v18, 0.0  ;;  %v3860_v20 = vpop.eup %3859 }
 0x608   : > { %727 = vadd.xlane.f32.xlu1 %v726_v19  ;;  %v720_v24 = vsel %vm482_vm2, %v3860_v20, 0.0 }
 0x60a   : > { %v3862_v21 = vpop.eup %3861 }
 0x60b   : > { %v723_v22 = vsel %vm482_vm2, %v3862_v21, 0.0  ;;  %v3864_v23 = vpop.eup %3863 }
 0x60c   : > { %724 = vadd.xlane.f32.xlu0 %v723_v22  ;;  %721 = vadd.xlane.f32.xlu1 %v720_v24  ;;  %v717_v29 = vsel %vm482_vm2, %v3864_v23, 0.0 }
 0x610   : > { %718 = vadd.xlane.f32.xlu0 %v717_v29 }
 0x61d   : > { %806 = vrot.lane.b32.xlu1 %v4312_v46, %s4099_s20 }
 0x621   : > { %804 = vrot.lane.b32.xlu1 %v4314_v48, %s4099_s20 }
 0x625   : > { %802 = vrot.lane.b32.xlu1 %v4312_v46, %s4100_s21 }
 0x626   : > { %741 = vrot.lane.b32.xlu0 %v4312_v46, %s4980_s18  ;;  %s4987_s18 = smov 112  }
 0x62a   : > { %800 = vrot.lane.b32.xlu0 %v4314_v48, %s4100_s21 }
 0x691   : > { %v728_v35 = vpop.xlane.xlu1 %727 }
 0x695   : > { %v725_v37 = vpop.xlane.xlu0 %724  ;;  %v722_v38 = vpop.xlane.xlu1 %721 }
 0x696   : > { %3865 = vrcp.f32 %v725_v37 }
 0x697   : > { %3867 = vrcp.f32 %v722_v38 }
 0x698   : > { %3869 = vrcp.f32 %v728_v35 }
 0x699   : > { %v719_v39 = vpop.xlane.xlu0 %718  ;;  %v807_v42 = vpop.permute.xlu1 %806 }
 0x69a   : > { %3871 = vrcp.f32 %v719_v39  ;;  %v818_v57 = vsel %vm631_vm4, %v807_v42, 0 }
 0x69d   : > { %v742_v40 = vpop.permute.xlu0 %741  ;;  %v805_v58 = vpop.permute.xlu1 %804 }
 0x69e   : > { %3475 = vmatprep.subr.bf16.mxu0 %v742_v40  ;;  %v815_v59 = vsel %vm631_vm4, %v805_v58, 0 }
 0x69f   : > { %3476 = vmatpush3.bf16.msra.mxu0 %v742_v40 }
 0x6a0   : > { %3477 = vmatprep.subr.bf16.mxu0 %v740_v34 }
 0x6a1   : > { %v801_v55 = vpop.permute.xlu0 %800  ;;  %v803_v60 = vpop.permute.xlu1 %802 }
 0x6a3   : > { %3478 = vmatpush3.bf16.msra.mxu0 %v740_v34  ;;  %v3866_v43 = vpop.eup %3865 }
 0x6a4   : > { %3685 = vmatprep.subr.msk.bf16.mxu0 %vm631_vm4, %v807_v42  ;;  %v3868_v44 = vpop.eup %3867  ;;  %v735_v49 = vmul.f32 %v3866_v43, %v3862_v21 }
 0x6a5   : > { %v3870_v45 = vpop.eup %3869  ;;  %v734_v51 = vmul.f32 %v3868_v44, %v3860_v20 }
 0x6a6   : > { %v736_v52 = vmul.f32 %v3870_v45, %v3858_v18 }
 0x6a7   : > { %v3872_v47 = vpop.eup %3871 }
 0x6a8   : > { %v733_v50 = vmul.f32 %v3872_v47, %v3864_v23  ;;  %v738_v54 = vpack.c.bf16 %v736_v52, %v735_v49 }
 0x6aa   : > { %v737_v53 = vpack.c.bf16 %v734_v51, %v733_v50 }
 0x6ac   : > { %3479 = vmatprep.mubr.msk.bf16.mxu0 %vm482_vm2, %v737_v53 }
 0x6ad   : > { %3480 = vmatmul.mubr.msk.bf16.vlgmr.msra.gmra.mxu0 %vm482_vm2, %v738_v54 }
 0x6ae   : > { %3484 = vmatpush3.bf16.xpose.msra.mxu0 %v818_v57  ;;  %3487 = vmatprep.mubr.msk.bf16.mxu0 %vm631_vm4, %v801_v55 }
 0x6af   : > { %3686 = vmatprep.subr.msk.bf16.mxu0 %vm631_vm4, %v805_v58 }
 0x6b6   : > { %3486 = vmatpush3.bf16.xpose.msra.mxu0 %v815_v59 }
 0x6bd   : > { %3488 = vmatmul.mubr.msk.bf16.vlgmr.msra.gmra.mxu0 %vm631_vm4, %v803_v60 }
 0x76d   : > { %v4363_v61 = vpop.f32.mrf.mxu0 }
 0x76f   : > { %v4365_v62 = vpop.f32.mrf.mxu0 }
 0x771   : > { %v4367_v63 = vpop.f32.mrf.mxu0 }
 0x773   : > { %v4369_v0 = vpop.f32.mrf.mxu0 }
 0x77d   : > { %v3489_v25 = vpop.f32.mrf.mxu0 }
 0x77e   : > { %v863_v4 = vadd.f32 %v3489_v25, %v4329_v56 }
 0x77f   : > { %v854_v1 = vpop.f32.mrf.mxu0 }
 0x780   : > { %v855_v2 = vadd.f32 %v854_v1, %v4329_v56  ;;  %v875_v12 = vsel %vm482_vm2, %v863_v4, -inf }
 0x781   : > { %v3490_v3 = vpop.f32.mrf.mxu0 }
 0x782   : > { %v869_v7 = vsel %vm482_vm2, %v855_v2, -inf  ;;  %v866_v10 = vadd.f32 %v3490_v3, %v4329_v56 }
 0x783   : > { %v857_v8 = vpop.f32.mrf.mxu0  ;;  %870 = vmax.xlane.f32.xlu0 %v869_v7 }
 0x784   : > { %v858_v9 = vadd.f32 %v857_v8, %v4329_v56  ;;  %v878_v13 = vsel %vm482_vm2, %v866_v10, -inf }
 0x786   : > { %v872_v11 = vsel %vm482_vm2, %v858_v9, -inf }
 0x787   : > { %873 = vmax.xlane.f32.xlu1 %v872_v11  ;;  %876 = vmax.xlane.f32.xlu0 %v875_v12 }
 0x78b   : > { %879 = vmax.xlane.f32.xlu0 %v878_v13 }
 0x798   : > { %915 = vrot.lane.b32.xlu1 %v4314_v48, %s4978_s25 }
 0x80c   : > { %v871_v14 = vpop.xlane.xlu0 %870 }
 0x80d   : > { %v881_v16 = vsub.f32 %v855_v2, %v871_v14 }
 0x80f   : > { %v885_v22 = vmul.f32 1.442695, %v881_v16 }
 0x810   : > { %v874_v17 = vpop.xlane.xlu1 %873  ;;  %v877_v18 = vpop.xlane.xlu0 %876 }
 0x811   : > { %v883_v19 = vsub.f32 %v863_v4, %v877_v18  ;;  %v882_v20 = vsub.f32 %v858_v9, %v874_v17 }
 0x813   : > { %v889_v21 = vmul.f32 1.442695, %v883_v19  ;;  %v887_v29 = vmul.f32 1.442695, %v882_v20 }
 0x814   : > { %v880_v23 = vpop.xlane.xlu0 %879  ;;  %v916_v45 = vpop.permute.xlu1 %915 }
 0x815   : > { %v884_v24 = vsub.f32 %v866_v10, %v880_v23  ;;  %3873 = vpow2.f32 %v889_v21 }
 0x816   : > { %3875 = vpow2.f32 %v885_v22 }
 0x817   : > { %v891_v34 = vmul.f32 1.442695, %v884_v24 }
 0x819   : > { %3877 = vpow2.f32 %v891_v34 }
 0x81a   : > { %3879 = vpow2.f32 %v887_v29 }
 0x822   : > { %v3874_v35 = vpop.eup %3873 }
 0x823   : > { %v899_v37 = vsel %vm482_vm2, %v3874_v35, 0.0  ;;  %v3876_v38 = vpop.eup %3875 }
 0x824   : > { %900 = vadd.xlane.f32.xlu0 %v899_v37  ;;  %v893_v43 = vsel %vm482_vm2, %v3876_v38, 0.0 }
 0x826   : > { %v3878_v39 = vpop.eup %3877 }
 0x827   : > { %v902_v40 = vsel %vm482_vm2, %v3878_v39, 0.0  ;;  %v3880_v42 = vpop.eup %3879 }
 0x828   : > { %903 = vadd.xlane.f32.xlu1 %v902_v40  ;;  %894 = vadd.xlane.f32.xlu0 %v893_v43  ;;  %v896_v44 = vsel %vm482_vm2, %v3880_v42, 0.0 }
 0x82c   : > { %897 = vadd.xlane.f32.xlu1 %v896_v44 }
 0x83d   : > { %982 = vrot.lane.b32.xlu1 %v4312_v46, %s4976_s26 }
 0x83e   : > { %917 = vrot.lane.b32.xlu0 %v4312_v46, %s4978_s25  ;;  %s4988_s25 = smov 48  }
 0x841   : > { %980 = vrot.lane.b32.xlu1 %v4314_v48, %s4976_s26  ;;  %s4993_s26 = smov 16  }
 0x842   : > { %976 = vrot.lane.b32.xlu0 %v4314_v48, %s4972_s27 }
 0x845   : > { %978 = vrot.lane.b32.xlu1 %v4312_v46, %s4972_s27  ;;  %s4974_s27 = smov 24  }
 0x8ad   : > { %v901_v47 = vpop.xlane.xlu0 %900 }
 0x8b1   : > { %v904_v49 = vpop.xlane.xlu1 %903  ;;  %v895_v50 = vpop.xlane.xlu0 %894 }
 0x8b2   : > { %3881 = vrcp.f32 %v904_v49 }
 0x8b3   : > { %3883 = vrcp.f32 %v895_v50 }
 0x8b4   : > { %3885 = vrcp.f32 %v901_v47 }
 0x8b5   : > { %v898_v51 = vpop.xlane.xlu1 %897  ;;  %v918_v52 = vpop.permute.xlu0 %917 }
 0x8b6   : > { %3887 = vrcp.f32 %v898_v51  ;;  %3491 = vmatprep.subr.bf16.mxu1 %v918_v52 }
 0x8b7   : > { %3492 = vmatpush3.bf16.msra.mxu1 %v918_v52 }
 0x8b8   : > { %3493 = vmatprep.subr.bf16.mxu1 %v916_v45 }
 0x8b9   : > { %v983_v53 = vpop.permute.xlu1 %982  ;;  %v977_v4 = vpop.permute.xlu0 %976 }
 0x8ba   : > { %v994_v7 = vsel %vm631_vm4, %v983_v53, 0 }
 0x8bb   : > { %3494 = vmatpush3.bf16.msra.mxu1 %v916_v45 }
 0x8bc   : > { %3687 = vmatprep.subr.msk.bf16.mxu1 %vm631_vm4, %v983_v53 }
 0x8bd   : > { %v981_v8 = vpop.permute.xlu1 %980 }
 0x8be   : > { %v991_v9 = vsel %vm631_vm4, %v981_v8, 0 }
 0x8bf   : > { %v3882_v54 = vpop.eup %3881 }
 0x8c0   : > { %v3884_v55 = vpop.eup %3883  ;;  %v912_v59 = vmul.f32 %v3882_v54, %v3878_v39 }
 0x8c1   : > { %v3886_v57 = vpop.eup %3885  ;;  %v909_v60 = vmul.f32 %v3884_v55, %v3876_v38  ;;  %v979_v10 = vpop.permute.xlu1 %978 }
 0x8c2   : > { %v911_v1 = vmul.f32 %v3886_v57, %v3874_v35 }
 0x8c3   : > { %v3888_v58 = vpop.eup %3887 }
 0x8c4   : > { %v910_v25 = vmul.f32 %v3888_v58, %v3880_v42  ;;  %v914_v3 = vpack.c.bf16 %v912_v59, %v911_v1 }
 0x8c6   : > { %v913_v2 = vpack.c.bf16 %v910_v25, %v909_v60 }
 0x8c8   : > { %3495 = vmatprep.mubr.msk.bf16.mxu1 %vm482_vm2, %v913_v2 }
 0x8c9   : > { %3496 = vmatmul.mubr.msk.bf16.vlgmr.msra.gmra.mxu1 %vm482_vm2, %v914_v3 }
 0x8ca   : > { %3500 = vmatpush3.bf16.xpose.msra.mxu1 %v994_v7  ;;  %3503 = vmatprep.mubr.msk.bf16.mxu1 %vm631_vm4, %v977_v4 }
 0x8cb   : > { %3688 = vmatprep.subr.msk.bf16.mxu1 %vm631_vm4, %v981_v8 }
 0x8d2   : > { %3502 = vmatpush3.bf16.xpose.msra.mxu1 %v991_v9 }
 0x8d9   : > { %3504 = vmatmul.mubr.msk.bf16.vlgmr.msra.gmra.mxu1 %vm631_vm4, %v979_v10 }
 0x989   : > { %v4403_v11 = vpop.f32.mrf.mxu1 }
 0x98b   : > { %v4405_v12 = vpop.f32.mrf.mxu1 }
 0x98d   : > { %v4407_v13 = vpop.f32.mrf.mxu1 }
 0x98e   : > { %v3760_v14 = vpack.i.bf16 %v4407_v13, %v4403_v11 }
 0x98f   : > { %v4411_v16 = vpop.f32.mrf.mxu1 }
 0x990   : > { %v3755_v17 = vpack.i.bf16 %v4411_v16, %v4405_v12 }
 0x999   : > { %v3505_v18 = vpop.f32.mrf.mxu1 }
 0x99a   : > { %v1039_v22 = vadd.f32 %v3505_v18, %v4329_v56 }
 0x99b   : > { %v1030_v19 = vpop.f32.mrf.mxu1 }
 0x99c   : > { %v1031_v20 = vadd.f32 %v1030_v19, %v4329_v56  ;;  %v1051_v37 = vsel %vm482_vm2, %v1039_v22, -inf }
 0x99d   : > { %v3506_v21 = vpop.f32.mrf.mxu1 }
 0x99e   : > { %v1045_v23 = vsel %vm482_vm2, %v1031_v20, -inf  ;;  %v1042_v34 = vadd.f32 %v3506_v21, %v4329_v56 }
 0x99f   : > { %v1033_v24 = vpop.f32.mrf.mxu1  ;;  %1046 = vmax.xlane.f32.xlu0 %v1045_v23 }
 0x9a0   : > { %v1034_v29 = vadd.f32 %v1033_v24, %v4329_v56  ;;  %v1054_v38 = vsel %vm482_vm2, %v1042_v34, -inf }
 0x9a2   : > { %v1048_v35 = vsel %vm482_vm2, %v1034_v29, -inf }
 0x9a3   : > { %1049 = vmax.xlane.f32.xlu1 %v1048_v35  ;;  %1052 = vmax.xlane.f32.xlu0 %v1051_v37 }
 0x9a7   : > { %1055 = vmax.xlane.f32.xlu0 %v1054_v38 }
 0x9b4   : > { %1091 = vrot.lane.b32.xlu1 %v4314_v48, %s4970_s28 }
 0xa28   : > { %v1047_v39 = vpop.xlane.xlu0 %1046 }
 0xa29   : > { %v1057_v40 = vsub.f32 %v1031_v20, %v1047_v39 }
 0xa2b   : > { %v1061_v49 = vmul.f32 1.442695, %v1057_v40 }
 0xa2c   : > { %v1050_v42 = vpop.xlane.xlu1 %1049  ;;  %v1053_v43 = vpop.xlane.xlu0 %1052 }
 0xa2d   : > { %v1059_v44 = vsub.f32 %v1039_v22, %v1053_v43  ;;  %v1058_v45 = vsub.f32 %v1034_v29, %v1050_v42 }
 0xa2f   : > { %v1065_v47 = vmul.f32 1.442695, %v1059_v44  ;;  %v1063_v52 = vmul.f32 1.442695, %v1058_v45 }
 0xa30   : > { %v1056_v50 = vpop.xlane.xlu0 %1055  ;;  %v1092_v2 = vpop.permute.xlu1 %1091 }
 0xa31   : > { %v1060_v51 = vsub.f32 %v1042_v34, %v1056_v50  ;;  %3889 = vpow2.f32 %v1065_v47 }
 0xa32   : > { %3891 = vpow2.f32 %v1061_v49 }
 0xa33   : > { %v1067_v53 = vmul.f32 1.442695, %v1060_v51 }
 0xa35   : > { %3893 = vpow2.f32 %v1067_v53 }
 0xa36   : > { %3895 = vpow2.f32 %v1063_v52 }
 0xa3e   : > { %v3890_v54 = vpop.eup %3889 }
 0xa3f   : > { %v1075_v55 = vsel %vm482_vm2, %v3890_v54, 0.0  ;;  %v3892_v57 = vpop.eup %3891 }
 0xa40   : > { %1076 = vadd.xlane.f32.xlu0 %v1075_v55  ;;  %v1069_v25 = vsel %vm482_vm2, %v3892_v57, 0.0 }
 0xa42   : > { %v3894_v58 = vpop.eup %3893 }
 0xa43   : > { %v1078_v59 = vsel %vm482_vm2, %v3894_v58, 0.0  ;;  %v3896_v60 = vpop.eup %3895 }
 0xa44   : > { %1079 = vadd.xlane.f32.xlu1 %v1078_v59  ;;  %1070 = vadd.xlane.f32.xlu0 %v1069_v25  ;;  %v1072_v1 = vsel %vm482_vm2, %v3896_v60, 0.0 }
 0xa48   : > { %1073 = vadd.xlane.f32.xlu1 %v1072_v1 }
 0xa59   : > { %1158 = vrot.lane.b32.xlu1 %v4312_v46, %s4962_s29 }
 0xa5a   : > { %1093 = vrot.lane.b32.xlu0 %v4312_v46, %s4970_s28  ;;  %s4991_s28 = smov 40  }
 0xa5d   : > { %1156 = vrot.lane.b32.xlu1 %v4314_v48, %s4962_s29  ;;  %s4964_s29 = smov 16  }
 0xa5e   : > { %1152 = vrot.lane.b32.xlu0 %v4314_v48, %s4960_s30 }
 0xa61   : > { %1154 = vrot.lane.b32.xlu1 %v4312_v46, %s4960_s30  ;;  %s4966_s30 = smov 8  }
 0xac9   : > { %v1077_v3 = vpop.xlane.xlu0 %1076 }
 0xacd   : > { %v1080_v4 = vpop.xlane.xlu1 %1079  ;;  %v1071_v7 = vpop.xlane.xlu0 %1070 }
 0xace   : > { %3897 = vrcp.f32 %v1080_v4 }
 0xacf   : > { %3899 = vrcp.f32 %v1071_v7 }
 0xad0   : > { %3901 = vrcp.f32 %v1077_v3 }
 0xad1   : > { %v1074_v8 = vpop.xlane.xlu1 %1073  ;;  %v1094_v9 = vpop.permute.xlu0 %1093 }
 0xad2   : > { %3903 = vrcp.f32 %v1074_v8  ;;  %3507 = vmatprep.subr.bf16.mxu0 %v1094_v9 }
 0xad3   : > { %3508 = vmatpush3.bf16.msra.mxu0 %v1094_v9 }
 0xad4   : > { %3509 = vmatprep.subr.bf16.mxu0 %v1092_v2 }
 0xad5   : > { %v1159_v10 = vpop.permute.xlu1 %1158  ;;  %v1153_v37 = vpop.permute.xlu0 %1152 }
 0xad6   : > { %v1170_v38 = vsel %vm631_vm4, %v1159_v10, 0 }
 0xad7   : > { %3510 = vmatpush3.bf16.msra.mxu0 %v1092_v2 }
 0xad8   : > { %3689 = vmatprep.subr.msk.bf16.mxu0 %vm631_vm4, %v1159_v10 }
 0xad9   : > { %v1157_v39 = vpop.permute.xlu1 %1156 }
 0xada   : > { %v1167_v40 = vsel %vm631_vm4, %v1157_v39, 0 }
 0xadb   : > { %v3898_v18 = vpop.eup %3897 }
 0xadc   : > { %v3900_v19 = vpop.eup %3899  ;;  %v1088_v22 = vmul.f32 %v3898_v18, %v3894_v58 }
 0xadd   : > { %v3902_v20 = vpop.eup %3901  ;;  %v1085_v23 = vmul.f32 %v3900_v19, %v3892_v57  ;;  %v1155_v42 = vpop.permute.xlu1 %1154 }
 0xade   : > { %v1087_v29 = vmul.f32 %v3902_v20, %v3890_v54 }
 0xadf   : > { %v3904_v21 = vpop.eup %3903 }
 0xae0   : > { %v1086_v24 = vmul.f32 %v3904_v21, %v3896_v60  ;;  %v1090_v35 = vpack.c.bf16 %v1088_v22, %v1087_v29 }
 0xae2   : > { %v1089_v34 = vpack.c.bf16 %v1086_v24, %v1085_v23 }
 0xae4   : > { %3511 = vmatprep.mubr.msk.bf16.mxu0 %vm482_vm2, %v1089_v34 }
 0xae5   : > { %3512 = vmatmul.mubr.msk.bf16.vlgmr.msra.gmra.mxu0 %vm482_vm2, %v1090_v35 }
 0xae6   : > { %3516 = vmatpush3.bf16.xpose.msra.mxu0 %v1170_v38  ;;  %3519 = vmatprep.mubr.msk.bf16.mxu0 %vm631_vm4, %v1153_v37 }
 0xae7   : > { %3690 = vmatprep.subr.msk.bf16.mxu0 %vm631_vm4, %v1157_v39 }
 0xaee   : > { %3518 = vmatpush3.bf16.xpose.msra.mxu0 %v1167_v40 }
 0xaf5   : > { %3520 = vmatmul.mubr.msk.bf16.vlgmr.msra.gmra.mxu0 %vm631_vm4, %v1155_v42 }
 0xba5   : > { %v3513_v43 = vpop.f32.mrf.mxu0 }
 0xba7   : > { %v1137_v44 = vpop.f32.mrf.mxu0 }
 0xba9   : > { %v3514_v45 = vpop.f32.mrf.mxu0 }
 0xbaa   : > { %v3770_v47 = vpack.i.bf16 %v3514_v45, %v3513_v43 }
 0xbab   : > { %v1140_v49 = vpop.f32.mrf.mxu0 }
 0xbac   : > { %v3765_v50 = vpack.i.bf16 %v1140_v49, %v1137_v44 }
 0xbb5   : > { %v3521_v51 = vpop.f32.mrf.mxu0 }
 0xbb6   : > { %v1215_v55 = vadd.f32 %v3521_v51, %v4329_v56 }
 0xbb7   : > { %v1206_v52 = vpop.f32.mrf.mxu0 }
 0xbb8   : > { %v1207_v53 = vadd.f32 %v1206_v52, %v4329_v56  ;;  %v1227_v1 = vsel %vm482_vm2, %v1215_v55, -inf  ;;  %v3821_v52 = vld [vmem:[%s4954_s5 + $0x8] sm:$0xff]  }
 0xbb9   : > { %v3522_v54 = vpop.f32.mrf.mxu0 }
 0xbba   : > { %v1221_v57 = vsel %vm482_vm2, %v1207_v53, -inf  ;;  %v1218_v60 = vadd.f32 %v3522_v54, %v4329_v56 }
 0xbbb   : > { %v1209_v58 = vpop.f32.mrf.mxu0  ;;  %1222 = vmax.xlane.f32.xlu0 %v1221_v57 }
 0xbbc   : > { %v1210_v59 = vadd.f32 %v1209_v58, %v4329_v56  ;;  %v1230_v2 = vsel %vm482_vm2, %v1218_v60, -inf }
 0xbbe   : > { %v1224_v25 = vsel %vm482_vm2, %v1210_v59, -inf }
 0xbbf   : > { %1225 = vmax.xlane.f32.xlu1 %v1224_v25  ;;  %1228 = vmax.xlane.f32.xlu0 %v1227_v1 }
 0xbc3   : > { %1231 = vmax.xlane.f32.xlu0 %v1230_v2 }
 0xc44   : > { %v1223_v3 = vpop.xlane.xlu0 %1222 }
 0xc45   : > { %v1233_v4 = vsub.f32 %v1207_v53, %v1223_v3  ;;  %v3822_v53 = vld [vmem:[%s4954_s5] sm:$0xff]  }
 0xc47   : > { %v1237_v19 = vmul.f32 1.442695, %v1233_v4 }
 0xc48   : > { %v1226_v7 = vpop.xlane.xlu1 %1225  ;;  %v1229_v8 = vpop.xlane.xlu0 %1228 }
 0xc49   : > { %v1235_v9 = vsub.f32 %v1215_v55, %v1229_v8  ;;  %v1234_v10 = vsub.f32 %v1210_v59, %v1226_v7 }
 0xc4b   : > { %v1241_v18 = vmul.f32 1.442695, %v1235_v9  ;;  %v1239_v22 = vmul.f32 1.442695, %v1234_v10 }
 0xc4c   : > { %v1232_v20 = vpop.xlane.xlu0 %1231 }
 0xc4d   : > { %v1236_v21 = vsub.f32 %v1218_v60, %v1232_v20  ;;  %3905 = vpow2.f32 %v1241_v18 }
 0xc4e   : > { %3907 = vpow2.f32 %v1237_v19 }
 0xc4f   : > { %v1243_v23 = vmul.f32 1.442695, %v1236_v21 }
 0xc51   : > { %3909 = vpow2.f32 %v1243_v23 }
 0xc52   : > { %3911 = vpow2.f32 %v1239_v22 }
 0xc5a   : > { %v3906_v24 = vpop.eup %3905 }
 0xc5b   : > { %v1251_v29 = vsel %vm482_vm2, %v3906_v24, 0.0  ;;  %v3908_v34 = vpop.eup %3907 }
 0xc5c   : > { %1252 = vadd.xlane.f32.xlu0 %v1251_v29  ;;  %v1245_v39 = vsel %vm482_vm2, %v3908_v34, 0.0 }
 0xc5e   : > { %v3910_v35 = vpop.eup %3909 }
 0xc5f   : > { %v1254_v37 = vsel %vm482_vm2, %v3910_v35, 0.0  ;;  %v3912_v38 = vpop.eup %3911 }
 0xc60   : > { %1255 = vadd.xlane.f32.xlu1 %v1254_v37  ;;  %1246 = vadd.xlane.f32.xlu0 %v1245_v39  ;;  %v1248_v40 = vsel %vm482_vm2, %v3912_v38, 0.0 }
 0xc64   : > { %1249 = vadd.xlane.f32.xlu1 %v1248_v40 }
 0xc75   : > { %1267 = vrot.lane.b32.xlu1 %v4314_v48, %s4968_s11 }
 0xc76   : > { %1269 = vrot.lane.b32.xlu0 %v4312_v46, %s4968_s11  ;;  %s4990_s11 = smov 104  }
 0xc79   : > { %3756 = vrot.lane.b32.xlu1 %v3755_v17, %s4966_s30 }
 0xc7a   : > { %3766 = vrot.lane.b32.xlu0 %v3765_v50, %s4964_s29 }
 0xc7d   : > { %3761 = vrot.lane.b32.xlu1 %v3760_v14, %s4966_s30  ;;  %s4989_s30 = smov 72  }
 0xc81   : > { %3771 = vrot.lane.b32.xlu1 %v3770_v47, %s4964_s29  ;;  %s4992_s29 = smov 8  }
 0xce5   : > { %v1253_v48 = vpop.xlane.xlu0 %1252 }
 0xce9   : > { %v1256_v42 = vpop.xlane.xlu1 %1255  ;;  %v1247_v43 = vpop.xlane.xlu0 %1246 }
 0xcea   : > { %3913 = vrcp.f32 %v1256_v42 }
 0xceb   : > { %3915 = vrcp.f32 %v1247_v43 }
 0xcec   : > { %3917 = vrcp.f32 %v1253_v48 }
 0xced   : > { %v1250_v46 = vpop.xlane.xlu1 %1249  ;;  %v1270_v12 = vpop.permute.xlu0 %1269 }
 0xcee   : > { %3919 = vrcp.f32 %v1250_v46  ;;  %3523 = vmatprep.subr.bf16.mxu1 %v1270_v12 }
 0xcef   : > { %3524 = vmatpush3.bf16.msra.mxu1 %v1270_v12 }
 0xcf1   : > { %v1268_v16 = vpop.permute.xlu1 %1267  ;;  %v3767_v7 = vpop.permute.xlu0 %3766 }
 0xcf2   : > { %3525 = vmatprep.subr.bf16.mxu1 %v1268_v16  ;;  %v3768_v29 = vunpack.i.l.bf16 %v3767_v7 }
 0xcf3   : > { %3526 = vmatpush3.bf16.msra.mxu1 %v1268_v16  ;;  %v1399_v16 = vrot.slane %v4308_v36, %v4253_v32 }
 0xcf4   : > { %3531 = vmatprep.subr.bf16.mxu1 %v3821_v52 }
 0xcf5   : > { %v3757_v25 = vpop.permute.xlu1 %3756 }
 0xcf6   : > { %v3759_v2 = vunpack.i.h.bf16 %v3757_v25  ;;  %v3758_v4 = vunpack.i.l.bf16 %v3757_v25 }
 0xcf7   : > { %v3914_v17 = vpop.eup %3913 }
 0xcf8   : > { %v3916_v44 = vpop.eup %3915  ;;  %v1264_v14 = vmul.f32 %v3914_v17, %v3910_v35  ;;  %v1377_v19 = vsel %vm631_vm4, %v4369_v0, %v3759_v2  ;;  %v1376_v21 = vsel %vm631_vm4, %v4365_v62, %v3758_v4 }
 0xcf9   : > { %v3918_v11 = vpop.eup %3917  ;;  %v1261_v45 = vmul.f32 %v3916_v44, %v3908_v34  ;;  %v3762_v1 = vpop.permute.xlu1 %3761  ;;  %v1381_v42 = vsel %vm1380_vm6, %v1376_v21, %v3768_v29 }
 0xcfa   : > { %v1263_v49 = vmul.f32 %v3918_v11, %v3906_v24  ;;  %v3764_v8 = vunpack.i.h.bf16 %v3762_v1  ;;  %v3763_v9 = vunpack.i.l.bf16 %v3762_v1  ;;  %v3769_v24 = vunpack.i.h.bf16 %v3767_v7 }
 0xcfb   : > { %v3920_v13 = vpop.eup %3919 }
 0xcfc   : > { %v1262_v47 = vmul.f32 %v3920_v13, %v3912_v38  ;;  %v1266_v51 = vpack.c.bf16 %v1264_v14, %v1263_v49  ;;  %v1379_v34 = vsel %vm631_vm4, %v4367_v63, %v3764_v8  ;;  %v1378_v35 = vsel %vm631_vm4, %v4363_v61, %v3763_v9 }
 0xcfd   : > { %v3772_v3 = vpop.permute.xlu1 %3771  ;;  %v1382_v43 = vsel %vm1380_vm6, %v1377_v19, %v3769_v24 }
 0xcfe   : > { %v1265_v50 = vpack.c.bf16 %v1262_v47, %v1261_v45  ;;  %v3774_v10 = vunpack.i.h.bf16 %v3772_v3  ;;  %v3773_v18 = vunpack.i.l.bf16 %v3772_v3 }
 0xd00   : > { %3527 = vmatprep.mubr.msk.bf16.mxu1 %vm482_vm2, %v1265_v50  ;;  %v1383_v38 = vsel %vm1380_vm6, %v1378_v35, %v3773_v18  ;;  %v1384_v0 = vsel %vm1380_vm6, %v1379_v34, %v3774_v10 }
 0xd01   : > { %3528 = vmatmul.mubr.msk.bf16.vlgmr.msra.gmra.mxu1 %vm482_vm2, %v1266_v51 }
 0xd02   : > { %3532 = vmatpush3.bf16.msra.mxu1 %v3821_v52 }
 0xd03   : > { %3533 = vmatprep.subr.bf16.mxu1 %v3822_v53 }
 0xd06   : > { %3534 = vmatpush3.bf16.msra.mxu1 %v3822_v53 }
 0xdc1   : > { %v3529_v54 = vpop.f32.mrf.mxu1 }
 0xdc3   : > { %v1313_v55 = vpop.f32.mrf.mxu1 }
 0xdc5   : > { %v3530_v57 = vpop.f32.mrf.mxu1 }
 0xdc6   : > { %v3780_v58 = vpack.i.bf16 %v3530_v57, %v3529_v54 }
 0xdc7   : > { %v1316_v59 = vpop.f32.mrf.mxu1 }
 0xdc8   : > { %v3775_v60 = vpack.i.bf16 %v1316_v59, %v1313_v55  ;;  %3781 = vrot.lane.b32.xlu1 %v3780_v58, %s4974_s27 }
 0xdca   : > { %3776 = vrot.lane.b32.xlu0 %v3775_v60, %s4974_s27  ;;  %s350_s27 = sand.u32 1, %s4084_s14  }
 0xe3a   : > { %v3782_v20 = vpop.permute.xlu1 %3781 }
 0xe3b   : > { %v3784_v22 = vunpack.i.h.bf16 %v3782_v20  ;;  %v3783_v23 = vunpack.i.l.bf16 %v3782_v20 }
 0xe3c   : > { %v3777_v37 = vpop.permute.xlu0 %3776 }
 0xe3d   : > { %v3779_v39 = vunpack.i.h.bf16 %v3777_v37  ;;  %v3778_v40 = vunpack.i.l.bf16 %v3777_v37  ;;  %v1389_v62 = vsel %vm1385_vm7, %v1384_v0, %v3784_v22  ;;  %v1388_v48 = vsel %vm1385_vm7, %v1383_v38, %v3783_v23  ;;  %v3823_v22 = vld [vmem:[%s4955_s6 + $0x8] sm:$0xff]   ;;  %v3824_v23 = vld [vmem:[%s4955_s6] sm:$0xff]  }
 0xe3e   : > { %v1391_v12 = vpack.c.bf16 %v1389_v62, %v1388_v48  ;;  %3539 = vmatprep.subr.bf16.mxu0 %v3823_v22 }
 0xe3f   : > { %v1386_v63 = vsel %vm1385_vm7, %v1381_v42, %v3778_v40  ;;  %v1387_v46 = vsel %vm1385_vm7, %v1382_v43, %v3779_v39  ;;  %3540 = vmatpush3.bf16.msra.mxu0 %v3823_v22 }
 0xe40   : > { %v1390_v61 = vpack.c.bf16 %v1387_v46, %v1386_v63  ;;  %3541 = vmatprep.subr.bf16.mxu0 %v3824_v23  ;;  %v4524_v63 = vld [vmem:[%s4958_s9] sm:$0xff] }
 0xe41   : > { %v1526_v46 = vrot.slane %v4524_v63, %v4258_v41 }
 0xe42   : > { %3535 = vmatprep.mubr.msk.bf16.mxu1 %vm482_vm2, %v1390_v61 }
 0xe43   : > { %3536 = vmatmul.mubr.msk.bf16.vlgmr.msra.gmra.mxu1 %vm482_vm2, %v1391_v12  ;;  %3542 = vmatpush3.bf16.msra.mxu0 %v3824_v23 }
 0xf03   : > { %v3537_v17 = vpop.f32.mrf.mxu1 }
 0xf04   : > { %v1461_v11 = vadd.f32 %v3537_v17, %v1399_v16 }
 0xf05   : > { %v1452_v44 = vpop.f32.mrf.mxu1 }
 0xf06   : > { %v1453_v13 = vadd.f32 %v1452_v44, %v1399_v16  ;;  %v1469_v52 = vadd.f32 %v1461_v11, %v4297_v33  ;;  %v1534_v11 = vrot.slane %v4524_v63, %v4272_v5 }
 0xf07   : > { %v3538_v14 = vpop.f32.mrf.mxu1 }
 0xf08   : > { %v1467_v45 = vadd.f32 %v1453_v13, %v4293_v30  ;;  %v1464_v49 = vadd.f32 %v3538_v14, %v1399_v16  ;;  %v1477_v36 = vsel %vm482_vm2, %v1469_v52, 0.0 }
 0xf09   : > { %v1455_v47 = vpop.f32.mrf.mxu1 }
 0xf0a   : > { %v1456_v50 = vadd.f32 %v1455_v47, %v1399_v16  ;;  %v1471_v51 = vsel %vm482_vm2, %v1467_v45, 0.0  ;;  %v1470_v55 = vadd.f32 %v1464_v49, %v4291_v28 }
 0xf0b   : > { %1472 = vadd.xlane.f32.xlu0 %v1471_v51 }
 0xf0c   : > { %v1468_v53 = vadd.f32 %v1456_v50, %v4295_v31  ;;  %v1480_v30 = vsel %vm482_vm2, %v1470_v55, 0.0 }
 0xf0e   : > { %v1474_v54 = vsel %vm482_vm2, %v1468_v53, 0.0 }
 0xf0f   : > { %1475 = vadd.xlane.f32.xlu1 %v1474_v54  ;;  %1478 = vadd.xlane.f32.xlu0 %v1477_v36 }
 0xf13   : > { %1481 = vadd.xlane.f32.xlu0 %v1480_v30  ;;  %v3825_v30 = vld [vmem:[%s4956_s7 + $0x38] sm:$0xff]  }
 0xf14   : > { %3547 = vmatprep.subr.bf16.mxu1 %v3825_v30 }
 0xf15   : > { %3548 = vmatpush3.bf16.msra.mxu1 %v3825_v30 }
 0xf94   : > { %v1473_v57 = vpop.xlane.xlu0 %1472 }
 0xf95   : > { %v1483_v58 = vmul.f32 0.03125, %v1473_v57  ;;  %v3826_v57 = vld [vmem:[%s4956_s7 + $0x30] sm:$0xff]  }
 0xf96   : > { %3549 = vmatprep.subr.bf16.mxu1 %v3826_v57 }
 0xf97   : > { %v1487_v59 = vsub.f32 %v1467_v45, %v1483_v58  ;;  %3550 = vmatpush3.bf16.msra.mxu1 %v3826_v57  ;;  %v3827_v58 = vld [vmem:[%s4956_s7 + $0x28] sm:$0xff]  }
 0xf98   : > { %v1476_v60 = vpop.xlane.xlu1 %1475  ;;  %v1479_v25 = vpop.xlane.xlu0 %1478  ;;  %3551 = vmatprep.subr.bf16.mxu1 %v3827_v58 }
 0xf99   : > { %v1484_v33 = vmul.f32 0.03125, %v1476_v60  ;;  %v1485_v1 = vmul.f32 0.03125, %v1479_v25  ;;  %v1491_v2 = vmul.f32 %v1487_v59, %v1487_v59  ;;  %v3829_v60 = vld [vmem:[%s4956_s7 + $0x18] sm:$0xff]   ;;  %v3830_v25 = vld [vmem:[%s4956_s7 + $0x10] sm:$0xff]  }
 0xf9b   : > { %v1488_v31 = vsub.f32 %v1468_v53, %v1484_v33  ;;  %v1489_v3 = vsub.f32 %v1469_v52, %v1485_v1  ;;  %v1495_v4 = vsel %vm482_vm2, %v1491_v2, 0.0  ;;  %3552 = vmatpush3.bf16.msra.mxu1 %v3827_v58  ;;  %v3831_v33 = vld [vmem:[%s4956_s7 + $0x8] sm:$0xff]   ;;  %v3832_v1 = vld [vmem:[%s4956_s7] sm:$0xff]   ;;  %v1548_v2 = vrot.slane %v4524_v63, %v4275_v6 }
 0xf9c   : > { %1496 = vadd.xlane.f32.xlu0 %v1495_v4  ;;  %v1482_v7 = vpop.xlane.xlu0 %1481 }
 0xf9d   : > { %v1486_v28 = vmul.f32 0.03125, %v1482_v7  ;;  %v1492_v8 = vmul.f32 %v1488_v31, %v1488_v31  ;;  %v1493_v9 = vmul.f32 %v1489_v3, %v1489_v3 }
 0xf9f   : > { %v1490_v10 = vsub.f32 %v1470_v55, %v1486_v28  ;;  %v1498_v18 = vsel %vm482_vm2, %v1492_v8, 0.0  ;;  %v1501_v19 = vsel %vm482_vm2, %v1493_v9, 0.0 }
 0xfa0   : > { %1499 = vadd.xlane.f32.xlu1 %v1498_v18  ;;  %1502 = vadd.xlane.f32.xlu0 %v1501_v19 }
 0xfa1   : > { %v1494_v20 = vmul.f32 %v1490_v10, %v1490_v10 }
 0xfa3   : > { %v1504_v21 = vsel %vm482_vm2, %v1494_v20, 0.0 }
 0xfa4   : > { %1505 = vadd.xlane.f32.xlu1 %v1504_v21 }
0x1025   : > { %v1497_v24 = vpop.xlane.xlu0 %1496 }
0x1026   : > { %v1507_v29 = vmul.f32 0.03125, %v1497_v24 }
0x1028   : > { %v1511_v34 = vadd.f32 1e-05, %v1507_v29 }
0x1029   : > { %v1500_v35 = vpop.xlane.xlu1 %1499  ;;  %v1503_v37 = vpop.xlane.xlu0 %1502 }
0x102a   : > { %3921 = vrsqrt.f32 %v1511_v34  ;;  %v1508_v38 = vmul.f32 0.03125, %v1500_v35  ;;  %v1509_v0 = vmul.f32 0.03125, %v1503_v37 }
0x102c   : > { %v1512_v39 = vadd.f32 1e-05, %v1508_v38  ;;  %v1513_v40 = vadd.f32 1e-05, %v1509_v0 }
0x102d   : > { %v1506_v62 = vpop.xlane.xlu1 %1505 }
0x102e   : > { %3923 = vrsqrt.f32 %v1512_v39  ;;  %v1510_v48 = vmul.f32 0.03125, %v1506_v62 }
0x102f   : > { %3925 = vrsqrt.f32 %v1513_v40 }
0x1030   : > { %v1514_v42 = vadd.f32 1e-05, %v1510_v48 }
0x1032   : > { %3927 = vrsqrt.f32 %v1514_v42 }
0x1037   : > { %v3922_v43 = vpop.eup %3921 }
0x1038   : > { %v1519_v61 = vmul.f32 %v3922_v43, %v1487_v59  ;;  %v3828_v59 = vld [vmem:[%s4956_s7 + $0x20] sm:$0xff]  }
0x1039   : > { %3553 = vmatprep.subr.bf16.mxu1 %v3828_v59 }
0x103a   : > { %v1527_v44 = vmul.f32 %v1526_v46, %v1519_v61  ;;  %3554 = vmatpush3.bf16.msra.mxu1 %v3828_v59 }
0x103b   : > { %v3924_v12 = vpop.eup %3923  ;;  %3555 = vmatprep.subr.bf16.mxu1 %v3829_v60 }
0x103c   : > { %v3926_v16 = vpop.eup %3925  ;;  %v1520_v17 = vmul.f32 %v3924_v12, %v1488_v31  ;;  %v4530_v49 = vadd.f32 %v1534_v11, %v1527_v44 }
0x103d   : > { %v1521_v13 = vmul.f32 %v3926_v16, %v1489_v3  ;;  %v1656_v16 = vsub.s32 5, %v4243_v26 }
0x103e   : > { %v1528_v14 = vmul.f32 %v1526_v46, %v1520_v17  ;;  %3556 = vmatpush3.bf16.msra.mxu1 %v3829_v60 }
0x103f   : > { %v3928_v45 = vpop.eup %3927  ;;  %v1529_v51 = vmul.f32 %v1526_v46, %v1521_v13  ;;  %3557 = vmatprep.subr.bf16.mxu1 %v3830_v25  ;;  %v1657_v17 = vrot.slane %v4524_v63, %v1656_v16 }
0x1040   : > { %v1522_v47 = vmul.f32 %v3928_v45, %v1490_v10  ;;  %v4532_v50 = vadd.f32 %v1534_v11, %v1528_v14 }
0x1041   : > { %v4537_v54 = vadd.f32 %v1534_v11, %v1529_v51 }
0x1042   : > { %v1539_v52 = vpack.c.bf16 %v4532_v50, %v4530_v49  ;;  %v1530_v53 = vmul.f32 %v1526_v46, %v1522_v47  ;;  %3558 = vmatpush3.bf16.msra.mxu1 %v3830_v25 }
0x1043   : > { %3559 = vmatprep.subr.bf16.mxu1 %v3831_v33 }
0x1044   : > { %3543 = vmatprep.mubr.msk.bf16.mxu0 %vm482_vm2, %v1539_v52  ;;  %v4539_v36 = vadd.f32 %v1534_v11, %v1530_v53 }
0x1046   : > { %v1540_v55 = vpack.c.bf16 %v4539_v36, %v4537_v54  ;;  %3560 = vmatpush3.bf16.msra.mxu1 %v3831_v33 }
0x1047   : > { %3561 = vmatprep.subr.bf16.mxu1 %v3832_v1 }
0x1048   : > { %3544 = vmatmul.mubr.msk.bf16.vlgmr.msra.gmra.mxu0 %vm482_vm2, %v1540_v55 }
0x104a   : > { %3562 = vmatpush3.bf16.msra.mxu1 %v3832_v1 }
0x1108   : > { %v3545_v31 = vpop.f32.mrf.mxu0 }
0x1109   : > { %v1610_v3 = vadd.f32 %v3545_v31, %v1548_v2 }
0x110a   : > { %v1601_v4 = vpop.f32.mrf.mxu0 }
0x110b   : > { %v1602_v7 = vadd.f32 %v1601_v4, %v1548_v2  ;;  %v1622_v28 = vmul.f32 0.70710677, %v1610_v3  ;;  %v1618_v62 = vmul.f32 0.5, %v1610_v3 }
0x110c   : > { %v3546_v8 = vpop.f32.mrf.mxu0 }
0x110d   : > { %v1620_v9 = vmul.f32 0.70710677, %v1602_v7  ;;  %v1613_v10 = vadd.f32 %v3546_v8, %v1548_v2  ;;  %v1616_v0 = vmul.f32 0.5, %v1602_v7 }
0x110e   : > { %v1604_v18 = vpop.f32.mrf.mxu0 }
0x110f   : > { %3929 = verf.f32 %v1620_v9  ;;  %v1623_v19 = vmul.f32 0.70710677, %v1613_v10  ;;  %v1605_v20 = vadd.f32 %v1604_v18, %v1548_v2  ;;  %v1619_v38 = vmul.f32 0.5, %v1613_v10 }
0x1110   : > { %3931 = verf.f32 %v1622_v28 }
0x1111   : > { %3933 = verf.f32 %v1623_v19  ;;  %v1621_v21 = vmul.f32 0.70710677, %v1605_v20  ;;  %v1617_v39 = vmul.f32 0.5, %v1605_v20 }
0x1113   : > { %3935 = verf.f32 %v1621_v21 }
0x111c   : > { %v3930_v22 = vpop.eup %3929 }
0x111d   : > { %v3932_v23 = vpop.eup %3931  ;;  %v1628_v29 = vadd.f32 1.0, %v3930_v22 }
0x111e   : > { %v3934_v24 = vpop.eup %3933  ;;  %v1630_v37 = vadd.f32 1.0, %v3932_v23  ;;  %v3833_v23 = vld [vmem:[%s4953_s4 + $0x18] sm:$0xff]  }
0x111f   : > { %v1631_v34 = vadd.f32 1.0, %v3934_v24  ;;  %v1632_v42 = vmul.f32 %v1628_v29, %v1616_v0  ;;  %v3834_v24 = vld [vmem:[%s4953_s4 + $0x10] sm:$0xff]   ;;  %3567 = vmatprep.subr.bf16.mxu0 %v3833_v23 }
0x1120   : > { %v3936_v35 = vpop.eup %3935  ;;  %v1634_v46 = vmul.f32 %v1630_v37, %v1618_v62  ;;  %3568 = vmatpush3.bf16.msra.mxu0 %v3833_v23 }
0x1121   : > { %v1629_v40 = vadd.f32 1.0, %v3936_v35  ;;  %v1635_v48 = vmul.f32 %v1631_v34, %v1619_v38  ;;  %3569 = vmatprep.subr.bf16.mxu0 %v3834_v24 }
0x1123   : > { %v1633_v43 = vmul.f32 %v1629_v40, %v1617_v39  ;;  %v1637_v12 = vpack.c.bf16 %v1635_v48, %v1634_v46  ;;  %v1813_v46 = vsub.s32 6, %v4243_v26 }
0x1124   : > { %3570 = vmatpush3.bf16.msra.mxu0 %v3834_v24 }
0x1125   : > { %v1636_v61 = vpack.c.bf16 %v1633_v43, %v1632_v42 }
0x1127   : > { %3563 = vmatprep.mubr.bf16.mxu1 %v1636_v61 }
0x1128   : > { %3564 = vmatmul.mubr.bf16.vlgmr.msra.gmra.mxu1 %v1637_v12 }
0x11e8   : > { %v3565_v44 = vpop.f32.mrf.mxu1 }
0x11e9   : > { %v1749_v13 = vadd.f32 %v3565_v44, %v1657_v17  ;;  %v1821_v44 = vsub.s32 7, %v4243_v26  ;;  %v3848_v26 = vld [vmem:[%s4957_s8] sm:$0xff]  }
0x11ea   : > { %v1740_v11 = vpop.f32.mrf.mxu1 }
0x11eb   : > { %v1741_v14 = vadd.f32 %v1740_v11, %v1657_v17  ;;  %v1757_v30 = vadd.f32 %v1749_v13, %v4537_v54 }
0x11ec   : > { %v3566_v45 = vpop.f32.mrf.mxu1 }
0x11ed   : > { %v1755_v47 = vadd.f32 %v1741_v14, %v4530_v49  ;;  %v1752_v52 = vadd.f32 %v3566_v45, %v1657_v17  ;;  %v1765_v59 = vsel %vm482_vm2, %v1757_v30, 0.0 }
0x11ee   : > { %v1743_v51 = vpop.f32.mrf.mxu1 }
0x11ef   : > { %v1744_v53 = vadd.f32 %v1743_v51, %v1657_v17  ;;  %v1759_v55 = vsel %vm482_vm2, %v1755_v47, 0.0  ;;  %v1758_v60 = vadd.f32 %v1752_v52, %v4539_v36  ;;  %v1814_v17 = vrot.slane %v4524_v63, %v1813_v46 }
0x11f0   : > { %1760 = vadd.xlane.f32.xlu0 %v1759_v55 }
0x11f1   : > { %v1756_v57 = vadd.f32 %v1744_v53, %v4532_v50  ;;  %v1768_v49 = vsel %vm482_vm2, %v1758_v60, 0.0 }
0x11f3   : > { %v1762_v58 = vsel %vm482_vm2, %v1756_v57, 0.0 }
0x11f4   : > { %1763 = vadd.xlane.f32.xlu1 %v1762_v58  ;;  %1766 = vadd.xlane.f32.xlu0 %v1765_v59 }
0x11f8   : > { %1769 = vadd.xlane.f32.xlu1 %v1768_v49 }
0x1279   : > { %v1761_v25 = vpop.xlane.xlu0 %1760 }
0x127a   : > { %v1771_v33 = vmul.f32 0.03125, %v1761_v25 }
0x127c   : > { %v1775_v1 = vsub.f32 %v1755_v47, %v1771_v33  ;;  %v1822_v47 = vrot.slane %v4524_v63, %v1821_v44  ;;  %v4617_v33 = vld [vmem:[%s4958_s9 + $0x8] sm:$0xff] }
0x127d   : > { %v1764_v2 = vpop.xlane.xlu1 %1763  ;;  %v1767_v31 = vpop.xlane.xlu0 %1766 }
0x127e   : > { %v1772_v54 = vmul.f32 0.03125, %v1764_v2  ;;  %v1773_v3 = vmul.f32 0.03125, %v1767_v31  ;;  %v1779_v4 = vmul.f32 %v1775_v1, %v1775_v1  ;;  %v1839_v2 = vrot.slane %v4617_v33, %v4246_v27 }
0x1280   : > { %v1776_v50 = vsub.f32 %v1756_v57, %v1772_v54  ;;  %v1777_v7 = vsub.f32 %v1757_v30, %v1773_v3  ;;  %v1783_v28 = vsel %vm482_vm2, %v1779_v4, 0.0 }
0x1281   : > { %v1770_v8 = vpop.xlane.xlu1 %1769  ;;  %1784 = vadd.xlane.f32.xlu0 %v1783_v28 }
0x1282   : > { %v1774_v36 = vmul.f32 0.03125, %v1770_v8  ;;  %v1780_v9 = vmul.f32 %v1776_v50, %v1776_v50  ;;  %v1781_v10 = vmul.f32 %v1777_v7, %v1777_v7 }
0x1284   : > { %v1778_v18 = vsub.f32 %v1758_v60, %v1774_v36  ;;  %v1786_v19 = vsel %vm482_vm2, %v1780_v9, 0.0  ;;  %v1789_v20 = vsel %vm482_vm2, %v1781_v10, 0.0 }
0x1285   : > { %1787 = vadd.xlane.f32.xlu1 %v1786_v19  ;;  %1790 = vadd.xlane.f32.xlu0 %v1789_v20 }
0x1286   : > { %v1782_v21 = vmul.f32 %v1778_v18, %v1778_v18 }
0x1288   : > { %v1792_v22 = vsel %vm482_vm2, %v1782_v21, 0.0 }
0x1289   : > { %1793 = vadd.xlane.f32.xlu1 %v1792_v22 }
0x130a   : > { %v1785_v29 = vpop.xlane.xlu0 %1784 }
0x130b   : > { %v1795_v34 = vmul.f32 0.03125, %v1785_v29 }
0x130d   : > { %v1799_v35 = vadd.f32 1e-05, %v1795_v34 }
0x130e   : > { %v1788_v37 = vpop.xlane.xlu1 %1787  ;;  %v1791_v38 = vpop.xlane.xlu0 %1790 }
0x130f   : > { %3937 = vrsqrt.f32 %v1799_v35  ;;  %v1796_v0 = vmul.f32 0.03125, %v1788_v37  ;;  %v1797_v39 = vmul.f32 0.03125, %v1791_v38 }
0x1311   : > { %v1800_v40 = vadd.f32 1e-05, %v1796_v0  ;;  %v1801_v62 = vadd.f32 1e-05, %v1797_v39 }
0x1312   : > { %v1794_v48 = vpop.xlane.xlu1 %1793 }
0x1313   : > { %3939 = vrsqrt.f32 %v1800_v40  ;;  %v1798_v42 = vmul.f32 0.03125, %v1794_v48 }
0x1314   : > { %3941 = vrsqrt.f32 %v1801_v62 }
0x1315   : > { %v1802_v43 = vadd.f32 1e-05, %v1798_v42 }
0x1317   : > { %3943 = vrsqrt.f32 %v1802_v43 }
0x131c   : > { %v3938_v61 = vpop.eup %3937 }
0x131d   : > { %v1807_v12 = vmul.f32 %v3938_v61, %v1775_v1 }
0x131f   : > { %v1815_v45 = vmul.f32 %v1814_v17, %v1807_v12 }
0x1320   : > { %v3940_v11 = vpop.eup %3939 }
0x1321   : > { %v3942_v13 = vpop.eup %3941  ;;  %v1808_v14 = vmul.f32 %v3940_v11, %v1776_v50  ;;  %v4600_v30 = vadd.f32 %v1822_v47, %v1815_v45 }
0x1322   : > { %v1809_v51 = vmul.f32 %v3942_v13, %v1777_v7 }
0x1323   : > { %v1816_v52 = vmul.f32 %v1814_v17, %v1808_v14 }
0x1324   : > { %v3944_v53 = vpop.eup %3943  ;;  %v1817_v58 = vmul.f32 %v1814_v17, %v1809_v51 }
0x1325   : > { %v1810_v55 = vmul.f32 %v3944_v53, %v1778_v18  ;;  %v4602_v57 = vadd.f32 %v1822_v47, %v1816_v52 }
0x1326   : > { %v4607_v49 = vadd.f32 %v1822_v47, %v1817_v58 }
0x1327   : > { %v1829_v59 = vpack.c.bf16 %v4602_v57, %v4600_v30  ;;  %v1818_v60 = vmul.f32 %v1814_v17, %v1810_v55 }
0x1329   : > { %3571 = vmatprep.mubr.msk.bf16.mxu0 %vm482_vm2, %v1829_v59  ;;  %v4609_v25 = vadd.f32 %v1822_v47, %v1818_v60 }
0x132b   : > { %v1830_v63 = vpack.c.bf16 %v4609_v25, %v4607_v49 }
0x132d   : > { %3572 = vmatmul.mubr.msk.bf16.vlgmr.msra.gmra.mxu0 %vm482_vm2, %v1830_v63 }
0x13ed   : > { %v3573_v1 = vpop.f32.mrf.mxu0 }
0x13ee   : > { %v1901_v3 = vadd.f32 %v3573_v1, %v1839_v2 }
0x13ef   : > { %v1892_v31 = vpop.f32.mrf.mxu0 }
0x13f0   : > { %v1893_v7 = vadd.f32 %v1892_v31, %v1839_v2 }
0x13f1   : > { %v3574_v54 = vpop.f32.mrf.mxu0 }
0x13f2   : > { %v1904_v4 = vadd.f32 %v3574_v54, %v1839_v2 }
0x13f3   : > { %v1895_v50 = vpop.f32.mrf.mxu0 }
0x13f4   : > { %v4621_v28 = vpack.c.bf16 %v1904_v4, %v1901_v3  ;;  %v1896_v8 = vadd.f32 %v1895_v50, %v1839_v2 }
0x13f6   : > { %v4623_v36 = vpack.c.bf16 %v1896_v8, %v1893_v7  ;;  %1913 = vrot.lane.b32.xlu0 %v4621_v28, %s4096_s12 }
0x13f8   : > { %1911 = vrot.lane.b32.xlu1 %v4623_v36, %s4096_s12  ;;  %3579 = vmatprep.mubr.msk.bf16.mxu0 %vm631_vm4, %v4623_v36  ;;  %s4984_s12 = smov 64  }
0x13fa   : > { %2083 = vrot.lane.b32.xlu0 %v4623_v36, %s4100_s21 }
0x13fc   : > { %2089 = vrot.lane.b32.xlu1 %v4621_v28, %s4099_s20 }
0x1400   : > { %2087 = vrot.lane.b32.xlu1 %v4623_v36, %s4099_s20  ;;  %s4985_s20 = smov 56  }
0x1404   : > { %2085 = vrot.lane.b32.xlu1 %v4621_v28, %s4100_s21  ;;  %s4986_s21 = smov 80  }
0x1468   : > { %v1914_v27 = vpop.permute.xlu0 %1913 }
0x1469   : > { %v1925_v9 = vsel %vm631_vm4, %v1914_v27, 0  ;;  %3691 = vmatprep.subr.msk.bf16.mxu0 %vm631_vm4, %v1914_v27 }
0x146a   : > { %3576 = vmatpush3.bf16.xpose.msra.mxu0 %v1925_v9  ;;  %v1912_v10 = vpop.permute.xlu1 %1911 }
0x146b   : > { %3692 = vmatprep.subr.msk.bf16.mxu0 %vm631_vm4, %v1912_v10  ;;  %v1922_v21 = vsel %vm631_vm4, %v1912_v10, 0 }
0x146c   : > { %v2084_v18 = vpop.permute.xlu0 %2083 }
0x146d   : > { %3595 = vmatprep.mubr.msk.bf16.mxu1 %vm631_vm4, %v2084_v18 }
0x146e   : > { %v2090_v19 = vpop.permute.xlu1 %2089 }
0x146f   : > { %v2101_v20 = vsel %vm631_vm4, %v2090_v19, 0  ;;  %3693 = vmatprep.subr.msk.bf16.mxu1 %vm631_vm4, %v2090_v19 }
0x1470   : > { %3592 = vmatpush3.bf16.xpose.msra.mxu1 %v2101_v20 }
0x1472   : > { %3578 = vmatpush3.bf16.xpose.msra.mxu0 %v1922_v21  ;;  %v2088_v22 = vpop.permute.xlu1 %2087 }
0x1473   : > { %3694 = vmatprep.subr.msk.bf16.mxu1 %vm631_vm4, %v2088_v22  ;;  %v2098_v23 = vsel %vm631_vm4, %v2088_v22, 0 }
0x1476   : > { %v2086_v24 = vpop.permute.xlu1 %2085 }
0x1478   : > { %3594 = vmatpush3.bf16.xpose.msra.mxu1 %v2098_v23 }
0x1479   : > { %3580 = vmatmul.mubr.msk.bf16.vlgmr.msra.gmra.mxu0 %vm631_vm4, %v4621_v28 }
0x147f   : > { %3596 = vmatmul.mubr.msk.bf16.vlgmr.msra.gmra.mxu1 %vm631_vm4, %v2086_v24 }
0x1539   : > { %v3581_v29 = vpop.f32.mrf.mxu0 }
0x153a   : > { %v1970_v38 = vadd.f32 %v3581_v29, %v4329_v56 }
0x153b   : > { %v1961_v34 = vpop.f32.mrf.mxu0 }
0x153c   : > { %v1962_v35 = vadd.f32 %v1961_v34, %v4329_v56  ;;  %v1982_v61 = vsel %vm482_vm2, %v1970_v38, -inf }
0x153d   : > { %v3582_v37 = vpop.f32.mrf.mxu0 }
0x153e   : > { %v1976_v0 = vsel %vm482_vm2, %v1962_v35, -inf  ;;  %v1973_v42 = vadd.f32 %v3582_v37, %v4329_v56 }
0x153f   : > { %v1964_v39 = vpop.f32.mrf.mxu0  ;;  %v3597_v40 = vpop.f32.mrf.mxu1  ;;  %1977 = vmax.xlane.f32.xlu0 %v1976_v0 }
0x1540   : > { %v1965_v62 = vadd.f32 %v1964_v39, %v4329_v56  ;;  %v1985_v14 = vsel %vm482_vm2, %v1973_v42, -inf  ;;  %v2146_v51 = vadd.f32 %v3597_v40, %v4329_v56 }
0x1541   : > { %v2137_v48 = vpop.f32.mrf.mxu1 }
0x1542   : > { %v1979_v43 = vsel %vm482_vm2, %v1965_v62, -inf  ;;  %v4659_v11 = vadd.f32 %v2137_v48, %v4329_v56  ;;  %v2158_v55 = vsel %vm482_vm2, %v2146_v51, -inf }
0x1543   : > { %v3598_v12 = vpop.f32.mrf.mxu1  ;;  %1980 = vmax.xlane.f32.xlu1 %v1979_v43  ;;  %1983 = vmax.xlane.f32.xlu0 %v1982_v61 }
0x1544   : > { %v2149_v45 = vadd.f32 %v3598_v12, %v4329_v56  ;;  %v2152_v52 = vsel %vm482_vm2, %v4659_v11, -inf }
0x1545   : > { %v2140_v17 = vpop.f32.mrf.mxu1 }
0x1546   : > { %v2141_v13 = vadd.f32 %v2140_v17, %v4329_v56  ;;  %v2161_v53 = vsel %vm482_vm2, %v2149_v45, -inf }
0x1547   : > { %1986 = vmax.xlane.f32.xlu0 %v1985_v14 }
0x1548   : > { %v2155_v47 = vsel %vm482_vm2, %v2141_v13, -inf }
0x1549   : > { %2156 = vmax.xlane.f32.xlu1 %v2155_v47 }
0x154b   : > { %2153 = vmax.xlane.f32.xlu0 %v2152_v52 }
0x154d   : > { %2162 = vmax.xlane.f32.xlu1 %v2161_v53 }
0x154f   : > { %2159 = vmax.xlane.f32.xlu0 %v2158_v55 }
0x155e   : > { %2022 = vrot.lane.b32.xlu1 %v4623_v36, %s4984_s12 }
0x1562   : > { %2200 = vrot.lane.b32.xlu1 %v4621_v28, %s4985_s20 }
0x15c8   : > { %v1978_v58 = vpop.xlane.xlu0 %1977 }
0x15c9   : > { %v1988_v8 = vsub.f32 %v1962_v35, %v1978_v58 }
0x15cb   : > { %v1992_v21 = vmul.f32 1.442695, %v1988_v8 }
0x15cc   : > { %v1984_v59 = vpop.xlane.xlu0 %1983  ;;  %v1981_v63 = vpop.xlane.xlu1 %1980 }
0x15cd   : > { %v1990_v60 = vsub.f32 %v1970_v38, %v1984_v59  ;;  %v1989_v4 = vsub.f32 %v1965_v62, %v1981_v63 }
0x15cf   : > { %v1996_v1 = vmul.f32 1.442695, %v1990_v60  ;;  %v1994_v9 = vmul.f32 1.442695, %v1989_v4 }
0x15d0   : > { %v1987_v2 = vpop.xlane.xlu0 %1986 }
0x15d1   : > { %v1991_v31 = vsub.f32 %v1973_v42, %v1987_v2  ;;  %3945 = vpow2.f32 %v1996_v1 }
0x15d2   : > { %v2157_v54 = vpop.xlane.xlu1 %2156 }
0x15d3   : > { %v1998_v3 = vmul.f32 1.442695, %v1991_v31  ;;  %v2165_v18 = vsub.f32 %v2141_v13, %v2157_v54 }
0x15d4   : > { %v2154_v50 = vpop.xlane.xlu0 %2153 }
0x15d5   : > { %3947 = vpow2.f32 %v1998_v3  ;;  %v2170_v23 = vmul.f32 1.442695, %v2165_v18  ;;  %v2164_v12 = vsub.f32 %v4659_v11, %v2154_v50 }
0x15d6   : > { %v2163_v7 = vpop.xlane.xlu1 %2162 }
0x15d7   : > { %v2167_v27 = vsub.f32 %v2149_v45, %v2163_v7  ;;  %v2168_v17 = vmul.f32 1.442695, %v2164_v12 }
0x15d8   : > { %v2160_v10 = vpop.xlane.xlu0 %2159 }
0x15d9   : > { %v2174_v19 = vmul.f32 1.442695, %v2167_v27  ;;  %v2166_v20 = vsub.f32 %v2146_v51, %v2160_v10 }
0x15da   : > { %v2023_v45 = vpop.permute.xlu1 %2022 }
0x15db   : > { %3949 = vpow2.f32 %v2174_v19  ;;  %v2172_v22 = vmul.f32 1.442695, %v2166_v20 }
0x15dc   : > { %3951 = vpow2.f32 %v1994_v9 }
0x15dd   : > { %3953 = vpow2.f32 %v2172_v22 }
0x15de   : > { %v3946_v24 = vpop.eup %3945  ;;  %3955 = vpow2.f32 %v1992_v21  ;;  %v2201_v47 = vpop.permute.xlu1 %2200 }
0x15df   : > { %v2006_v29 = vsel %vm482_vm2, %v3946_v24, 0.0  ;;  %3957 = vpow2.f32 %v2170_v23 }
0x15e0   : > { %2007 = vadd.xlane.f32.xlu0 %v2006_v29  ;;  %3959 = vpow2.f32 %v2168_v17 }
0x15e2   : > { %v3948_v34 = vpop.eup %3947 }
0x15e3   : > { %v2009_v35 = vsel %vm482_vm2, %v3948_v34, 0.0 }
0x15e4   : > { %2010 = vadd.xlane.f32.xlu1 %v2009_v35 }
0x15e8   : > { %v4676_v37 = vpop.eup %3949 }
0x15e9   : > { %v3952_v38 = vpop.eup %3951  ;;  %v2185_v0 = vsel %vm482_vm2, %v4676_v37, 0.0 }
0x15ea   : > { %v4680_v39 = vpop.eup %3953  ;;  %2186 = vadd.xlane.f32.xlu1 %v2185_v0  ;;  %v2003_v48 = vsel %vm482_vm2, %v3952_v38, 0.0 }
0x15eb   : > { %v2182_v40 = vsel %vm482_vm2, %v4680_v39, 0.0  ;;  %v3956_v62 = vpop.eup %3955 }
0x15ec   : > { %2183 = vadd.xlane.f32.xlu0 %v2182_v40  ;;  %v4685_v42 = vpop.eup %3957  ;;  %v2000_v43 = vsel %vm482_vm2, %v3956_v62, 0.0 }
0x15ed   : > { %v2179_v61 = vsel %vm482_vm2, %v4685_v42, 0.0  ;;  %v3960_v13 = vpop.eup %3959 }
0x15ee   : > { %2004 = vadd.xlane.f32.xlu1 %v2003_v48  ;;  %v2176_v14 = vsel %vm482_vm2, %v3960_v13, 0.0 }
0x15f0   : > { %2001 = vadd.xlane.f32.xlu0 %v2000_v43 }
0x15f2   : > { %2180 = vadd.xlane.f32.xlu1 %v2179_v61 }
0x1603   : > { %2198 = vrot.lane.b32.xlu1 %v4623_v36, %s4985_s20  ;;  %s351_s20 = scalar_lea.vmem [#allocation2], %s350_s27 }
0x1606   : > { %2024 = vrot.lane.b32.xlu0 %v4621_v28, %s4984_s12  ;;  %s3327_s12 = sshll.u32 %s4188_s17, 4  ;;  %s4111_s17 = smov [#allocation2]  }
0x1607   : > { %2263 = vrot.lane.b32.xlu1 %v4623_v36, %s4986_s21 }
0x160b   : > { %2261 = vrot.lane.b32.xlu1 %v4621_v28, %s4987_s18 }
0x1625   : > { %2177 = vadd.xlane.f32.xlu0 %v2176_v14 }
0x163b   : > { %2265 = vrot.lane.b32.xlu0 %v4621_v28, %s4986_s21  ;;  %s3157_s21 = sshll.u32 %s351_s20, 4  ;;  %s4910_s21 = int_to_ptr.vmem [resolvable:$true] %s3157_s21 }
0x163f   : > { %2259 = vrot.lane.b32.xlu0 %v4623_v36, %s4987_s18  ;;  %s4994_s18 = smov 24  }
0x1669   : > { %v2008_v52 = vpop.xlane.xlu0 %2007 }
0x166d   : > { %v2011_v51 = vpop.xlane.xlu1 %2010 }
0x166e   : > { %3961 = vrcp.f32 %v2011_v51 }
0x1673   : > { %v2187_v53 = vpop.xlane.xlu1 %2186 }
0x1675   : > { %v2184_v55 = vpop.xlane.xlu0 %2183 }
0x1677   : > { %v2005_v11 = vpop.xlane.xlu1 %2004 }
0x1678   : > { %3963 = vrcp.f32 %v2005_v11 }
0x1679   : > { %3965 = vrcp.f32 %v2008_v52  ;;  %v2002_v58 = vpop.xlane.xlu0 %2001 }
0x167a   : > { %3967 = vrcp.f32 %v2002_v58 }
0x167b   : > { %v3962_v60 = vpop.eup %3961  ;;  %v2181_v54 = vpop.xlane.xlu1 %2180  ;;  %3969 = vrcp.f32 %v2184_v55 }
0x167c   : > { %v2019_v31 = vmul.f32 %v3962_v60, %v3948_v34  ;;  %3971 = vrcp.f32 %v2181_v54 }
0x167d   : > { %v2025_v59 = vpop.permute.xlu0 %2024  ;;  %3973 = vrcp.f32 %v2187_v53 }
0x167e   : > { %3583 = vmatprep.subr.bf16.mxu0 %v2025_v59 }
0x167f   : > { %3584 = vmatpush3.bf16.msra.mxu0 %v2025_v59  ;;  %v2199_v27 = vpop.permute.xlu1 %2198 }
0x1680   : > { %3585 = vmatprep.subr.bf16.mxu0 %v2023_v45 }
0x1683   : > { %3586 = vmatpush3.bf16.msra.mxu0 %v2023_v45  ;;  %v2264_v40 = vpop.permute.xlu1 %2263 }
0x1684   : > { %3599 = vmatprep.subr.bf16.mxu0 %v2201_v47 }
0x1685   : > { %v3964_v63 = vpop.eup %3963 }
0x1686   : > { %v3966_v1 = vpop.eup %3965  ;;  %v2017_v4 = vmul.f32 %v3964_v63, %v3952_v38 }
0x1687   : > { %v3968_v2 = vpop.eup %3967  ;;  %v2018_v50 = vmul.f32 %v3966_v1, %v3946_v24 }
0x1688   : > { %v2016_v3 = vmul.f32 %v3968_v2, %v3956_v62  ;;  %v3970_v18 = vpop.eup %3969  ;;  %v2262_v62 = vpop.permute.xlu1 %2261 }
0x1689   : > { %v2021_v8 = vpack.c.bf16 %v2019_v31, %v2018_v50  ;;  %v3972_v19 = vpop.eup %3971  ;;  %v2194_v22 = vmul.f32 %v3970_v18, %v4680_v39  ;;  %v2274_v39 = vsel %vm631_vm4, %v2264_v40, 0 }
0x168a   : > { %v2020_v7 = vpack.c.bf16 %v2017_v4, %v2016_v3  ;;  %v3974_v20 = vpop.eup %3973  ;;  %v2193_v24 = vmul.f32 %v3972_v19, %v4685_v42 }
0x168b   : > { %v2195_v29 = vmul.f32 %v3974_v20, %v4676_v37 }
0x168c   : > { %3587 = vmatprep.mubr.msk.bf16.mxu0 %vm482_vm2, %v2020_v7 }
0x168d   : > { %3588 = vmatmul.mubr.msk.bf16.vlgmr.msra.gmra.mxu0 %vm482_vm2, %v2021_v8  ;;  %v2197_v35 = vpack.c.bf16 %v2195_v29, %v2194_v22 }
0x168e   : > { %3600 = vmatpush3.bf16.msra.mxu0 %v2201_v47 }
0x168f   : > { %3601 = vmatprep.subr.bf16.mxu0 %v2199_v27 }
0x1692   : > { %3602 = vmatpush3.bf16.msra.mxu0 %v2199_v27 }
0x16ae   : > { %v2178_v9 = vpop.xlane.xlu0 %2177 }
0x16af   : > { %3975 = vrcp.f32 %v2178_v9 }
0x16b2   : > { %v2266_v10 = vpop.permute.xlu0 %2265 }
0x16b3   : > { %3695 = vmatprep.subr.msk.bf16.mxu0 %vm631_vm4, %v2266_v10  ;;  %v2277_v38 = vsel %vm631_vm4, %v2266_v10, 0 }
0x16b6   : > { %v2260_v0 = vpop.permute.xlu0 %2259 }
0x16bc   : > { %v3976_v21 = vpop.eup %3975 }
0x16bd   : > { %v2192_v23 = vmul.f32 %v3976_v21, %v3960_v13 }
0x16bf   : > { %v2196_v34 = vpack.c.bf16 %v2193_v24, %v2192_v23 }
0x16c1   : > { %3603 = vmatprep.mubr.msk.bf16.mxu0 %vm482_vm2, %v2196_v34 }
0x16c2   : > { %3604 = vmatmul.mubr.msk.bf16.vlgmr.msra.gmra.mxu0 %vm482_vm2, %v2197_v35 }
0x16c3   : > { %3608 = vmatpush3.bf16.xpose.msra.mxu0 %v2277_v38  ;;  %3611 = vmatprep.mubr.msk.bf16.mxu0 %vm631_vm4, %v2260_v0 }
0x16c4   : > { %3696 = vmatprep.subr.msk.bf16.mxu0 %vm631_vm4, %v2264_v40 }
0x16cb   : > { %3610 = vmatpush3.bf16.xpose.msra.mxu0 %v2274_v39 }
0x16d2   : > { %3612 = vmatmul.mubr.msk.bf16.vlgmr.msra.gmra.mxu0 %vm631_vm4, %v2262_v62 }
0x174d   : > { %v4717_v37 = vpop.f32.mrf.mxu0 }
0x174f   : > { %v4719_v48 = vpop.f32.mrf.mxu0 }
0x1751   : > { %v4721_v42 = vpop.f32.mrf.mxu0 }
0x1753   : > { %v4723_v43 = vpop.f32.mrf.mxu0 }
0x1782   : > { %v4725_v61 = vpop.f32.mrf.mxu0 }
0x1784   : > { %v4727_v12 = vpop.f32.mrf.mxu0 }
0x1786   : > { %v4729_v17 = vpop.f32.mrf.mxu0 }
0x1787   : > { %v3790_v13 = vpack.i.bf16 %v4729_v17, %v4725_v61 }
0x1788   : > { %v4733_v14 = vpop.f32.mrf.mxu0 }
0x1789   : > { %v3785_v45 = vpack.i.bf16 %v4733_v14, %v4727_v12 }
0x1792   : > { %v3613_v47 = vpop.f32.mrf.mxu0 }
0x1793   : > { %v2322_v55 = vadd.f32 %v3613_v47, %v4329_v56 }
0x1794   : > { %v2313_v51 = vpop.f32.mrf.mxu0 }
0x1795   : > { %v2314_v52 = vadd.f32 %v2313_v51, %v4329_v56  ;;  %v2334_v1 = vsel %vm482_vm2, %v2322_v55, -inf }
0x1796   : > { %v3614_v53 = vpop.f32.mrf.mxu0 }
0x1797   : > { %v2328_v11 = vsel %vm482_vm2, %v2314_v52, -inf  ;;  %v2325_v60 = vadd.f32 %v3614_v53, %v4329_v56 }
0x1798   : > { %v2316_v58 = vpop.f32.mrf.mxu0  ;;  %2329 = vmax.xlane.f32.xlu0 %v2328_v11 }
0x1799   : > { %v2317_v59 = vadd.f32 %v2316_v58, %v4329_v56  ;;  %v2337_v2 = vsel %vm482_vm2, %v2325_v60, -inf }
0x179b   : > { %v2331_v63 = vsel %vm482_vm2, %v2317_v59, -inf }
0x179c   : > { %2332 = vmax.xlane.f32.xlu1 %v2331_v63  ;;  %2335 = vmax.xlane.f32.xlu0 %v2334_v1 }
0x17a0   : > { %2338 = vmax.xlane.f32.xlu0 %v2337_v2 }
0x17ad   : > { %2374 = vrot.lane.b32.xlu1 %v4623_v36, %s4988_s25 }
0x1821   : > { %v2330_v31 = vpop.xlane.xlu0 %2329 }
0x1822   : > { %v2340_v54 = vsub.f32 %v2314_v52, %v2330_v31 }
0x1824   : > { %v2344_v27 = vmul.f32 1.442695, %v2340_v54 }
0x1825   : > { %v2333_v3 = vpop.xlane.xlu1 %2332  ;;  %v2336_v4 = vpop.xlane.xlu0 %2335 }
0x1826   : > { %v2342_v50 = vsub.f32 %v2322_v55, %v2336_v4  ;;  %v2341_v7 = vsub.f32 %v2317_v59, %v2333_v3 }
0x1828   : > { %v2348_v8 = vmul.f32 1.442695, %v2342_v50  ;;  %v2346_v18 = vmul.f32 1.442695, %v2341_v7 }
0x1829   : > { %v2339_v9 = vpop.xlane.xlu0 %2338  ;;  %v2375_v38 = vpop.permute.xlu1 %2374 }
0x182a   : > { %v2343_v10 = vsub.f32 %v2325_v60, %v2339_v9  ;;  %3977 = vpow2.f32 %v2348_v8 }
0x182b   : > { %3979 = vpow2.f32 %v2344_v27 }
0x182c   : > { %v2350_v19 = vmul.f32 1.442695, %v2343_v10 }
0x182e   : > { %3981 = vpow2.f32 %v2350_v19 }
0x182f   : > { %3983 = vpow2.f32 %v2346_v18 }
0x1837   : > { %v3978_v20 = vpop.eup %3977 }
0x1838   : > { %v2358_v21 = vsel %vm482_vm2, %v3978_v20, 0.0  ;;  %v3980_v22 = vpop.eup %3979 }
0x1839   : > { %2359 = vadd.xlane.f32.xlu0 %v2358_v21  ;;  %v2352_v34 = vsel %vm482_vm2, %v3980_v22, 0.0 }
0x183b   : > { %v3982_v23 = vpop.eup %3981 }
0x183c   : > { %v2361_v24 = vsel %vm482_vm2, %v3982_v23, 0.0  ;;  %v3984_v29 = vpop.eup %3983 }
0x183d   : > { %2362 = vadd.xlane.f32.xlu1 %v2361_v24  ;;  %2353 = vadd.xlane.f32.xlu0 %v2352_v34  ;;  %v2355_v35 = vsel %vm482_vm2, %v3984_v29, 0.0 }
0x1841   : > { %2356 = vadd.xlane.f32.xlu1 %v2355_v35 }
0x1852   : > { %2441 = vrot.lane.b32.xlu1 %v4621_v28, %s4989_s30 }
0x1853   : > { %2376 = vrot.lane.b32.xlu0 %v4621_v28, %s4988_s25 }
0x1856   : > { %2439 = vrot.lane.b32.xlu1 %v4623_v36, %s4989_s30  ;;  %s4908_s30 = scalar_lea.hbm %s4959_s10, %s3327_s12 }
0x1857   : > { %2435 = vrot.lane.b32.xlu0 %v4623_v36, %s4990_s11 }
0x185a   : > { %2437 = vrot.lane.b32.xlu1 %v4621_v28, %s4990_s11  ;;  %s3145_s11 = scalar_lea.sflag [#allocation3], %s350_s27 }
0x18c2   : > { %v2360_v0 = vpop.xlane.xlu0 %2359 }
0x18c6   : > { %v2363_v40 = vpop.xlane.xlu1 %2362  ;;  %v2354_v39 = vpop.xlane.xlu0 %2353 }
0x18c7   : > { %3985 = vrcp.f32 %v2363_v40 }
0x18c8   : > { %3987 = vrcp.f32 %v2354_v39 }
0x18c9   : > { %3989 = vrcp.f32 %v2360_v0 }
0x18ca   : > { %v2357_v62 = vpop.xlane.xlu1 %2356  ;;  %v2377_v47 = vpop.permute.xlu0 %2376 }
0x18cb   : > { %3991 = vrcp.f32 %v2357_v62  ;;  %3615 = vmatprep.subr.bf16.mxu1 %v2377_v47 }
0x18cc   : > { %3616 = vmatpush3.bf16.msra.mxu1 %v2377_v47 }
0x18cd   : > { %3617 = vmatprep.subr.bf16.mxu1 %v2375_v38 }
0x18ce   : > { %v2442_v51 = vpop.permute.xlu1 %2441  ;;  %v2436_v54 = vpop.permute.xlu0 %2435 }
0x18cf   : > { %v2453_v31 = vsel %vm631_vm4, %v2442_v51, 0 }
0x18d0   : > { %3618 = vmatpush3.bf16.msra.mxu1 %v2375_v38 }
0x18d1   : > { %3697 = vmatprep.subr.msk.bf16.mxu1 %vm631_vm4, %v2442_v51 }
0x18d2   : > { %v2440_v3 = vpop.permute.xlu1 %2439 }
0x18d3   : > { %v2450_v4 = vsel %vm631_vm4, %v2440_v3, 0 }
0x18d4   : > { %v3986_v52 = vpop.eup %3985 }
0x18d5   : > { %v3988_v53 = vpop.eup %3987  ;;  %v2371_v58 = vmul.f32 %v3986_v52, %v3982_v23 }
0x18d6   : > { %v3990_v55 = vpop.eup %3989  ;;  %v2368_v59 = vmul.f32 %v3988_v53, %v3980_v22  ;;  %v2438_v50 = vpop.permute.xlu1 %2437 }
0x18d7   : > { %v2370_v63 = vmul.f32 %v3990_v55, %v3978_v20 }
0x18d8   : > { %v3992_v11 = vpop.eup %3991 }
0x18d9   : > { %v2369_v60 = vmul.f32 %v3992_v11, %v3984_v29  ;;  %v2373_v2 = vpack.c.bf16 %v2371_v58, %v2370_v63 }
0x18db   : > { %v2372_v1 = vpack.c.bf16 %v2369_v60, %v2368_v59 }
0x18dd   : > { %3619 = vmatprep.mubr.msk.bf16.mxu1 %vm482_vm2, %v2372_v1 }
0x18de   : > { %3620 = vmatmul.mubr.msk.bf16.vlgmr.msra.gmra.mxu1 %vm482_vm2, %v2373_v2 }
0x18df   : > { %3624 = vmatpush3.bf16.xpose.msra.mxu1 %v2453_v31  ;;  %3627 = vmatprep.mubr.msk.bf16.mxu1 %vm631_vm4, %v2436_v54 }
0x18e0   : > { %3698 = vmatprep.subr.msk.bf16.mxu1 %vm631_vm4, %v2440_v3 }
0x18e7   : > { %3626 = vmatpush3.bf16.xpose.msra.mxu1 %v2450_v4 }
0x18ee   : > { %3628 = vmatmul.mubr.msk.bf16.vlgmr.msra.gmra.mxu1 %vm631_vm4, %v2438_v50 }
0x199e   : > { %v3621_v7 = vpop.f32.mrf.mxu1 }
0x19a0   : > { %v2420_v8 = vpop.f32.mrf.mxu1 }
0x19a2   : > { %v3622_v27 = vpop.f32.mrf.mxu1 }
0x19a3   : > { %v3800_v9 = vpack.i.bf16 %v3622_v27, %v3621_v7 }
0x19a4   : > { %v2423_v10 = vpop.f32.mrf.mxu1 }
0x19a5   : > { %v3795_v18 = vpack.i.bf16 %v2423_v10, %v2420_v8 }
0x19ae   : > { %v3629_v19 = vpop.f32.mrf.mxu1 }
0x19af   : > { %v2498_v23 = vadd.f32 %v3629_v19, %v4329_v56 }
0x19b0   : > { %v2489_v20 = vpop.f32.mrf.mxu1 }
0x19b1   : > { %v2490_v21 = vadd.f32 %v2489_v20, %v4329_v56  ;;  %v2510_v0 = vsel %vm482_vm2, %v2498_v23, -inf }
0x19b2   : > { %v3630_v22 = vpop.f32.mrf.mxu1 }
0x19b3   : > { %v2504_v24 = vsel %vm482_vm2, %v2490_v21, -inf  ;;  %v2501_v35 = vadd.f32 %v3630_v22, %v4329_v56  ;;  %v3836_v22 = vld [vmem:[%s4954_s5 + $0x10] sm:$0xff]  }
0x19b4   : > { %v2492_v29 = vpop.f32.mrf.mxu1  ;;  %2505 = vmax.xlane.f32.xlu0 %v2504_v24 }
0x19b5   : > { %v2493_v34 = vadd.f32 %v2492_v29, %v4329_v56  ;;  %v2513_v40 = vsel %vm482_vm2, %v2501_v35, -inf }
0x19b7   : > { %v2507_v38 = vsel %vm482_vm2, %v2493_v34, -inf }
0x19b8   : > { %2508 = vmax.xlane.f32.xlu1 %v2507_v38  ;;  %2511 = vmax.xlane.f32.xlu0 %v2510_v0 }
0x19bc   : > { %2514 = vmax.xlane.f32.xlu0 %v2513_v40 }
0x1a3d   : > { %v2506_v39 = vpop.xlane.xlu0 %2505 }
0x1a3e   : > { %v2516_v62 = vsub.f32 %v2490_v21, %v2506_v39  ;;  %v3835_v21 = vld [vmem:[%s4954_s5 + $0x18] sm:$0xff]  }
0x1a40   : > { %v2520_v11 = vmul.f32 1.442695, %v2516_v62 }
0x1a41   : > { %v2509_v47 = vpop.xlane.xlu1 %2508  ;;  %v2512_v51 = vpop.xlane.xlu0 %2511 }
0x1a42   : > { %v2518_v52 = vsub.f32 %v2498_v23, %v2512_v51  ;;  %v2517_v53 = vsub.f32 %v2493_v34, %v2509_v47 }
0x1a44   : > { %v2524_v55 = vmul.f32 1.442695, %v2518_v52  ;;  %v2522_v56 = vmul.f32 1.442695, %v2517_v53 }
0x1a45   : > { %v2515_v58 = vpop.xlane.xlu0 %2514 }
0x1a46   : > { %v2519_v59 = vsub.f32 %v2501_v35, %v2515_v58  ;;  %3993 = vpow2.f32 %v2524_v55 }
0x1a47   : > { %3995 = vpow2.f32 %v2520_v11 }
0x1a48   : > { %v2526_v60 = vmul.f32 1.442695, %v2519_v59 }
0x1a4a   : > { %3997 = vpow2.f32 %v2526_v60 }
0x1a4b   : > { %3999 = vpow2.f32 %v2522_v56 }
0x1a53   : > { %v3994_v63 = vpop.eup %3993 }
0x1a54   : > { %v2534_v1 = vsel %vm482_vm2, %v3994_v63, 0.0  ;;  %v3996_v2 = vpop.eup %3995 }
0x1a55   : > { %2535 = vadd.xlane.f32.xlu0 %v2534_v1  ;;  %v2528_v4 = vsel %vm482_vm2, %v3996_v2, 0.0 }
0x1a57   : > { %v3998_v31 = vpop.eup %3997 }
0x1a58   : > { %v2537_v54 = vsel %vm482_vm2, %v3998_v31, 0.0  ;;  %v4000_v3 = vpop.eup %3999 }
0x1a59   : > { %2538 = vadd.xlane.f32.xlu1 %v2537_v54  ;;  %2529 = vadd.xlane.f32.xlu0 %v2528_v4  ;;  %v2531_v50 = vsel %vm482_vm2, %v4000_v3, 0.0 }
0x1a5d   : > { %2532 = vadd.xlane.f32.xlu1 %v2531_v50 }
0x1a6e   : > { %2550 = vrot.lane.b32.xlu1 %v4623_v36, %s4991_s28 }
0x1a6f   : > { %2552 = vrot.lane.b32.xlu0 %v4621_v28, %s4991_s28  ;;  %s4032_s28 = scalar_lea.vmem %s4910_s21, 16 }
0x1a70   : > { %p4033_p11 = scmp.ne.s32.totalorder %s4910_s21, %s4032_s28 }
0x1a72   : > { %3786 = vrot.lane.b32.xlu1 %v3785_v45, %s4992_s29  ;;  %p4034_p12 = pnand %p4033_p11, %p4205_p5 }
0x1a73   : > { %3796 = vrot.lane.b32.xlu0 %v3795_v18, %s4993_s26 }
0x1a74   : > { %p4035_p13 = pneg %p4034_p12 }
0x1a76   : > { %3791 = vrot.lane.b32.xlu1 %v3790_v13, %s4992_s29  ;;  %s4036_s29 = sshll.u32 %s4111_s17, 4  ;;  %s4037_s29 = int_to_ptr.vmem [resolvable:$false] %s4036_s29 }
0x1a77   : > { %p4039_p0 = scmp.lt.s32.totalorder %s4910_s21, %s4037_s29 }
0x1a7a   : > { %3801 = vrot.lane.b32.xlu1 %v3800_v9, %s4993_s26  ;;  %s4038_s26 = scalar_lea.vmem %s4037_s29, 32 }
0x1a7b   : > { %p4040_p1 = scmp.lt.s32.totalorder %s4038_s26, %s4032_s28 }
0x1a7d   : > { %p4041_p2 = por %p4040_p1, %p4039_p0 }
0x1a7f   : > { %p4042_p3 = pnand %p4041_p2, %p4035_p13 }
0x1ade   : > { %v2536_v7 = vpop.xlane.xlu0 %2535 }
0x1ae2   : > { %v2539_v8 = vpop.xlane.xlu1 %2538  ;;  %v2530_v36 = vpop.xlane.xlu0 %2529 }
0x1ae3   : > { %4001 = vrcp.f32 %v2539_v8 }
0x1ae4   : > { %4003 = vrcp.f32 %v2530_v36 }
0x1ae5   : > { %4005 = vrcp.f32 %v2536_v7 }
0x1ae6   : > { %v2533_v28 = vpop.xlane.xlu1 %2532  ;;  %v2553_v27 = vpop.permute.xlu0 %2552 }
0x1ae7   : > { %4007 = vrcp.f32 %v2533_v28  ;;  %3631 = vmatprep.subr.bf16.mxu0 %v2553_v27 }
0x1ae8   : > { %3632 = vmatpush3.bf16.msra.mxu0 %v2553_v27 }
0x1aea   : > { %v2551_v12 = vpop.permute.xlu1 %2550  ;;  %v3797_v51 = vpop.permute.xlu0 %3796 }
0x1aeb   : > { %3633 = vmatprep.subr.bf16.mxu0 %v2551_v12  ;;  %v3799_v1 = vunpack.i.h.bf16 %v3797_v51 }
0x1aec   : > { %3634 = vmatpush3.bf16.msra.mxu0 %v2551_v12 }
0x1aed   : > { %3639 = vmatprep.subr.bf16.mxu0 %v3835_v21 }
0x1aee   : > { %v3787_v0 = vpop.permute.xlu1 %3786 }
0x1aef   : > { %v3789_v62 = vunpack.i.h.bf16 %v3787_v0  ;;  %v3788_v47 = vunpack.i.l.bf16 %v3787_v0 }
0x1af0   : > { %v4002_v14 = vpop.eup %4001 }
0x1af1   : > { %v4004_v45 = vpop.eup %4003  ;;  %v2547_v13 = vmul.f32 %v4002_v14, %v3998_v31  ;;  %v2660_v59 = vsel %vm631_vm4, %v4723_v43, %v3789_v62  ;;  %v2659_v56 = vsel %vm631_vm4, %v4719_v48, %v3788_v47  ;;  %v2681_v14 = vrot.slane %v4617_v33, %v4253_v32 }
0x1af2   : > { %v4006_v61 = vpop.eup %4005  ;;  %v2544_v9 = vmul.f32 %v4004_v45, %v3996_v2  ;;  %v3792_v40 = vpop.permute.xlu1 %3791  ;;  %v3798_v2 = vunpack.i.l.bf16 %v3797_v51  ;;  %v2664_v28 = vsel %vm1380_vm6, %v2660_v59, %v3799_v1  ;;  %v3838_v1 = vld [vmem:[%s4955_s6 + $0x10] sm:$0xff]  }
0x1af3   : > { %v2546_v18 = vmul.f32 %v4006_v61, %v3994_v63  ;;  %v3794_v52 = vunpack.i.h.bf16 %v3792_v40  ;;  %v3793_v53 = vunpack.i.l.bf16 %v3792_v40 }
0x1af4   : > { %v4008_v17 = vpop.eup %4007  ;;  %v2663_v36 = vsel %vm1380_vm6, %v2659_v56, %v3798_v2 }
0x1af5   : > { %v2545_v10 = vmul.f32 %v4008_v17, %v4000_v3  ;;  %v2549_v20 = vpack.c.bf16 %v2547_v13, %v2546_v18  ;;  %v2662_v31 = vsel %vm631_vm4, %v4721_v42, %v3794_v52  ;;  %v2661_v54 = vsel %vm631_vm4, %v4717_v37, %v3793_v53 }
0x1af6   : > { %v3802_v39 = vpop.permute.xlu1 %3801 }
0x1af7   : > { %v2548_v19 = vpack.c.bf16 %v2545_v10, %v2544_v9  ;;  %v3804_v55 = vunpack.i.h.bf16 %v3802_v39  ;;  %v3803_v11 = vunpack.i.l.bf16 %v3802_v39 }
0x1af9   : > { %3635 = vmatprep.mubr.msk.bf16.mxu0 %vm482_vm2, %v2548_v19  ;;  %v2665_v4 = vsel %vm1380_vm6, %v2661_v54, %v3803_v11  ;;  %v2666_v50 = vsel %vm1380_vm6, %v2662_v31, %v3804_v55 }
0x1afa   : > { %3636 = vmatmul.mubr.msk.bf16.vlgmr.msra.gmra.mxu0 %vm482_vm2, %v2549_v20 }
0x1afb   : > { %3640 = vmatpush3.bf16.msra.mxu0 %v3835_v21 }
0x1afc   : > { %3641 = vmatprep.subr.bf16.mxu0 %v3836_v22 }
0x1aff   : > { %3642 = vmatpush3.bf16.msra.mxu0 %v3836_v22 }
0x1bba   : > { %v3637_v23 = vpop.f32.mrf.mxu0 }
0x1bbc   : > { %v2596_v24 = vpop.f32.mrf.mxu0 }
0x1bbe   : > { %v3638_v29 = vpop.f32.mrf.mxu0 }
0x1bbf   : > { %v3810_v34 = vpack.i.bf16 %v3638_v29, %v3637_v23 }
0x1bc0   : > { %v2599_v35 = vpop.f32.mrf.mxu0 }
0x1bc1   : > { %v3805_v38 = vpack.i.bf16 %v2599_v35, %v2596_v24  ;;  %3811 = vrot.lane.b32.xlu1 %v3810_v34, %s4994_s18 }
0x1bc3   : > { %3806 = vrot.lane.b32.xlu0 %v3805_v38, %s4994_s18 }
0x1c33   : > { %v3812_v58 = vpop.permute.xlu1 %3811 }
0x1c34   : > { %v3814_v60 = vunpack.i.h.bf16 %v3812_v58  ;;  %v3813_v63 = vunpack.i.l.bf16 %v3812_v58 }
0x1c35   : > { %v3807_v3 = vpop.permute.xlu0 %3806 }
0x1c36   : > { %v3809_v7 = vunpack.i.h.bf16 %v3807_v3  ;;  %v3808_v43 = vunpack.i.l.bf16 %v3807_v3  ;;  %v2670_v8 = vsel %vm1385_vm7, %v2666_v50, %v3814_v60  ;;  %v2669_v48 = vsel %vm1385_vm7, %v2665_v4, %v3813_v63  ;;  %v3837_v63 = vld [vmem:[%s4955_s6 + $0x18] sm:$0xff]  }
0x1c37   : > { %v2672_v12 = vpack.c.bf16 %v2670_v8, %v2669_v48  ;;  %3647 = vmatprep.subr.bf16.mxu1 %v3837_v63 }
0x1c38   : > { %v2667_v42 = vsel %vm1385_vm7, %v2663_v36, %v3808_v43  ;;  %v2668_v27 = vsel %vm1385_vm7, %v2664_v28, %v3809_v7  ;;  %3648 = vmatpush3.bf16.msra.mxu1 %v3837_v63 }
0x1c39   : > { %v2671_v37 = vpack.c.bf16 %v2668_v27, %v2667_v42  ;;  %3649 = vmatprep.subr.bf16.mxu1 %v3838_v1  ;;  %v2808_v27 = vrot.slane %v4617_v33, %v4258_v41 }
0x1c3b   : > { %3643 = vmatprep.mubr.msk.bf16.mxu0 %vm482_vm2, %v2671_v37 }
0x1c3c   : > { %3644 = vmatmul.mubr.msk.bf16.vlgmr.msra.gmra.mxu0 %vm482_vm2, %v2672_v12  ;;  %3650 = vmatpush3.bf16.msra.mxu1 %v3838_v1 }
0x1c3d   : > { %3675 = vmatprep.subr.bf16.mxu1 %v4094_v15 }
0x1cfc   : > { %v3645_v45 = vpop.f32.mrf.mxu0 }
0x1cfd   : > { %v2743_v17 = vadd.f32 %v3645_v45, %v2681_v14 }
0x1cfe   : > { %v2734_v61 = vpop.f32.mrf.mxu0 }
0x1cff   : > { %v2735_v13 = vadd.f32 %v2734_v61, %v2681_v14  ;;  %v2751_v19 = vadd.f32 %v2743_v17, %v4607_v49  ;;  %v2816_v17 = vrot.slane %v4617_v33, %v4272_v5  ;;  %v3839_v5 = vld [vmem:[%s4956_s7 + $0x78] sm:$0xff]   ;;  %v3840_v33 = vld [vmem:[%s4956_s7 + $0x70] sm:$0xff]  }
0x1d00   : > { %v3646_v9 = vpop.f32.mrf.mxu0  ;;  %3655 = vmatprep.subr.bf16.mxu0 %v3839_v5 }
0x1d01   : > { %v2749_v10 = vadd.f32 %v2735_v13, %v4600_v30  ;;  %v2746_v20 = vadd.f32 %v3646_v9, %v2681_v14  ;;  %v2759_v29 = vsel %vm482_vm2, %v2751_v19, 0.0  ;;  %3656 = vmatpush3.bf16.msra.mxu0 %v3839_v5 }
0x1d02   : > { %v2737_v18 = vpop.f32.mrf.mxu0  ;;  %3657 = vmatprep.subr.bf16.mxu0 %v3840_v33 }
0x1d03   : > { %v2738_v21 = vadd.f32 %v2737_v18, %v2681_v14  ;;  %v2753_v22 = vsel %vm482_vm2, %v2749_v10, 0.0  ;;  %v2752_v24 = vadd.f32 %v2746_v20, %v4609_v25 }
0x1d04   : > { %2754 = vadd.xlane.f32.xlu0 %v2753_v22 }
0x1d05   : > { %v2750_v23 = vadd.f32 %v2738_v21, %v4602_v57  ;;  %v2762_v30 = vsel %vm482_vm2, %v2752_v24, 0.0  ;;  %3658 = vmatpush3.bf16.msra.mxu0 %v3840_v33 }
0x1d07   : > { %v2756_v32 = vsel %vm482_vm2, %v2750_v23, 0.0 }
0x1d08   : > { %2757 = vadd.xlane.f32.xlu1 %v2756_v32  ;;  %2760 = vadd.xlane.f32.xlu0 %v2759_v29  ;;  %v3841_v29 = vld [vmem:[%s4956_s7 + $0x68] sm:$0xff]  }
0x1d09   : > { %3659 = vmatprep.subr.bf16.mxu0 %v3841_v29 }
0x1d0a   : > { %3660 = vmatpush3.bf16.msra.mxu0 %v3841_v29 }
0x1d0c   : > { %2763 = vadd.xlane.f32.xlu0 %v2762_v30  ;;  %v3842_v30 = vld [vmem:[%s4956_s7 + $0x60] sm:$0xff]  }
0x1d0d   : > { %3661 = vmatprep.subr.bf16.mxu0 %v3842_v30 }
0x1d0e   : > { %3662 = vmatpush3.bf16.msra.mxu0 %v3842_v30 }
0x1d8d   : > { %v2755_v34 = vpop.xlane.xlu0 %2754 }
0x1d8e   : > { %v2765_v49 = vmul.f32 0.03125, %v2755_v34  ;;  %v3843_v34 = vld [vmem:[%s4956_s7 + $0x58] sm:$0xff]  }
0x1d8f   : > { %3663 = vmatprep.subr.bf16.mxu0 %v3843_v34 }
0x1d90   : > { %v2769_v35 = vsub.f32 %v2749_v10, %v2765_v49  ;;  %3664 = vmatpush3.bf16.msra.mxu0 %v3843_v34  ;;  %v3844_v49 = vld [vmem:[%s4956_s7 + $0x50] sm:$0xff]  }
0x1d91   : > { %v2758_v38 = vpop.xlane.xlu1 %2757  ;;  %v2761_v0 = vpop.xlane.xlu0 %2760  ;;  %3665 = vmatprep.subr.bf16.mxu0 %v3844_v49 }
0x1d92   : > { %v2766_v40 = vmul.f32 0.03125, %v2758_v38  ;;  %v2767_v39 = vmul.f32 0.03125, %v2761_v0  ;;  %v2773_v62 = vmul.f32 %v2769_v35, %v2769_v35  ;;  %v3846_v38 = vld [vmem:[%s4956_s7 + $0x40] sm:$0xff]   ;;  %v4030_v0 = vld [vmem:[%s4958_s9 + $0x8] sm:$0xff] }
0x1d94   : > { %v2770_v57 = vsub.f32 %v2750_v23, %v2766_v40  ;;  %v2771_v47 = vsub.f32 %v2751_v19, %v2767_v39  ;;  %v2777_v25 = vsel %vm482_vm2, %v2773_v62, 0.0  ;;  %3666 = vmatpush3.bf16.msra.mxu0 %v3844_v49  ;;  %v2831_v40 = vrot.slane %v4030_v0, %v4275_v6 }
0x1d95   : > { %2778 = vadd.xlane.f32.xlu0 %v2777_v25  ;;  %v2764_v51 = vpop.xlane.xlu0 %2763 }
0x1d96   : > { %v2768_v52 = vmul.f32 0.03125, %v2764_v51  ;;  %v2774_v53 = vmul.f32 %v2770_v57, %v2770_v57  ;;  %v2775_v55 = vmul.f32 %v2771_v47, %v2771_v47 }
0x1d98   : > { %v2772_v11 = vsub.f32 %v2752_v24, %v2768_v52  ;;  %v2780_v58 = vsel %vm482_vm2, %v2774_v53, 0.0  ;;  %v2783_v59 = vsel %vm482_vm2, %v2775_v55, 0.0 }
0x1d99   : > { %2781 = vadd.xlane.f32.xlu1 %v2780_v58  ;;  %2784 = vadd.xlane.f32.xlu0 %v2783_v59 }
0x1d9a   : > { %v2776_v56 = vmul.f32 %v2772_v11, %v2772_v11 }
0x1d9c   : > { %v2786_v60 = vsel %vm482_vm2, %v2776_v56, 0.0 }
0x1d9d   : > { %2787 = vadd.xlane.f32.xlu1 %v2786_v60 }
0x1e1e   : > { %v2779_v2 = vpop.xlane.xlu0 %2778 }
0x1e1f   : > { %v2789_v31 = vmul.f32 0.03125, %v2779_v2 }
0x1e21   : > { %v2793_v54 = vadd.f32 1e-05, %v2789_v31 }
0x1e22   : > { %v2782_v3 = vpop.xlane.xlu1 %2781  ;;  %v2785_v4 = vpop.xlane.xlu0 %2784 }
0x1e23   : > { %4009 = vrsqrt.f32 %v2793_v54  ;;  %v2790_v50 = vmul.f32 0.03125, %v2782_v3  ;;  %v2791_v7 = vmul.f32 0.03125, %v2785_v4 }
0x1e25   : > { %v2794_v43 = vadd.f32 1e-05, %v2790_v50  ;;  %v2795_v8 = vadd.f32 1e-05, %v2791_v7 }
0x1e26   : > { %v2788_v48 = vpop.xlane.xlu1 %2787 }
0x1e27   : > { %4011 = vrsqrt.f32 %v2794_v43  ;;  %v2792_v36 = vmul.f32 0.03125, %v2788_v48 }
0x1e28   : > { %4013 = vrsqrt.f32 %v2795_v8 }
0x1e29   : > { %v2796_v28 = vadd.f32 1e-05, %v2792_v36 }
0x1e2b   : > { %4015 = vrsqrt.f32 %v2796_v28 }
0x1e30   : > { %v4010_v42 = vpop.eup %4009 }
0x1e31   : > { %v2801_v37 = vmul.f32 %v4010_v42, %v2769_v35  ;;  %v3845_v35 = vld [vmem:[%s4956_s7 + $0x48] sm:$0xff]  }
0x1e32   : > { %3667 = vmatprep.subr.bf16.mxu0 %v3845_v35 }
0x1e33   : > { %v2809_v61 = vmul.f32 %v2808_v27, %v2801_v37  ;;  %3668 = vmatpush3.bf16.msra.mxu0 %v3845_v35 }
0x1e34   : > { %v4012_v12 = vpop.eup %4011  ;;  %3669 = vmatprep.subr.bf16.mxu0 %v3846_v38 }
0x1e35   : > { %v4014_v14 = vpop.eup %4013  ;;  %v2802_v45 = vmul.f32 %v4012_v12, %v2770_v57  ;;  %v4848_v19 = vadd.f32 %v2816_v17, %v2809_v61 }
0x1e36   : > { %v2803_v13 = vmul.f32 %v4014_v14, %v2771_v47 }
0x1e37   : > { %v2810_v9 = vmul.f32 %v2808_v27, %v2802_v45  ;;  %3670 = vmatpush3.bf16.msra.mxu0 %v3846_v38 }
0x1e38   : > { %v4016_v10 = vpop.eup %4015  ;;  %v2811_v21 = vmul.f32 %v2808_v27, %v2803_v13 }
0x1e39   : > { %v2804_v18 = vmul.f32 %v4016_v10, %v2772_v11  ;;  %v2818_v20 = vadd.f32 %v2816_v17, %v2810_v9 }
0x1e3a   : > { %v2819_v41 = vadd.f32 %v2816_v17, %v2811_v21 }
0x1e3b   : > { %v2821_v22 = vpack.c.bf16 %v2818_v20, %v4848_v19  ;;  %v2812_v23 = vmul.f32 %v2808_v27, %v2804_v18  ;;  %v2941_v27 = vrot.slane %v4030_v0, %v1656_v16 }
0x1e3d   : > { %3651 = vmatprep.mubr.msk.bf16.mxu1 %vm482_vm2, %v2821_v22  ;;  %v2820_v24 = vadd.f32 %v2816_v17, %v2812_v23 }
0x1e3f   : > { %v2822_v32 = vpack.c.bf16 %v2820_v24, %v2819_v41  ;;  %v3053_v41 = vrot.slane %v4030_v0, %v1813_v46  ;;  %v3847_v46 = vld [vmem:[%s4957_s8 + $0x8] sm:$0xff]  }
0x1e41   : > { %3652 = vmatmul.mubr.msk.bf16.vlgmr.msra.gmra.mxu1 %vm482_vm2, %v2822_v32  ;;  %v3058_v32 = vrot.slane %v4030_v0, %v1821_v44 }
0x1e42   : > { %3679 = vmatprep.mubr.msk.bf16.mxu1 %vm4095_vm1, %v4094_v15  ;;  %3676 = vmatpush3.bf16.msra.mxu1 %v3847_v46 }
0x1e43   : > { %3677 = vmatprep.subr.bf16.mxu1 %v4094_v15 }
0x1e46   : > { %3678 = vmatpush3.bf16.msra.mxu1 %v3848_v26 }
0x1f01   : > { %v3653_v39 = vpop.f32.mrf.mxu1 }
0x1f02   : > { %v2893_v62 = vadd.f32 %v3653_v39, %v2831_v40  ;;  %v4031_v39 = vld [vmem:[%s4951_s2] sm:$0xff] }
0x1f03   : > { %v2884_v57 = vpop.f32.mrf.mxu1  ;;  %v3098_v15 = vrot.slane %v4031_v39, 7 }
0x1f04   : > { %v2885_v47 = vadd.f32 %v2884_v57, %v2831_v40  ;;  %v2905_v25 = vmul.f32 0.70710677, %v2893_v62  ;;  %v2901_v7 = vmul.f32 0.5, %v2893_v62  ;;  %v3075_v62 = vrot.slane %v4031_v39, 5 }
0x1f05   : > { %v3654_v51 = vpop.f32.mrf.mxu1 }
0x1f06   : > { %v2903_v52 = vmul.f32 0.70710677, %v2885_v47  ;;  %v2896_v53 = vadd.f32 %v3654_v51, %v2831_v40  ;;  %v2899_v3 = vmul.f32 0.5, %v2885_v47 }
0x1f07   : > { %v2887_v55 = vpop.f32.mrf.mxu1 }
0x1f08   : > { %4017 = verf.f32 %v2903_v52  ;;  %v2906_v11 = vmul.f32 0.70710677, %v2896_v53  ;;  %v2888_v58 = vadd.f32 %v2887_v55, %v2831_v40  ;;  %v2902_v54 = vmul.f32 0.5, %v2896_v53 }
0x1f09   : > { %4019 = verf.f32 %v2905_v25  ;;  %v3078_v25 = vrot.slane %v4031_v39, 6 }
0x1f0a   : > { %4021 = verf.f32 %v2906_v11  ;;  %v2904_v59 = vmul.f32 0.70710677, %v2888_v58  ;;  %v2900_v4 = vmul.f32 0.5, %v2888_v58 }
0x1f0c   : > { %4023 = verf.f32 %v2904_v59 }
0x1f15   : > { %v4018_v56 = vpop.eup %4017 }
0x1f16   : > { %v4020_v60 = vpop.eup %4019  ;;  %v2911_v6 = vadd.f32 1.0, %v4018_v56 }
0x1f17   : > { %v4022_v63 = vpop.eup %4021  ;;  %v2913_v31 = vadd.f32 1.0, %v4020_v60 }
0x1f18   : > { %v2914_v1 = vadd.f32 1.0, %v4022_v63  ;;  %v2915_v8 = vmul.f32 %v2911_v6, %v2899_v3 }
0x1f19   : > { %v4024_v2 = vpop.eup %4023  ;;  %v2917_v36 = vmul.f32 %v2913_v31, %v2901_v7 }
0x1f1a   : > { %v2912_v50 = vadd.f32 1.0, %v4024_v2  ;;  %v2918_v43 = vmul.f32 %v2914_v1, %v2902_v54 }
0x1f1c   : > { %v2916_v48 = vmul.f32 %v2912_v50, %v2900_v4  ;;  %v2920_v42 = vpack.c.bf16 %v2918_v43, %v2917_v36 }
0x1f1e   : > { %v2919_v28 = vpack.c.bf16 %v2916_v48, %v2915_v8 }
0x1f20   : > { %3671 = vmatprep.mubr.bf16.mxu0 %v2919_v28 }
0x1f21   : > { %3672 = vmatmul.mubr.bf16.vlgmr.msra.gmra.mxu0 %v2920_v42 }
0x1fe1   : > { %v3673_v37 = vpop.f32.mrf.mxu0 }
0x1fe3   : > { %v3024_v12 = vpop.f32.mrf.mxu0 }
0x1fe4   : > { %v3025_v14 = vadd.f32 %v3024_v12, %v2941_v27 }
0x1fe5   : > { %v3674_v45 = vpop.f32.mrf.mxu0 }
0x1fe6   : > { %v3036_v61 = vadd.f32 %v3025_v14, %v4848_v19 }
0x1fe7   : > { %v3027_v17 = vpop.f32.mrf.mxu0 }
0x1fe8   : > { %v3037_v13 = vsel %vm482_vm2, %v3036_v61, 0.0 }
0x1fe9   : > { %3038 = vadd.xlane.f32.xlu0 %v3037_v13 }
0x2072   : > { %v3039_v9 = vpop.xlane.xlu0 %3038 }
0x2073   : > { %v3040_v10 = vmul.f32 0.03125, %v3039_v9 }
0x2075   : > { %v3041_v18 = vsub.f32 %v3036_v61, %v3040_v10 }
0x2077   : > { %v3042_v20 = vmul.f32 %v3041_v18, %v3041_v18 }
0x2079   : > { %v3043_v21 = vsel %vm482_vm2, %v3042_v20, 0.0 }
0x207a   : > { %3044 = vadd.xlane.f32.xlu1 %v3043_v21 }
0x2103   : > { %v3045_v22 = vpop.xlane.xlu1 %3044 }
0x2104   : > { %v3046_v23 = vmul.f32 0.03125, %v3045_v22 }
0x2106   : > { %v3047_v16 = vadd.f32 1e-05, %v3046_v23 }
0x2108   : > { %4025 = vrsqrt.f32 %v3047_v16 }
0x2115   : > { %v4026_v24 = vpop.eup %4025 }
0x2116   : > { %v3049_v19 = vmul.f32 %v4026_v24, %v3041_v18 }
0x2118   : > { %v3054_v5 = vmul.f32 %v3053_v41, %v3049_v19 }
0x211a   : > { %v3059_v33 = vadd.f32 %v3058_v32, %v3054_v5 }
0x211c   : > { %v3061_v29 = vsel %vm3060_vm8, %v3059_v33, 0.0 }
0x211d   : > { %3062 = vadd.xlane.f32.xlu0 %v3061_v29 }
0x21a6   : > { %v3063_v30 = vpop.xlane.xlu0 %3062 }
0x21a7   : > { %v3064_v34 = vmul.f32 0.03125, %v3063_v30 }
0x21a9   : > { %v3065_v49 = vsub.f32 %v3059_v33, %v3064_v34 }
0x21ab   : > { %v3066_v35 = vmul.f32 %v3065_v49, %v3065_v49 }
0x21ad   : > { %v3067_v38 = vsel %vm3060_vm8, %v3066_v35, 0.0 }
0x21ae   : > { %3068 = vadd.xlane.f32.xlu1 %v3067_v38 }
0x2237   : > { %v3069_v44 = vpop.xlane.xlu1 %3068 }
0x2238   : > { %v3070_v0 = vmul.f32 0.03125, %v3069_v44 }
0x223a   : > { %v3071_v40 = vadd.f32 1e-05, %v3070_v0 }
0x223c   : > { %4027 = vrsqrt.f32 %v3071_v40 }
0x2249   : > { %v4028_v57 = vpop.eup %4027 }
0x224a   : > { %v3073_v47 = vmul.f32 %v4028_v57, %v3065_v49 }
0x224c   : > { %v3077_v51 = vmul.f32 %v3075_v62, %v3073_v47 }
0x224e   : > { %v3080_v52 = vadd.f32 %v3078_v25, %v3077_v51 }
0x2250   : > { %v3081_v53 = vpack.c.bf16 %v3080_v52, %v3080_v52 }
0x2252   : > { %3680 = vmatmul.mubr.msk.bf16.vlgmr.msra.gmra.mxu1 %vm482_vm2, %v3081_v53 }
0x2312   : > { %v3137_v55 = vpop.f32.mrf.mxu1 }
0x2313   : > { %v3138_v11 = vadd.f32 %v3137_v55, %v3098_v15 }
0x2314   : > { %v3681_v58 = vpop.f32.mrf.mxu1 }
0x2315   : > { %3143 = vst [vmem:[%s351_s20] sm:$0x1] %v3138_v11 }
0x2316   : > { %v3140_v59 = vpop.f32.mrf.mxu1 }
0x2317   : > { %4045 = shalt.err (!%p4042_p3)
}
0x2318   : > { %s4046_s12 = scalar_lea.hbm %s4908_s30, 16  ;;  %s4050_s18 = scalar_lea.hbm %s4959_s10, 32 }
0x2319   : > { %p4047_p4 = scmp.ne.s32.totalorder %s4908_s30, %s4046_s12  ;;  %p4051_p9 = scmp.lt.s32.totalorder %s4908_s30, %s4959_s10 }
0x231a   : > { %p4052_p10 = scmp.lt.s32.totalorder %s4050_s18, %s4046_s12 }
0x231b   : > { %p4048_p7 = pnand %p4047_p4, %p4205_p5 }
0x231c   : > { %p4053_p11 = por %p4052_p10, %p4051_p9 }
0x231d   : > { %p4049_p8 = pneg %p4048_p7 }
0x231f   : > { %p4054_p12 = pnand %p4053_p11, %p4049_p8 }
0x2321   : > { %4057 = shalt.err (!%p4054_p12)
}
0x2322   : > { %3699 = dma.vmem_to_hbm [thread:$0]  (%p4205_p5), %s4910_s21, 16, %s4908_s30, %s3145_s11   ;;  %v3682_v56 = vpop.f32.mrf.mxu1 }
0x2323 PF: > { %p3705_p13 = scmp.ge.s32.totalorder %s4092_s16, 2  ;;  %s3169_s28 = sand.u32 1, %s4080_s13  }
0x2324   : > { %s3170_s29 = scalar_lea.sflag [#allocation3], %s3169_s28 }
0x2325   : > { %p3702_p0 = pnand %p3705_p13, %p4209_p6 }
0x2327   : > { %p3703_p1 = pneg %p3702_p0 }
0x2329   : > { %4075 = dma.done.wait (%p3703_p1), %s3170_s29, 16  }
0x232a   : > { %4077 = vsyncadd (%p3703_p1), %s3170_s29, 4294967280  ;;  %p20_p2 = scmp.ge.s32.totalorder %s4192_s19, 4   ;;  %s4995_s13 = smov %s4084_s14 }
0x232b   : > { %s4996_s14 = smov %s4088_s15  ;;  %s4997_s15 = smov %s4203_s22 }
0x232c   : > { %s4998_s16 = smov %s4192_s19  ;;  %22 = sbr.rel (!%p20_p2) target bundleno = 3 (0x3), region = 100 }
0x2331   :  { %3174 = vsyncpa [#allocation3], 1 }
0x2332   :  { %3176 = vsyncpa [#allocation3 + $0x1], 1 }

</bundles_post_ra>
